<compile_context>
chip_gen: v5e
topology: v5e:2x2
jax: 0.10.0
libtpu: 0.0.40
codegen_flags: <defaults>
</compile_context>

<pallas_src>
import math
from functools import partial

import jax
import jax.numpy as jnp
from jax import lax
from jax.experimental import pallas as pl
from jax.experimental.pallas import tpu as pltpu

# ----------------------------- config (synthetic) ----------------------------
B, C, L = 2, 4, 64                 # batch, n variables, sequence length
INPUT_TOKEN_LEN = 16
OUTPUT_TOKEN_LEN = 16
D_MODEL = 32
N_HEADS = 4
D_FF = 64
E_LAYERS = 2
USE_NORM = True
N_TOKENS = L // INPUT_TOKEN_LEN    # 4
HEAD_DIM = D_MODEL // N_HEADS      # 8
R_TOTAL = B * C * N_TOKENS         # 32 flattened tokens (all sequences stacked)
NEG_INF = -1e30                    # finite "masked" value (diag always unmasked)
# activation = "relu"  (configs.activation)


# ------------------------------- shared helpers ------------------------------
def _layernorm(x, gamma, beta, eps=1e-5):
    mu = jnp.mean(x, axis=-1, keepdims=True)
    var = jnp.mean((x - mu) ** 2, axis=-1, keepdims=True)
    return (x - mu) * lax.rsqrt(var + eps) * gamma + beta


# --------------------------------- fused kernel -------------------------------
def timer_fused_kernel(tok_ref, pe_ref, bias_ref, hmask_ref,
                       w_emb_ref, wqkv_ref, bqkv_ref, wo_ref, bo_ref,
                       w1_ref, b1_ref, w2_ref, b2_ref, ln_ref,
                       lnf_ref, w_head_ref, b_head_ref,
                       o_ref, *, n_heads, e_layers):
    # tok_ref : [R, P]      flattened non-overlapping tokens, R = B*C*N
    # bias_ref: [R, H*R]    additive mask (0 valid / -1e30 masked), causal +
    #                       same-sequence, replicated per head-column block.
    # hmask_ref:[H*R, D]    head block mask: row (h*R+s) is 1 on head h's dims.
    d = w_emb_ref.shape[1]
    scale = 1.0 / math.sqrt(d // n_heads)

    # --- token embedding + positional embedding (pe pre-tiled host-side) ---
    h = jnp.dot(tok_ref[...], w_emb_ref[...],
                preferred_element_type=jnp.float32) + pe_ref[...]        # [R, D]

    # Masks are loaded ONCE before the (unrolled) layer loop.
    bias = bias_ref[...]                                                 # [R, H*R]
    hmask = hmask_ref[...]                                               # [H*R, D]

    for lay in range(e_layers):
        # ---- fused QKV projection: one [R, D] x [D, 3D] matmul ----
        qkv = jnp.dot(h, wqkv_ref[lay],
                      preferred_element_type=jnp.float32) + bqkv_ref[lay]  # [R, 3D]
        q = qkv[:, 0 * d:1 * d]
        k = qkv[:, 1 * d:2 * d]
        v = qkv[:, 2 * d:3 * d]

        # ---- all-head causal attention, flat & lane-dense ----
        # Replicate K/V per head along sublanes and zero out foreign-head dims,
        # so a single 2-D contraction yields per-head scores / outputs.
        khat = jnp.concatenate([k] * n_heads, axis=0) * hmask            # [H*R, D]
        vhat = jnp.concatenate([v] * n_heads, axis=0) * hmask            # [H*R, D]

        # scores[r, h*R+s] = scale * <q[r, head h dims], k[s, head h dims]>
        s = lax.dot_general(q * scale, khat, (((1,), (1,)), ((), ())),
                            preferred_element_type=jnp.float32) + bias    # [R, H*R]
        s = s - jnp.max(s, axis=-1, keepdims=True)   # per-row constant: exact softmax
        p = jnp.exp(s)                               # masked entries underflow to 0

        # numerator and per-head denominators as two MXU matmuls
        num = jnp.dot(p, vhat, preferred_element_type=jnp.float32)        # [R, D]
        den = jnp.dot(p, hmask, preferred_element_type=jnp.float32)       # [R, D]
        attn = num / den                                                  # exact softmax

        # ---- output projection on the full [R, D] slab ----
        attn = jnp.dot(attn, wo_ref[lay],
                       preferred_element_type=jnp.float32) + bo_ref[lay]  # [R, D]

        ln_l = ln_ref[lay]                                                # [4, D]
        x1 = _layernorm(h + attn, ln_l[0:1, :], ln_l[1:2, :])             # norm1

        # conv1 / conv2 with kernel_size=1 == per-token linears (relu act)
        y = jnp.maximum(jnp.dot(x1, w1_ref[lay],
                                preferred_element_type=jnp.float32)
                        + b1_ref[lay], 0.0)
        y = jnp.dot(y, w2_ref[lay],
                    preferred_element_type=jnp.float32) + b2_ref[lay]
        h = _layernorm(x1 + y, ln_l[2:3, :], ln_l[3:4, :])                # norm2

    # ---- final LayerNorm (DecoderOnly.norm) + head Linear ----
    lnf = lnf_ref[...]
    xn = _layernorm(h, lnf[0:1, :], lnf[1:2, :])
    o_ref[...] = jnp.dot(xn, w_head_ref[...],
                         preferred_element_type=jnp.float32) + b_head_ref[...]


# ------------------------------- pallas wrapper --------------------------------
def run_timer_fused(tokens, pe_full, attn_bias, head_mask, params):
    # NOTE: at this synthetic size all weights (with a leading E_LAYERS axis)
    # are kept resident in VMEM.  For production Timer sizes this would switch
    # to a grid axis over layers with per-layer weight index_maps (streaming).
    R, P = tokens.shape
    D = params["w_emb"].shape[1]
    O = params["w_head"].shape[1]
    E = params["wqkv"].shape[0]
    DFF = params["w1"].shape[2]
    HR = head_mask.shape[0]

    def fs(*shape):
        nd = len(shape)
        return pl.BlockSpec(shape, lambda g, _nd=nd: (0,) * _nd)

    return pl.pallas_call(
        partial(timer_fused_kernel, n_heads=N_HEADS, e_layers=E),
        out_shape=jax.ShapeDtypeStruct((R, O), jnp.float32),
        grid=(1,),                                   # single step: no serial grid overhead
        in_specs=[
            fs(R, P),                                 # tokens
            fs(R, D),                                 # tiled positional embedding
            fs(R, HR),                                # additive causal/seq mask bias
            fs(HR, D),                                # head block mask
            fs(P, D),                                 # w_emb
            fs(E, D, 3 * D),                          # fused qkv weight
            fs(E, 1, 3 * D),                          # fused qkv bias
            fs(E, D, D),                              # out proj weight
            fs(E, 1, D),                              # out proj bias
            fs(E, D, DFF),                            # conv1 weight (1x1)
            fs(E, 1, DFF),                            # conv1 bias
            fs(E, DFF, D),                            # conv2 weight (1x1)
            fs(E, 1, D),                              # conv2 bias
            fs(E, 4, D),                              # per-layer LN params
            fs(2, D),                                 # final LN params
            fs(D, O),                                 # head weight
            fs(1, O),                                 # head bias
        ],
        out_specs=pl.BlockSpec((R, O), lambda g: (0, 0)),
        compiler_params=pltpu.CompilerParams(dimension_semantics=("arbitrary",)),
    )(tokens, pe_full, attn_bias, head_mask, params["w_emb"],
      params["wqkv"], params["bqkv"], params["wo"], params["bo"],
      params["w1"], params["b1"], params["w2"], params["b2"], params["ln"],
      params["ln_f"], params["w_head"], params["b_head"])


# ------------------------- host-side constant mask build -------------------------
def build_attention_masks():
    r = jnp.arange(R_TOTAL)
    seq = r // N_TOKENS
    pos = r % N_TOKENS
    valid = (seq[:, None] == seq[None, :]) & (pos[:, None] >= pos[None, :])   # [R, R]
    bias_rr = jnp.where(valid, 0.0, NEG_INF).astype(jnp.float32)
    attn_bias = jnp.tile(bias_rr, (1, N_HEADS))                               # [R, H*R]

    col_head = jnp.arange(N_HEADS * R_TOTAL) // R_TOTAL                       # [H*R]
    feat_head = jnp.arange(D_MODEL) // HEAD_DIM                               # [D]
    head_mask = (col_head[:, None] == feat_head[None, :]).astype(jnp.float32) # [H*R, D]
    return attn_bias, head_mask


# -------------------------------- full forward ---------------------------------
def timer_forward(x, params):
    b, l, c = x.shape
    if USE_NORM:
        means = jnp.mean(x, axis=1, keepdims=True)
        xc = x - means
        stdev = jnp.sqrt(jnp.var(xc, axis=1, keepdims=True) + 1e-5)
        xs = xc / stdev
    else:
        xs = x
    n = l // INPUT_TOKEN_LEN
    # permute + unfold(step == size) == reshape into non-overlapping tokens
    tokens = jnp.transpose(xs, (0, 2, 1)).reshape(b * c * n, INPUT_TOKEN_LEN)
    pe_full = jnp.tile(params["pe"], (b * c, 1))                   # [R, D]

    attn_bias, head_mask = build_attention_masks()

    out = run_timer_fused(tokens, pe_full, attn_bias, head_mask, params)  # [R, O]

    out = out.reshape(b, c, n * OUTPUT_TOKEN_LEN)
    out = jnp.transpose(out, (0, 2, 1))                            # [B, N*O, C]
    if USE_NORM:
        out = out * stdev + means
    return out


# ------------------------- pure-JAX reference (checking) ------------------------
def timer_forward_ref(x, params):
    b, l, c = x.shape
    if USE_NORM:
        means = jnp.mean(x, axis=1, keepdims=True)
        xc = x - means
        stdev = jnp.sqrt(jnp.var(xc, axis=1, keepdims=True) + 1e-5)
        x = xc / stdev
    n = l // INPUT_TOKEN_LEN
    t = jnp.transpose(x, (0, 2, 1)).reshape(b * c, n, INPUT_TOKEN_LEN)
    h = t @ params["w_emb"] + params["pe"][None]
    causal = jnp.arange(n)[:, None] >= jnp.arange(n)[None, :]
    e = D_MODEL // N_HEADS
    for lay in range(E_LAYERS):
        qkv = h @ params["wqkv"][lay] + params["bqkv"][lay]
        q = qkv[..., :D_MODEL]
        k = qkv[..., D_MODEL:2 * D_MODEL]
        v = qkv[..., 2 * D_MODEL:]
        bc = h.shape[0]
        qh = q.reshape(bc, n, N_HEADS, e).transpose(0, 2, 1, 3)
        kh = k.reshape(bc, n, N_HEADS, e).transpose(0, 2, 1, 3)
        vh = v.reshape(bc, n, N_HEADS, e).transpose(0, 2, 1, 3)
        s = jnp.einsum("bhle,bhse->bhls", qh, kh) / math.sqrt(e)
        s = jnp.where(causal[None, None], s, -jnp.inf)
        p = jax.nn.softmax(s, axis=-1)
        o = jnp.einsum("bhls,bhse->bhle", p, vh).transpose(0, 2, 1, 3).reshape(bc, n, D_MODEL)
        o = o @ params["wo"][lay] + params["bo"][lay]
        x1 = _layernorm(h + o, params["ln"][lay, 0:1], params["ln"][lay, 1:2])
        y = jax.nn.relu(x1 @ params["w1"][lay] + params["b1"][lay])
        y = y @ params["w2"][lay] + params["b2"][lay]
        h = _layernorm(x1 + y, params["ln"][lay, 2:3], params["ln"][lay, 3:4])
    hn = _layernorm(h, params["ln_f"][0:1], params["ln_f"][1:2])
    out = hn @ params["w_head"] + params["b_head"]
    out = jnp.transpose(out.reshape(b, c, -1), (0, 2, 1))
    if USE_NORM:
        out = out * stdev + means
    return out


# --------------------------------- parameters -----------------------------------
def init_params(key):
    scale = 0.05
    keys = jax.random.split(key, 4 + E_LAYERS)

    # embedding Linear(input_token_len -> d_model, bias=False); stored as x @ W
    w_emb = jax.random.normal(keys[0], (INPUT_TOKEN_LEN, D_MODEL), jnp.float32) * scale

    # sinusoidal PositionalEmbedding(d_model)
    pos = jnp.arange(N_TOKENS, dtype=jnp.float32)[:, None]
    div = jnp.exp(jnp.arange(0, D_MODEL, 2, dtype=jnp.float32)
                  * (-math.log(10000.0) / D_MODEL))
    pe = jnp.zeros((N_TOKENS, D_MODEL), jnp.float32)
    pe = pe.at[:, 0::2].set(jnp.sin(pos * div))
    pe = pe.at[:, 1::2].set(jnp.cos(pos * div))

    wqkv, bqkv, wo, bo, w1, b1, w2, b2, ln = ([] for _ in range(9))
    for li in range(E_LAYERS):
        k = jax.random.split(keys[1 + li], 8)
        wqkv.append(jax.random.normal(k[0], (D_MODEL, 3 * D_MODEL), jnp.float32) * scale)
        bqkv.append(jax.random.normal(k[1], (1, 3 * D_MODEL), jnp.float32) * scale)
        wo.append(jax.random.normal(k[2], (D_MODEL, D_MODEL), jnp.float32) * scale)
        bo.append(jax.random.normal(k[3], (1, D_MODEL), jnp.float32) * scale)
        w1.append(jax.random.normal(k[4], (D_MODEL, D_FF), jnp.float32) * scale)   # conv1 (1x1)
        b1.append(jax.random.normal(k[5], (1, D_FF), jnp.float32) * scale)
        w2.append(jax.random.normal(k[6], (D_FF, D_MODEL), jnp.float32) * scale)   # conv2 (1x1)
        b2.append(jax.random.normal(k[7], (1, D_MODEL), jnp.float32) * scale)
        ln.append(jnp.stack([jnp.ones((D_MODEL,), jnp.float32),
                             jnp.zeros((D_MODEL,), jnp.float32),
                             jnp.ones((D_MODEL,), jnp.float32),
                             jnp.zeros((D_MODEL,), jnp.float32)], axis=0))

    ln_f = jnp.stack([jnp.ones((D_MODEL,), jnp.float32),
                      jnp.zeros((D_MODEL,), jnp.float32)], axis=0)
    w_head = jax.random.normal(keys[-2], (D_MODEL, OUTPUT_TOKEN_LEN), jnp.float32) * scale
    b_head = jax.random.normal(keys[-1], (1, OUTPUT_TOKEN_LEN), jnp.float32) * scale

    return dict(w_emb=w_emb, pe=pe,
                wqkv=jnp.stack(wqkv), bqkv=jnp.stack(bqkv),
                wo=jnp.stack(wo), bo=jnp.stack(bo),
                w1=jnp.stack(w1), b1=jnp.stack(b1),
                w2=jnp.stack(w2), b2=jnp.stack(b2),
                ln=jnp.stack(ln),
                ln_f=ln_f, w_head=w_head, b_head=b_head)


# ------------------------------------ main ---------------------------------------
if __name__ == "__main__":
    key = jax.random.PRNGKey(0)
    kx, kp = jax.random.split(key)
    x = jax.random.normal(kx, (B, L, C), jnp.float32)
    # x_mark / y_mark are unused by the forward pass (kept for signature parity)
    params = init_params(kp)

    fwd = jax.jit(timer_forward)
    out = jax.block_until_ready(fwd(x, params))
    assert out.shape == (B, N_TOKENS * OUTPUT_TOKEN_LEN, C), out.shape

    ref = jax.block_until_ready(timer_forward_ref(x, params))
    err = float(jnp.max(jnp.abs(out - ref)))
    assert err < 5e-3, f"mismatch vs reference: {err}"

    # TODO(synk): dropout layers are identity here (inference mode only).
    print("KERNEL_OK")
</pallas_src>

<mosaic_0001>
module attributes {stable_mosaic.version = 11 : i64} {
  func.func @timer_fused_kernel(%arg0: i32, %arg1: memref<32x16xf32, #tpu.memory_space<vmem>>, %arg2: memref<32x32xf32, #tpu.memory_space<vmem>>, %arg3: memref<32x128xf32, #tpu.memory_space<vmem>>, %arg4: memref<128x32xf32, #tpu.memory_space<vmem>>, %arg5: memref<16x32xf32, #tpu.memory_space<vmem>>, %arg6: memref<2x32x96xf32, #tpu.memory_space<vmem>>, %arg7: memref<2x1x96xf32, #tpu.memory_space<vmem>>, %arg8: memref<2x32x32xf32, #tpu.memory_space<vmem>>, %arg9: memref<2x1x32xf32, #tpu.memory_space<vmem>>, %arg10: memref<2x32x64xf32, #tpu.memory_space<vmem>>, %arg11: memref<2x1x64xf32, #tpu.memory_space<vmem>>, %arg12: memref<2x64x32xf32, #tpu.memory_space<vmem>>, %arg13: memref<2x1x32xf32, #tpu.memory_space<vmem>>, %arg14: memref<2x4x32xf32, #tpu.memory_space<vmem>>, %arg15: memref<2x32xf32, #tpu.memory_space<vmem>>, %arg16: memref<32x16xf32, #tpu.memory_space<vmem>>, %arg17: memref<1x16xf32, #tpu.memory_space<vmem>>, %arg18: memref<32x16xf32, #tpu.memory_space<vmem>>) attributes {dimension_semantics = [#tpu.dimension_semantics<arbitrary>], iteration_bounds = array<i64: 1>, scalar_prefetch = 0 : i64, scratch_operands = 0 : i64, tpu.core_type = #tpu.core_type<tc>, window_params = [{pipeline_mode = #tpu.pipeline_mode<synchronous>, transform_indices = @transform_0, window_bounds = array<i64: 32, 16>}, {pipeline_mode = #tpu.pipeline_mode<synchronous>, transform_indices = @transform_1, window_bounds = array<i64: 32, 32>}, {pipeline_mode = #tpu.pipeline_mode<synchronous>, transform_indices = @transform_2, window_bounds = array<i64: 32, 128>}, {pipeline_mode = #tpu.pipeline_mode<synchronous>, transform_indices = @transform_3, window_bounds = array<i64: 128, 32>}, {pipeline_mode = #tpu.pipeline_mode<synchronous>, transform_indices = @transform_4, window_bounds = array<i64: 16, 32>}, {pipeline_mode = #tpu.pipeline_mode<synchronous>, transform_indices = @transform_5, window_bounds = array<i64: 2, 32, 96>}, {pipeline_mode = #tpu.pipeline_mode<synchronous>, transform_indices = @transform_6, window_bounds = array<i64: 2, 1, 96>}, {pipeline_mode = #tpu.pipeline_mode<synchronous>, transform_indices = @transform_7, window_bounds = array<i64: 2, 32, 32>}, {pipeline_mode = #tpu.pipeline_mode<synchronous>, transform_indices = @transform_8, window_bounds = array<i64: 2, 1, 32>}, {pipeline_mode = #tpu.pipeline_mode<synchronous>, transform_indices = @transform_9, window_bounds = array<i64: 2, 32, 64>}, {pipeline_mode = #tpu.pipeline_mode<synchronous>, transform_indices = @transform_10, window_bounds = array<i64: 2, 1, 64>}, {pipeline_mode = #tpu.pipeline_mode<synchronous>, transform_indices = @transform_11, window_bounds = array<i64: 2, 64, 32>}, {pipeline_mode = #tpu.pipeline_mode<synchronous>, transform_indices = @transform_12, window_bounds = array<i64: 2, 1, 32>}, {pipeline_mode = #tpu.pipeline_mode<synchronous>, transform_indices = @transform_13, window_bounds = array<i64: 2, 4, 32>}, {pipeline_mode = #tpu.pipeline_mode<synchronous>, transform_indices = @transform_14, window_bounds = array<i64: 2, 32>}, {pipeline_mode = #tpu.pipeline_mode<synchronous>, transform_indices = @transform_15, window_bounds = array<i64: 32, 16>}, {pipeline_mode = #tpu.pipeline_mode<synchronous>, transform_indices = @transform_16, window_bounds = array<i64: 1, 16>}, {pipeline_mode = #tpu.pipeline_mode<synchronous>, transform_indices = @transform_17, window_bounds = array<i64: 32, 16>}]} {
    %c0 = arith.constant 0 : index
    %c0_0 = arith.constant 0 : index
    %0 = vector.load %arg1[%c0, %c0_0] : memref<32x16xf32, #tpu.memory_space<vmem>>, vector<32x16xf32>
    %c0_1 = arith.constant 0 : index
    %c0_2 = arith.constant 0 : index
    %1 = vector.load %arg5[%c0_1, %c0_2] : memref<16x32xf32, #tpu.memory_space<vmem>>, vector<16x32xf32>
    %cst = arith.constant dense<0.000000e+00> : vector<32x32xf32>
    %2 = tpu.matmul %0, %1, %cst {dimension_numbers = #tpu.dot_dimension_numbers<[1], [0], [0], [1], [0, 0, 1, 1], [], []>} : vector<32x16xf32>, vector<16x32xf32>, vector<32x32xf32> -> vector<32x32xf32>
    %c0_3 = arith.constant 0 : index
    %c0_4 = arith.constant 0 : index
    %3 = vector.load %arg2[%c0_3, %c0_4] : memref<32x32xf32, #tpu.memory_space<vmem>>, vector<32x32xf32>
    %4 = arith.addf %2, %3 : vector<32x32xf32>
    %c0_5 = arith.constant 0 : index
    %c0_6 = arith.constant 0 : index
    %5 = vector.load %arg3[%c0_5, %c0_6] : memref<32x128xf32, #tpu.memory_space<vmem>>, vector<32x128xf32>
    %c0_7 = arith.constant 0 : index
    %c0_8 = arith.constant 0 : index
    %6 = vector.load %arg4[%c0_7, %c0_8] : memref<128x32xf32, #tpu.memory_space<vmem>>, vector<128x32xf32>
    %c0_9 = arith.constant 0 : index
    %c0_10 = arith.constant 0 : index
    %c0_11 = arith.constant 0 : index
    %7 = vector.load %arg6[%c0_9, %c0_10, %c0_11] : memref<2x32x96xf32, #tpu.memory_space<vmem>>, vector<1x32x96xf32>
    %8 = vector.shape_cast %7 : vector<1x32x96xf32> to vector<32x96xf32>
    %cst_12 = arith.constant dense<0.000000e+00> : vector<32x96xf32>
    %9 = tpu.matmul %4, %8, %cst_12 {dimension_numbers = #tpu.dot_dimension_numbers<[1], [0], [0], [1], [0, 0, 1, 1], [], []>} : vector<32x32xf32>, vector<32x96xf32>, vector<32x96xf32> -> vector<32x96xf32>
    %c0_13 = arith.constant 0 : index
    %c0_14 = arith.constant 0 : index
    %c0_15 = arith.constant 0 : index
    %10 = vector.load %arg7[%c0_13, %c0_14, %c0_15] : memref<2x1x96xf32, #tpu.memory_space<vmem>>, vector<1x1x96xf32>
    %11 = vector.shape_cast %10 : vector<1x1x96xf32> to vector<1x96xf32>
    %12 = vector.broadcast %11 : vector<1x96xf32> to vector<32x96xf32>
    %13 = arith.addf %9, %12 : vector<32x96xf32>
    %14 = vector.extract_strided_slice %13 {offsets = [0, 0], sizes = [32, 32], strides = [1, 1]} : vector<32x96xf32> to vector<32x32xf32>
    %15 = vector.extract_strided_slice %13 {offsets = [0, 32], sizes = [32, 32], strides = [1, 1]} : vector<32x96xf32> to vector<32x32xf32>
    %16 = vector.extract_strided_slice %13 {offsets = [0, 64], sizes = [32, 32], strides = [1, 1]} : vector<32x96xf32> to vector<32x32xf32>
    %17 = tpu.concatenate %15, %15, %15, %15 in 0 : vector<32x32xf32>, vector<32x32xf32>, vector<32x32xf32>, vector<32x32xf32> -> vector<128x32xf32>
    %18 = arith.mulf %17, %6 : vector<128x32xf32>
    %19 = tpu.concatenate %16, %16, %16, %16 in 0 : vector<32x32xf32>, vector<32x32xf32>, vector<32x32xf32>, vector<32x32xf32> -> vector<128x32xf32>
    %20 = arith.mulf %19, %6 : vector<128x32xf32>
    %cst_16 = arith.constant 0.353553385 : f32
    %21 = vector.broadcast %cst_16 : f32 to vector<32x32xf32>
    %22 = arith.mulf %14, %21 : vector<32x32xf32>
    %cst_17 = arith.constant dense<0.000000e+00> : vector<32x128xf32>
    %23 = tpu.matmul %22, %18, %cst_17 {dimension_numbers = #tpu.dot_dimension_numbers<[1], [1], [0], [0], [0, 0, 1, 0], [], []>} : vector<32x32xf32>, vector<128x32xf32>, vector<32x128xf32> -> vector<32x128xf32>
    %24 = arith.addf %23, %5 : vector<32x128xf32>
    %cst_18 = arith.constant dense<0xFF800000> : vector<32xf32>
    %25 = vector.multi_reduction <maximumf>, %24, %cst_18 [1] : vector<32x128xf32> to vector<32xf32>
    %26 = vector.shape_cast %25 : vector<32xf32> to vector<32x1xf32>
    %27 = vector.broadcast %26 : vector<32x1xf32> to vector<32x128xf32>
    %28 = arith.subf %24, %27 : vector<32x128xf32>
    %29 = math.exp %28 : vector<32x128xf32>
    %cst_19 = arith.constant dense<0.000000e+00> : vector<32x32xf32>
    %30 = tpu.matmul %29, %20, %cst_19 {dimension_numbers = #tpu.dot_dimension_numbers<[1], [0], [0], [1], [0, 0, 1, 1], [], []>} : vector<32x128xf32>, vector<128x32xf32>, vector<32x32xf32> -> vector<32x32xf32>
    %cst_20 = arith.constant dense<0.000000e+00> : vector<32x32xf32>
    %31 = tpu.matmul %29, %6, %cst_20 {dimension_numbers = #tpu.dot_dimension_numbers<[1], [0], [0], [1], [0, 0, 1, 1], [], []>} : vector<32x128xf32>, vector<128x32xf32>, vector<32x32xf32> -> vector<32x32xf32>
    %32 = arith.divf %30, %31 : vector<32x32xf32>
    %c0_21 = arith.constant 0 : index
    %c0_22 = arith.constant 0 : index
    %c0_23 = arith.constant 0 : index
    %33 = vector.load %arg8[%c0_21, %c0_22, %c0_23] : memref<2x32x32xf32, #tpu.memory_space<vmem>>, vector<1x32x32xf32>
    %34 = vector.shape_cast %33 : vector<1x32x32xf32> to vector<32x32xf32>
    %cst_24 = arith.constant dense<0.000000e+00> : vector<32x32xf32>
    %35 = tpu.matmul %32, %34, %cst_24 {dimension_numbers = #tpu.dot_dimension_numbers<[1], [0], [0], [1], [0, 0, 1, 1], [], []>} : vector<32x32xf32>, vector<32x32xf32>, vector<32x32xf32> -> vector<32x32xf32>
    %c0_25 = arith.constant 0 : index
    %c0_26 = arith.constant 0 : index
    %c0_27 = arith.constant 0 : index
    %36 = vector.load %arg9[%c0_25, %c0_26, %c0_27] : memref<2x1x32xf32, #tpu.memory_space<vmem>>, vector<1x1x32xf32>
    %37 = vector.shape_cast %36 : vector<1x1x32xf32> to vector<1x32xf32>
    %38 = vector.broadcast %37 : vector<1x32xf32> to vector<32x32xf32>
    %39 = arith.addf %35, %38 : vector<32x32xf32>
    %c0_28 = arith.constant 0 : index
    %c0_29 = arith.constant 0 : index
    %c0_30 = arith.constant 0 : index
    %40 = vector.load %arg14[%c0_28, %c0_29, %c0_30] : memref<2x4x32xf32, #tpu.memory_space<vmem>>, vector<1x4x32xf32>
    %41 = vector.shape_cast %40 : vector<1x4x32xf32> to vector<4x32xf32>
    %42 = arith.addf %4, %39 : vector<32x32xf32>
    %43 = vector.extract_strided_slice %41 {offsets = [0, 0], sizes = [1, 32], strides = [1, 1]} : vector<4x32xf32> to vector<1x32xf32>
    %44 = vector.extract_strided_slice %41 {offsets = [1, 0], sizes = [1, 32], strides = [1, 1]} : vector<4x32xf32> to vector<1x32xf32>
    %cst_31 = arith.constant dense<0.000000e+00> : vector<32xf32>
    %45 = vector.multi_reduction <add>, %42, %cst_31 [1] : vector<32x32xf32> to vector<32xf32>
    %46 = vector.shape_cast %45 : vector<32xf32> to vector<32x1xf32>
    %cst_32 = arith.constant 3.200000e+01 : f32
    %47 = vector.broadcast %cst_32 : f32 to vector<32x1xf32>
    %48 = arith.divf %46, %47 : vector<32x1xf32>
    %49 = vector.broadcast %48 : vector<32x1xf32> to vector<32x32xf32>
    %50 = arith.subf %42, %49 : vector<32x32xf32>
    %51 = arith.mulf %50, %50 : vector<32x32xf32>
    %cst_33 = arith.constant dense<0.000000e+00> : vector<32xf32>
    %52 = vector.multi_reduction <add>, %51, %cst_33 [1] : vector<32x32xf32> to vector<32xf32>
    %53 = vector.shape_cast %52 : vector<32xf32> to vector<32x1xf32>
    %cst_34 = arith.constant 3.200000e+01 : f32
    %54 = vector.broadcast %cst_34 : f32 to vector<32x1xf32>
    %55 = arith.divf %53, %54 : vector<32x1xf32>
    %56 = vector.broadcast %48 : vector<32x1xf32> to vector<32x32xf32>
    %57 = arith.subf %42, %56 : vector<32x32xf32>
    %cst_35 = arith.constant 9.99999974E-6 : f32
    %58 = vector.broadcast %cst_35 : f32 to vector<32x1xf32>
    %59 = arith.addf %55, %58 : vector<32x1xf32>
    %60 = math.rsqrt %59 : vector<32x1xf32>
    %61 = vector.broadcast %60 : vector<32x1xf32> to vector<32x32xf32>
    %62 = arith.mulf %57, %61 : vector<32x32xf32>
    %63 = vector.broadcast %43 : vector<1x32xf32> to vector<32x32xf32>
    %64 = arith.mulf %62, %63 : vector<32x32xf32>
    %65 = vector.broadcast %44 : vector<1x32xf32> to vector<32x32xf32>
    %66 = arith.addf %64, %65 : vector<32x32xf32>
    %c0_36 = arith.constant 0 : index
    %c0_37 = arith.constant 0 : index
    %c0_38 = arith.constant 0 : index
    %67 = vector.load %arg10[%c0_36, %c0_37, %c0_38] : memref<2x32x64xf32, #tpu.memory_space<vmem>>, vector<1x32x64xf32>
    %68 = vector.shape_cast %67 : vector<1x32x64xf32> to vector<32x64xf32>
    %cst_39 = arith.constant dense<0.000000e+00> : vector<32x64xf32>
    %69 = tpu.matmul %66, %68, %cst_39 {dimension_numbers = #tpu.dot_dimension_numbers<[1], [0], [0], [1], [0, 0, 1, 1], [], []>} : vector<32x32xf32>, vector<32x64xf32>, vector<32x64xf32> -> vector<32x64xf32>
    %c0_40 = arith.constant 0 : index
    %c0_41 = arith.constant 0 : index
    %c0_42 = arith.constant 0 : index
    %70 = vector.load %arg11[%c0_40, %c0_41, %c0_42] : memref<2x1x64xf32, #tpu.memory_space<vmem>>, vector<1x1x64xf32>
    %71 = vector.shape_cast %70 : vector<1x1x64xf32> to vector<1x64xf32>
    %72 = vector.broadcast %71 : vector<1x64xf32> to vector<32x64xf32>
    %73 = arith.addf %69, %72 : vector<32x64xf32>
    %cst_43 = arith.constant 0.000000e+00 : f32
    %74 = vector.broadcast %cst_43 : f32 to vector<32x64xf32>
    %75 = arith.maximumf %73, %74 : vector<32x64xf32>
    %c0_44 = arith.constant 0 : index
    %c0_45 = arith.constant 0 : index
    %c0_46 = arith.constant 0 : index
    %76 = vector.load %arg12[%c0_44, %c0_45, %c0_46] : memref<2x64x32xf32, #tpu.memory_space<vmem>>, vector<1x64x32xf32>
    %77 = vector.shape_cast %76 : vector<1x64x32xf32> to vector<64x32xf32>
    %cst_47 = arith.constant dense<0.000000e+00> : vector<32x32xf32>
    %78 = tpu.matmul %75, %77, %cst_47 {dimension_numbers = #tpu.dot_dimension_numbers<[1], [0], [0], [1], [0, 0, 1, 1], [], []>} : vector<32x64xf32>, vector<64x32xf32>, vector<32x32xf32> -> vector<32x32xf32>
    %c0_48 = arith.constant 0 : index
    %c0_49 = arith.constant 0 : index
    %c0_50 = arith.constant 0 : index
    %79 = vector.load %arg13[%c0_48, %c0_49, %c0_50] : memref<2x1x32xf32, #tpu.memory_space<vmem>>, vector<1x1x32xf32>
    %80 = vector.shape_cast %79 : vector<1x1x32xf32> to vector<1x32xf32>
    %81 = vector.broadcast %80 : vector<1x32xf32> to vector<32x32xf32>
    %82 = arith.addf %78, %81 : vector<32x32xf32>
    %83 = arith.addf %66, %82 : vector<32x32xf32>
    %84 = vector.extract_strided_slice %41 {offsets = [2, 0], sizes = [1, 32], strides = [1, 1]} : vector<4x32xf32> to vector<1x32xf32>
    %85 = vector.extract_strided_slice %41 {offsets = [3, 0], sizes = [1, 32], strides = [1, 1]} : vector<4x32xf32> to vector<1x32xf32>
    %cst_51 = arith.constant dense<0.000000e+00> : vector<32xf32>
    %86 = vector.multi_reduction <add>, %83, %cst_51 [1] : vector<32x32xf32> to vector<32xf32>
    %87 = vector.shape_cast %86 : vector<32xf32> to vector<32x1xf32>
    %cst_52 = arith.constant 3.200000e+01 : f32
    %88 = vector.broadcast %cst_52 : f32 to vector<32x1xf32>
    %89 = arith.divf %87, %88 : vector<32x1xf32>
    %90 = vector.broadcast %89 : vector<32x1xf32> to vector<32x32xf32>
    %91 = arith.subf %83, %90 : vector<32x32xf32>
    %92 = arith.mulf %91, %91 : vector<32x32xf32>
    %cst_53 = arith.constant dense<0.000000e+00> : vector<32xf32>
    %93 = vector.multi_reduction <add>, %92, %cst_53 [1] : vector<32x32xf32> to vector<32xf32>
    %94 = vector.shape_cast %93 : vector<32xf32> to vector<32x1xf32>
    %cst_54 = arith.constant 3.200000e+01 : f32
    %95 = vector.broadcast %cst_54 : f32 to vector<32x1xf32>
    %96 = arith.divf %94, %95 : vector<32x1xf32>
    %97 = vector.broadcast %89 : vector<32x1xf32> to vector<32x32xf32>
    %98 = arith.subf %83, %97 : vector<32x32xf32>
    %cst_55 = arith.constant 9.99999974E-6 : f32
    %99 = vector.broadcast %cst_55 : f32 to vector<32x1xf32>
    %100 = arith.addf %96, %99 : vector<32x1xf32>
    %101 = math.rsqrt %100 : vector<32x1xf32>
    %102 = vector.broadcast %101 : vector<32x1xf32> to vector<32x32xf32>
    %103 = arith.mulf %98, %102 : vector<32x32xf32>
    %104 = vector.broadcast %84 : vector<1x32xf32> to vector<32x32xf32>
    %105 = arith.mulf %103, %104 : vector<32x32xf32>
    %106 = vector.broadcast %85 : vector<1x32xf32> to vector<32x32xf32>
    %107 = arith.addf %105, %106 : vector<32x32xf32>
    %c1 = arith.constant 1 : index
    %c0_56 = arith.constant 0 : index
    %c0_57 = arith.constant 0 : index
    %108 = vector.load %arg6[%c1, %c0_56, %c0_57] : memref<2x32x96xf32, #tpu.memory_space<vmem>>, vector<1x32x96xf32>
    %109 = vector.shape_cast %108 : vector<1x32x96xf32> to vector<32x96xf32>
    %cst_58 = arith.constant dense<0.000000e+00> : vector<32x96xf32>
    %110 = tpu.matmul %107, %109, %cst_58 {dimension_numbers = #tpu.dot_dimension_numbers<[1], [0], [0], [1], [0, 0, 1, 1], [], []>} : vector<32x32xf32>, vector<32x96xf32>, vector<32x96xf32> -> vector<32x96xf32>
    %c1_59 = arith.constant 1 : index
    %c0_60 = arith.constant 0 : index
    %c0_61 = arith.constant 0 : index
    %111 = vector.load %arg7[%c1_59, %c0_60, %c0_61] : memref<2x1x96xf32, #tpu.memory_space<vmem>>, vector<1x1x96xf32>
    %112 = vector.shape_cast %111 : vector<1x1x96xf32> to vector<1x96xf32>
    %113 = vector.broadcast %112 : vector<1x96xf32> to vector<32x96xf32>
    %114 = arith.addf %110, %113 : vector<32x96xf32>
    %115 = vector.extract_strided_slice %114 {offsets = [0, 0], sizes = [32, 32], strides = [1, 1]} : vector<32x96xf32> to vector<32x32xf32>
    %116 = vector.extract_strided_slice %114 {offsets = [0, 32], sizes = [32, 32], strides = [1, 1]} : vector<32x96xf32> to vector<32x32xf32>
    %117 = vector.extract_strided_slice %114 {offsets = [0, 64], sizes = [32, 32], strides = [1, 1]} : vector<32x96xf32> to vector<32x32xf32>
    %118 = tpu.concatenate %116, %116, %116, %116 in 0 : vector<32x32xf32>, vector<32x32xf32>, vector<32x32xf32>, vector<32x32xf32> -> vector<128x32xf32>
    %119 = arith.mulf %118, %6 : vector<128x32xf32>
    %120 = tpu.concatenate %117, %117, %117, %117 in 0 : vector<32x32xf32>, vector<32x32xf32>, vector<32x32xf32>, vector<32x32xf32> -> vector<128x32xf32>
    %121 = arith.mulf %120, %6 : vector<128x32xf32>
    %cst_62 = arith.constant 0.353553385 : f32
    %122 = vector.broadcast %cst_62 : f32 to vector<32x32xf32>
    %123 = arith.mulf %115, %122 : vector<32x32xf32>
    %cst_63 = arith.constant dense<0.000000e+00> : vector<32x128xf32>
    %124 = tpu.matmul %123, %119, %cst_63 {dimension_numbers = #tpu.dot_dimension_numbers<[1], [1], [0], [0], [0, 0, 1, 0], [], []>} : vector<32x32xf32>, vector<128x32xf32>, vector<32x128xf32> -> vector<32x128xf32>
    %125 = arith.addf %124, %5 : vector<32x128xf32>
    %cst_64 = arith.constant dense<0xFF800000> : vector<32xf32>
    %126 = vector.multi_reduction <maximumf>, %125, %cst_64 [1] : vector<32x128xf32> to vector<32xf32>
    %127 = vector.shape_cast %126 : vector<32xf32> to vector<32x1xf32>
    %128 = vector.broadcast %127 : vector<32x1xf32> to vector<32x128xf32>
    %129 = arith.subf %125, %128 : vector<32x128xf32>
    %130 = math.exp %129 : vector<32x128xf32>
    %cst_65 = arith.constant dense<0.000000e+00> : vector<32x32xf32>
    %131 = tpu.matmul %130, %121, %cst_65 {dimension_numbers = #tpu.dot_dimension_numbers<[1], [0], [0], [1], [0, 0, 1, 1], [], []>} : vector<32x128xf32>, vector<128x32xf32>, vector<32x32xf32> -> vector<32x32xf32>
    %cst_66 = arith.constant dense<0.000000e+00> : vector<32x32xf32>
    %132 = tpu.matmul %130, %6, %cst_66 {dimension_numbers = #tpu.dot_dimension_numbers<[1], [0], [0], [1], [0, 0, 1, 1], [], []>} : vector<32x128xf32>, vector<128x32xf32>, vector<32x32xf32> -> vector<32x32xf32>
    %133 = arith.divf %131, %132 : vector<32x32xf32>
    %c1_67 = arith.constant 1 : index
    %c0_68 = arith.constant 0 : index
    %c0_69 = arith.constant 0 : index
    %134 = vector.load %arg8[%c1_67, %c0_68, %c0_69] : memref<2x32x32xf32, #tpu.memory_space<vmem>>, vector<1x32x32xf32>
    %135 = vector.shape_cast %134 : vector<1x32x32xf32> to vector<32x32xf32>
    %cst_70 = arith.constant dense<0.000000e+00> : vector<32x32xf32>
    %136 = tpu.matmul %133, %135, %cst_70 {dimension_numbers = #tpu.dot_dimension_numbers<[1], [0], [0], [1], [0, 0, 1, 1], [], []>} : vector<32x32xf32>, vector<32x32xf32>, vector<32x32xf32> -> vector<32x32xf32>
    %c1_71 = arith.constant 1 : index
    %c0_72 = arith.constant 0 : index
    %c0_73 = arith.constant 0 : index
    %137 = vector.load %arg9[%c1_71, %c0_72, %c0_73] : memref<2x1x32xf32, #tpu.memory_space<vmem>>, vector<1x1x32xf32>
    %138 = vector.shape_cast %137 : vector<1x1x32xf32> to vector<1x32xf32>
    %139 = vector.broadcast %138 : vector<1x32xf32> to vector<32x32xf32>
    %140 = arith.addf %136, %139 : vector<32x32xf32>
    %c1_74 = arith.constant 1 : index
    %c0_75 = arith.constant 0 : index
    %c0_76 = arith.constant 0 : index
    %141 = vector.load %arg14[%c1_74, %c0_75, %c0_76] : memref<2x4x32xf32, #tpu.memory_space<vmem>>, vector<1x4x32xf32>
    %142 = vector.shape_cast %141 : vector<1x4x32xf32> to vector<4x32xf32>
    %143 = arith.addf %107, %140 : vector<32x32xf32>
    %144 = vector.extract_strided_slice %142 {offsets = [0, 0], sizes = [1, 32], strides = [1, 1]} : vector<4x32xf32> to vector<1x32xf32>
    %145 = vector.extract_strided_slice %142 {offsets = [1, 0], sizes = [1, 32], strides = [1, 1]} : vector<4x32xf32> to vector<1x32xf32>
    %cst_77 = arith.constant dense<0.000000e+00> : vector<32xf32>
    %146 = vector.multi_reduction <add>, %143, %cst_77 [1] : vector<32x32xf32> to vector<32xf32>
    %147 = vector.shape_cast %146 : vector<32xf32> to vector<32x1xf32>
    %cst_78 = arith.constant 3.200000e+01 : f32
    %148 = vector.broadcast %cst_78 : f32 to vector<32x1xf32>
    %149 = arith.divf %147, %148 : vector<32x1xf32>
    %150 = vector.broadcast %149 : vector<32x1xf32> to vector<32x32xf32>
    %151 = arith.subf %143, %150 : vector<32x32xf32>
    %152 = arith.mulf %151, %151 : vector<32x32xf32>
    %cst_79 = arith.constant dense<0.000000e+00> : vector<32xf32>
    %153 = vector.multi_reduction <add>, %152, %cst_79 [1] : vector<32x32xf32> to vector<32xf32>
    %154 = vector.shape_cast %153 : vector<32xf32> to vector<32x1xf32>
    %cst_80 = arith.constant 3.200000e+01 : f32
    %155 = vector.broadcast %cst_80 : f32 to vector<32x1xf32>
    %156 = arith.divf %154, %155 : vector<32x1xf32>
    %157 = vector.broadcast %149 : vector<32x1xf32> to vector<32x32xf32>
    %158 = arith.subf %143, %157 : vector<32x32xf32>
    %cst_81 = arith.constant 9.99999974E-6 : f32
    %159 = vector.broadcast %cst_81 : f32 to vector<32x1xf32>
    %160 = arith.addf %156, %159 : vector<32x1xf32>
    %161 = math.rsqrt %160 : vector<32x1xf32>
    %162 = vector.broadcast %161 : vector<32x1xf32> to vector<32x32xf32>
    %163 = arith.mulf %158, %162 : vector<32x32xf32>
    %164 = vector.broadcast %144 : vector<1x32xf32> to vector<32x32xf32>
    %165 = arith.mulf %163, %164 : vector<32x32xf32>
    %166 = vector.broadcast %145 : vector<1x32xf32> to vector<32x32xf32>
    %167 = arith.addf %165, %166 : vector<32x32xf32>
    %c1_82 = arith.constant 1 : index
    %c0_83 = arith.constant 0 : index
    %c0_84 = arith.constant 0 : index
    %168 = vector.load %arg10[%c1_82, %c0_83, %c0_84] : memref<2x32x64xf32, #tpu.memory_space<vmem>>, vector<1x32x64xf32>
    %169 = vector.shape_cast %168 : vector<1x32x64xf32> to vector<32x64xf32>
    %cst_85 = arith.constant dense<0.000000e+00> : vector<32x64xf32>
    %170 = tpu.matmul %167, %169, %cst_85 {dimension_numbers = #tpu.dot_dimension_numbers<[1], [0], [0], [1], [0, 0, 1, 1], [], []>} : vector<32x32xf32>, vector<32x64xf32>, vector<32x64xf32> -> vector<32x64xf32>
    %c1_86 = arith.constant 1 : index
    %c0_87 = arith.constant 0 : index
    %c0_88 = arith.constant 0 : index
    %171 = vector.load %arg11[%c1_86, %c0_87, %c0_88] : memref<2x1x64xf32, #tpu.memory_space<vmem>>, vector<1x1x64xf32>
    %172 = vector.shape_cast %171 : vector<1x1x64xf32> to vector<1x64xf32>
    %173 = vector.broadcast %172 : vector<1x64xf32> to vector<32x64xf32>
    %174 = arith.addf %170, %173 : vector<32x64xf32>
    %cst_89 = arith.constant 0.000000e+00 : f32
    %175 = vector.broadcast %cst_89 : f32 to vector<32x64xf32>
    %176 = arith.maximumf %174, %175 : vector<32x64xf32>
    %c1_90 = arith.constant 1 : index
    %c0_91 = arith.constant 0 : index
    %c0_92 = arith.constant 0 : index
    %177 = vector.load %arg12[%c1_90, %c0_91, %c0_92] : memref<2x64x32xf32, #tpu.memory_space<vmem>>, vector<1x64x32xf32>
    %178 = vector.shape_cast %177 : vector<1x64x32xf32> to vector<64x32xf32>
    %cst_93 = arith.constant dense<0.000000e+00> : vector<32x32xf32>
    %179 = tpu.matmul %176, %178, %cst_93 {dimension_numbers = #tpu.dot_dimension_numbers<[1], [0], [0], [1], [0, 0, 1, 1], [], []>} : vector<32x64xf32>, vector<64x32xf32>, vector<32x32xf32> -> vector<32x32xf32>
    %c1_94 = arith.constant 1 : index
    %c0_95 = arith.constant 0 : index
    %c0_96 = arith.constant 0 : index
    %180 = vector.load %arg13[%c1_94, %c0_95, %c0_96] : memref<2x1x32xf32, #tpu.memory_space<vmem>>, vector<1x1x32xf32>
    %181 = vector.shape_cast %180 : vector<1x1x32xf32> to vector<1x32xf32>
    %182 = vector.broadcast %181 : vector<1x32xf32> to vector<32x32xf32>
    %183 = arith.addf %179, %182 : vector<32x32xf32>
    %184 = arith.addf %167, %183 : vector<32x32xf32>
    %185 = vector.extract_strided_slice %142 {offsets = [2, 0], sizes = [1, 32], strides = [1, 1]} : vector<4x32xf32> to vector<1x32xf32>
    %186 = vector.extract_strided_slice %142 {offsets = [3, 0], sizes = [1, 32], strides = [1, 1]} : vector<4x32xf32> to vector<1x32xf32>
    %cst_97 = arith.constant dense<0.000000e+00> : vector<32xf32>
    %187 = vector.multi_reduction <add>, %184, %cst_97 [1] : vector<32x32xf32> to vector<32xf32>
    %188 = vector.shape_cast %187 : vector<32xf32> to vector<32x1xf32>
    %cst_98 = arith.constant 3.200000e+01 : f32
    %189 = vector.broadcast %cst_98 : f32 to vector<32x1xf32>
    %190 = arith.divf %188, %189 : vector<32x1xf32>
    %191 = vector.broadcast %190 : vector<32x1xf32> to vector<32x32xf32>
    %192 = arith.subf %184, %191 : vector<32x32xf32>
    %193 = arith.mulf %192, %192 : vector<32x32xf32>
    %cst_99 = arith.constant dense<0.000000e+00> : vector<32xf32>
    %194 = vector.multi_reduction <add>, %193, %cst_99 [1] : vector<32x32xf32> to vector<32xf32>
    %195 = vector.shape_cast %194 : vector<32xf32> to vector<32x1xf32>
    %cst_100 = arith.constant 3.200000e+01 : f32
    %196 = vector.broadcast %cst_100 : f32 to vector<32x1xf32>
    %197 = arith.divf %195, %196 : vector<32x1xf32>
    %198 = vector.broadcast %190 : vector<32x1xf32> to vector<32x32xf32>
    %199 = arith.subf %184, %198 : vector<32x32xf32>
    %cst_101 = arith.constant 9.99999974E-6 : f32
    %200 = vector.broadcast %cst_101 : f32 to vector<32x1xf32>
    %201 = arith.addf %197, %200 : vector<32x1xf32>
    %202 = math.rsqrt %201 : vector<32x1xf32>
    %203 = vector.broadcast %202 : vector<32x1xf32> to vector<32x32xf32>
    %204 = arith.mulf %199, %203 : vector<32x32xf32>
    %205 = vector.broadcast %185 : vector<1x32xf32> to vector<32x32xf32>
    %206 = arith.mulf %204, %205 : vector<32x32xf32>
    %207 = vector.broadcast %186 : vector<1x32xf32> to vector<32x32xf32>
    %208 = arith.addf %206, %207 : vector<32x32xf32>
    %c0_102 = arith.constant 0 : index
    %c0_103 = arith.constant 0 : index
    %209 = vector.load %arg15[%c0_102, %c0_103] : memref<2x32xf32, #tpu.memory_space<vmem>>, vector<2x32xf32>
    %210 = vector.extract_strided_slice %209 {offsets = [0, 0], sizes = [1, 32], strides = [1, 1]} : vector<2x32xf32> to vector<1x32xf32>
    %211 = vector.extract_strided_slice %209 {offsets = [1, 0], sizes = [1, 32], strides = [1, 1]} : vector<2x32xf32> to vector<1x32xf32>
    %cst_104 = arith.constant dense<0.000000e+00> : vector<32xf32>
    %212 = vector.multi_reduction <add>, %208, %cst_104 [1] : vector<32x32xf32> to vector<32xf32>
    %213 = vector.shape_cast %212 : vector<32xf32> to vector<32x1xf32>
    %cst_105 = arith.constant 3.200000e+01 : f32
    %214 = vector.broadcast %cst_105 : f32 to vector<32x1xf32>
    %215 = arith.divf %213, %214 : vector<32x1xf32>
    %216 = vector.broadcast %215 : vector<32x1xf32> to vector<32x32xf32>
    %217 = arith.subf %208, %216 : vector<32x32xf32>
    %218 = arith.mulf %217, %217 : vector<32x32xf32>
    %cst_106 = arith.constant dense<0.000000e+00> : vector<32xf32>
    %219 = vector.multi_reduction <add>, %218, %cst_106 [1] : vector<32x32xf32> to vector<32xf32>
    %220 = vector.shape_cast %219 : vector<32xf32> to vector<32x1xf32>
    %cst_107 = arith.constant 3.200000e+01 : f32
    %221 = vector.broadcast %cst_107 : f32 to vector<32x1xf32>
    %222 = arith.divf %220, %221 : vector<32x1xf32>
    %223 = vector.broadcast %215 : vector<32x1xf32> to vector<32x32xf32>
    %224 = arith.subf %208, %223 : vector<32x32xf32>
    %cst_108 = arith.constant 9.99999974E-6 : f32
    %225 = vector.broadcast %cst_108 : f32 to vector<32x1xf32>
    %226 = arith.addf %222, %225 : vector<32x1xf32>
    %227 = math.rsqrt %226 : vector<32x1xf32>
    %228 = vector.broadcast %227 : vector<32x1xf32> to vector<32x32xf32>
    %229 = arith.mulf %224, %228 : vector<32x32xf32>
    %230 = vector.broadcast %210 : vector<1x32xf32> to vector<32x32xf32>
    %231 = arith.mulf %229, %230 : vector<32x32xf32>
    %232 = vector.broadcast %211 : vector<1x32xf32> to vector<32x32xf32>
    %233 = arith.addf %231, %232 : vector<32x32xf32>
    %c0_109 = arith.constant 0 : index
    %c0_110 = arith.constant 0 : index
    %234 = vector.load %arg16[%c0_109, %c0_110] : memref<32x16xf32, #tpu.memory_space<vmem>>, vector<32x16xf32>
    %cst_111 = arith.constant dense<0.000000e+00> : vector<32x16xf32>
    %235 = tpu.matmul %233, %234, %cst_111 {dimension_numbers = #tpu.dot_dimension_numbers<[1], [0], [0], [1], [0, 0, 1, 1], [], []>} : vector<32x32xf32>, vector<32x16xf32>, vector<32x16xf32> -> vector<32x16xf32>
    %c0_112 = arith.constant 0 : index
    %c0_113 = arith.constant 0 : index
    %236 = vector.load %arg17[%c0_112, %c0_113] : memref<1x16xf32, #tpu.memory_space<vmem>>, vector<1x16xf32>
    %237 = vector.broadcast %236 : vector<1x16xf32> to vector<32x16xf32>
    %238 = arith.addf %235, %237 : vector<32x16xf32>
    %c0_114 = arith.constant 0 : index
    %c0_115 = arith.constant 0 : index
    %239 = vector.load %arg18[%c0_114, %c0_115] : memref<32x16xf32, #tpu.memory_space<vmem>>, vector<32x16xf32>
    tpu.vector_store %arg18[%c0_114, %c0_115], %238 {strides = array<i32>} : memref<32x16xf32, #tpu.memory_space<vmem>>, vector<32x16xf32>,
    return
  }
  func.func @transform_0(%arg0: i32) -> (i32, i32) {
    %c0_i32 = arith.constant 0 : i32
    %c0_i32_0 = arith.constant 0 : i32
    %c0_i32_1 = arith.constant 0 : i32
    return %c0_i32, %c0_i32_0 : i32, i32
  }
  func.func @transform_1(%arg0: i32) -> (i32, i32) {
    %c0_i32 = arith.constant 0 : i32
    %c0_i32_0 = arith.constant 0 : i32
    %c0_i32_1 = arith.constant 0 : i32
    return %c0_i32, %c0_i32_0 : i32, i32
  }
  func.func @transform_2(%arg0: i32) -> (i32, i32) {
    %c0_i32 = arith.constant 0 : i32
    %c0_i32_0 = arith.constant 0 : i32
    %c0_i32_1 = arith.constant 0 : i32
    return %c0_i32, %c0_i32_0 : i32, i32
  }
  func.func @transform_3(%arg0: i32) -> (i32, i32) {
    %c0_i32 = arith.constant 0 : i32
    %c0_i32_0 = arith.constant 0 : i32
    %c0_i32_1 = arith.constant 0 : i32
    return %c0_i32, %c0_i32_0 : i32, i32
  }
  func.func @transform_4(%arg0: i32) -> (i32, i32) {
    %c0_i32 = arith.constant 0 : i32
    %c0_i32_0 = arith.constant 0 : i32
    %c0_i32_1 = arith.constant 0 : i32
    return %c0_i32, %c0_i32_0 : i32, i32
  }
  func.func @transform_5(%arg0: i32) -> (i32, i32, i32) {
    %c0_i32 = arith.constant 0 : i32
    %c0_i32_0 = arith.constant 0 : i32
    %c0_i32_1 = arith.constant 0 : i32
    %c0_i32_2 = arith.constant 0 : i32
    return %c0_i32, %c0_i32_0, %c0_i32_1 : i32, i32, i32
  }
  func.func @transform_6(%arg0: i32) -> (i32, i32, i32) {
    %c0_i32 = arith.constant 0 : i32
    %c0_i32_0 = arith.constant 0 : i32
    %c0_i32_1 = arith.constant 0 : i32
    %c0_i32_2 = arith.constant 0 : i32
    return %c0_i32, %c0_i32_0, %c0_i32_1 : i32, i32, i32
  }
  func.func @transform_7(%arg0: i32) -> (i32, i32, i32) {
    %c0_i32 = arith.constant 0 : i32
    %c0_i32_0 = arith.constant 0 : i32
    %c0_i32_1 = arith.constant 0 : i32
    %c0_i32_2 = arith.constant 0 : i32
    return %c0_i32, %c0_i32_0, %c0_i32_1 : i32, i32, i32
  }
  func.func @transform_8(%arg0: i32) -> (i32, i32, i32) {
    %c0_i32 = arith.constant 0 : i32
    %c0_i32_0 = arith.constant 0 : i32
    %c0_i32_1 = arith.constant 0 : i32
    %c0_i32_2 = arith.constant 0 : i32
    return %c0_i32, %c0_i32_0, %c0_i32_1 : i32, i32, i32
  }
  func.func @transform_9(%arg0: i32) -> (i32, i32, i32) {
    %c0_i32 = arith.constant 0 : i32
    %c0_i32_0 = arith.constant 0 : i32
    %c0_i32_1 = arith.constant 0 : i32
    %c0_i32_2 = arith.constant 0 : i32
    return %c0_i32, %c0_i32_0, %c0_i32_1 : i32, i32, i32
  }
  func.func @transform_10(%arg0: i32) -> (i32, i32, i32) {
    %c0_i32 = arith.constant 0 : i32
    %c0_i32_0 = arith.constant 0 : i32
    %c0_i32_1 = arith.constant 0 : i32
    %c0_i32_2 = arith.constant 0 : i32
    return %c0_i32, %c0_i32_0, %c0_i32_1 : i32, i32, i32
  }
  func.func @transform_11(%arg0: i32) -> (i32, i32, i32) {
    %c0_i32 = arith.constant 0 : i32
    %c0_i32_0 = arith.constant 0 : i32
    %c0_i32_1 = arith.constant 0 : i32
    %c0_i32_2 = arith.constant 0 : i32
    return %c0_i32, %c0_i32_0, %c0_i32_1 : i32, i32, i32
  }
  func.func @transform_12(%arg0: i32) -> (i32, i32, i32) {
    %c0_i32 = arith.constant 0 : i32
    %c0_i32_0 = arith.constant 0 : i32
    %c0_i32_1 = arith.constant 0 : i32
    %c0_i32_2 = arith.constant 0 : i32
    return %c0_i32, %c0_i32_0, %c0_i32_1 : i32, i32, i32
  }
  func.func @transform_13(%arg0: i32) -> (i32, i32, i32) {
    %c0_i32 = arith.constant 0 : i32
    %c0_i32_0 = arith.constant 0 : i32
    %c0_i32_1 = arith.constant 0 : i32
    %c0_i32_2 = arith.constant 0 : i32
    return %c0_i32, %c0_i32_0, %c0_i32_1 : i32, i32, i32
  }
  func.func @transform_14(%arg0: i32) -> (i32, i32) {
    %c0_i32 = arith.constant 0 : i32
    %c0_i32_0 = arith.constant 0 : i32
    %c0_i32_1 = arith.constant 0 : i32
    return %c0_i32, %c0_i32_0 : i32, i32
  }
  func.func @transform_15(%arg0: i32) -> (i32, i32) {
    %c0_i32 = arith.constant 0 : i32
    %c0_i32_0 = arith.constant 0 : i32
    %c0_i32_1 = arith.constant 0 : i32
    return %c0_i32, %c0_i32_0 : i32, i32
  }
  func.func @transform_16(%arg0: i32) -> (i32, i32) {
    %c0_i32 = arith.constant 0 : i32
    %c0_i32_0 = arith.constant 0 : i32
    %c0_i32_1 = arith.constant 0 : i32
    return %c0_i32, %c0_i32_0 : i32, i32
  }
  func.func @transform_17(%arg0: i32) -> (i32, i32) {
    %c0_i32 = arith.constant 0 : i32
    %c0_i32_0 = arith.constant 0 : i32
    %c0_i32_1 = arith.constant 0 : i32
    return %c0_i32, %c0_i32_0 : i32, i32
  }
}

</mosaic_0001>

<bundles_post_ra>
// kernel: tile.19
= control target key start
LH: loop header
LB: loop body
LE: loop exit
PB: predicated region body
PF: predicated region fallthrough
CT: control target
= control target key end

     0   :  { %vm132_vm0 = vcmask 1047556   ;;  %s338_s15 = smov 96   ;;  %s339_s30 = smov 64   ;;  %vm134_vm1 = vcmask 261120   ;;  %vm171_vm2 = vcmask 1048320   ;;  %vm214_vm3 = vcmask 785920   ;;  %s535_s0 = inlined_call_operand.vmem [shape: f32[32,4,32], index: 0, kind: input, shape index: {}]   ;;  %s536_s1 = inlined_call_operand.vmem [shape: f32[32,128], index: 1, kind: output, shape index: {}]  }
   0x1   :  { %v316_v0 = vld [vmem:[%s535_s0 + $0x1c] sm:$0xf]  ;;  %v317_v1 = vld [vmem:[%s535_s0 + $0x18] sm:$0xf]  ;;  %v318_v2 = vld [vmem:[%s535_s0 + $0x14] sm:$0xf] }
   0x2   :  { %103 = vst [vmem:[#allocation0 + $0x38] sm:$0xf] %v316_v0  ;;  %v319_v3 = vld [vmem:[%s535_s0 + $0x10] sm:$0xf]  ;;  %v320_v4 = vld [vmem:[%s535_s0 + $0xc] sm:$0xf] }
   0x3   :  { %107 = vst [vmem:[#allocation0 + $0x30] sm:$0xf] %v317_v1  ;;  %v321_v5 = vld [vmem:[%s535_s0 + $0x8] sm:$0xf]  ;;  %v322_v6 = vld [vmem:[%s535_s0 + $0x4] sm:$0xf] }
   0x4   :  { %111 = vst [vmem:[#allocation0 + $0x28] sm:$0xf] %v318_v2  ;;  %v128_v7 = vld [vmem:[%s535_s0] sm:$0xf]  ;;  %v300_v8 = vld [vmem:[%s535_s0 + $0x5c] sm:$0xf] }
   0x5   :  { %115 = vst [vmem:[#allocation0 + $0x20] sm:$0xf] %v319_v3  ;;  %v301_v9 = vld [vmem:[%s535_s0 + $0x58] sm:$0xf]  ;;  %v302_v10 = vld [vmem:[%s535_s0 + $0x54] sm:$0xf] }
   0x6   :  { %119 = vst [vmem:[#allocation0 + $0x18] sm:$0xf] %v320_v4  ;;  %v303_v11 = vld [vmem:[%s535_s0 + $0x50] sm:$0xf]  ;;  %v304_v12 = vld [vmem:[%s535_s0 + $0x4c] sm:$0xf] }
   0x7   :  { %123 = vst [vmem:[#allocation0 + $0x10] sm:$0xf] %v321_v5  ;;  %v305_v13 = vld [vmem:[%s535_s0 + $0x48] sm:$0xf]  ;;  %v306_v14 = vld [vmem:[%s535_s0 + $0x44] sm:$0xf] }
   0x8   :  { %127 = vst [vmem:[#allocation0 + $0x8] sm:$0xf] %v322_v6  ;;  %v307_v15 = vld [vmem:[%s535_s0 + $0x40] sm:$0xf]  ;;  %v308_v17 = vld [vmem:[%s535_s0 + $0x3c] sm:$0xf] }
   0x9   :  { %129 = vst [vmem:[#allocation0] sm:$0xf] %v128_v7  ;;  %v309_v18 = vld [vmem:[%s535_s0 + $0x38] sm:$0xf]  ;;  %v310_v21 = vld [vmem:[%s535_s0 + $0x34] sm:$0xf] }
   0xa   :  { %39 = vst [vmem:[#allocation0 + $0xb8] sm:$0xf] %v300_v8  ;;  %v311_v22 = vld [vmem:[%s535_s0 + $0x30] sm:$0xf]  ;;  %v312_v23 = vld [vmem:[%s535_s0 + $0x2c] sm:$0xf] }
   0xb   :  { %43 = vst [vmem:[#allocation0 + $0xb0] sm:$0xf] %v301_v9  ;;  %v313_v24 = vld [vmem:[%s535_s0 + $0x28] sm:$0xf]  ;;  %v314_v25 = vld [vmem:[%s535_s0 + $0x24] sm:$0xf] }
   0xc   :  { %47 = vst [vmem:[#allocation0 + $0xa8] sm:$0xf] %v302_v10  ;;  %v166_v16 = vld [vmem:[#allocation0 + $0x3] ss:$8 sm:$0xf0]   ;;  %vm257_vm4 = vcmask 523520  }
   0xd   :  { %51 = vst [vmem:[#allocation0 + $0xa0] sm:$0xf] %v303_v11  ;;  %v315_v26 = vld [vmem:[%s535_s0 + $0x20] sm:$0xf]  ;;  %v292_v30 = vld [vmem:[%s535_s0 + $0x7c] sm:$0xf] }
   0xe   :  { %55 = vst [vmem:[#allocation0 + $0x98] sm:$0xf] %v304_v12  ;;  %v209_v29 = vld [vmem:[#allocation0 + $0x2] ss:$8 sm:$0xf0]  }
   0xf   :  { %59 = vst [vmem:[#allocation0 + $0x90] sm:$0xf] %v305_v13  ;;  %v293_v31 = vld [vmem:[%s535_s0 + $0x78] sm:$0xf]  ;;  %v294_v35 = vld [vmem:[%s535_s0 + $0x74] sm:$0xf] }
  0x10   :  { %v164_v19 = vld [vmem:[#allocation0 + $0x3] ss:$8 sm:$0xf]   ;;  %63 = vst [vmem:[#allocation0 + $0x88] sm:$0xf] %v306_v14 }
  0x11   :  { %v168_v20 = vsel %vm132_vm0, %v166_v16, %v164_v19  ;;  %67 = vst [vmem:[#allocation0 + $0x80] sm:$0xf] %v307_v15  ;;  %v207_v27 = vld [vmem:[#allocation0 + $0x2] ss:$8 sm:$0xf]  }
  0x12   :  { %169 = vrot.lane.b32.xlu0 %v168_v20, %s338_s15  ;;  %71 = vst [vmem:[#allocation0 + $0x78] sm:$0xf] %v308_v17  ;;  %v211_v32 = vsel %vm132_vm0, %v209_v29, %v207_v27  ;;  %v295_v36 = vld [vmem:[%s535_s0 + $0x70] sm:$0xf]  ;;  %v296_v37 = vld [vmem:[%s535_s0 + $0x6c] sm:$0xf] }
  0x13   :  { %75 = vst [vmem:[#allocation0 + $0x70] sm:$0xf] %v309_v18  ;;  %212 = vrot.lane.b32.xlu2 %v211_v32, %s339_s30  ;;  %v297_v38 = vld [vmem:[%s535_s0 + $0x68] sm:$0xf]  ;;  %v298_v39 = vld [vmem:[%s535_s0 + $0x64] sm:$0xf] }
  0x14   :  { %79 = vst [vmem:[#allocation0 + $0x68] sm:$0xf] %v310_v21  ;;  %v187_v28 = vld [vmem:[#allocation0 + $0x83] ss:$8 sm:$0xf0]  }
  0x15   :  { %83 = vst [vmem:[#allocation0 + $0x60] sm:$0xf] %v311_v22  ;;  %v299_v40 = vld [vmem:[%s535_s0 + $0x60] sm:$0xf]  ;;  %s340_s0 = smov 32  }
  0x16   :  { %87 = vst [vmem:[#allocation0 + $0x58] sm:$0xf] %v312_v23  ;;  %v230_v48 = vld [vmem:[#allocation0 + $0x82] ss:$8 sm:$0xf0]  }
  0x17   :  { %91 = vst [vmem:[#allocation0 + $0x50] sm:$0xf] %v313_v24  ;;  %v250_v49 = vld [vmem:[#allocation0 + $0x1] ss:$8 sm:$0xf]  }
  0x18   :  { %v185_v33 = vld [vmem:[#allocation0 + $0x83] ss:$8 sm:$0xf]   ;;  %95 = vst [vmem:[#allocation0 + $0x48] sm:$0xf] %v314_v25 }
  0x19   :  { %v189_v34 = vsel %vm132_vm0, %v187_v28, %v185_v33  ;;  %99 = vst [vmem:[#allocation0 + $0x40] sm:$0xf] %v315_v26  ;;  %v228_v47 = vld [vmem:[#allocation0 + $0x82] ss:$8 sm:$0xf]  }
  0x1a   :  { %190 = vrot.lane.b32.xlu1 %v189_v34, %s338_s15  ;;  %7 = vst [vmem:[#allocation0 + $0xf8] sm:$0xf] %v292_v30  ;;  %v252_v51 = vld [vmem:[#allocation0 + $0x1] ss:$8 sm:$0xf0]   ;;  %v232_v52 = vsel %vm132_vm0, %v230_v48, %v228_v47 }
  0x1b   :  { %11 = vst [vmem:[#allocation0 + $0xf0] sm:$0xf] %v293_v31  ;;  %v254_v55 = vsel %vm132_vm0, %v252_v51, %v250_v49  ;;  %v271_v1 = vld [vmem:[#allocation0 + $0x81] ss:$8 sm:$0xf]  }
  0x1c   :  { %15 = vst [vmem:[#allocation0 + $0xe8] sm:$0xf] %v294_v35  ;;  %v176_v41 = vld [vmem:[#allocation0 + $0x43] ss:$8 sm:$0xf0]  }
  0x1d   :  { %19 = vst [vmem:[#allocation0 + $0xe0] sm:$0xf] %v295_v36  ;;  %v219_v42 = vld [vmem:[#allocation0 + $0x42] ss:$8 sm:$0xf0]  }
  0x1e   :  { %23 = vst [vmem:[#allocation0 + $0xd8] sm:$0xf] %v296_v37  ;;  %v262_v57 = vld [vmem:[#allocation0 + $0x41] ss:$8 sm:$0xf0]  }
  0x1f   :  { %27 = vst [vmem:[#allocation0 + $0xd0] sm:$0xf] %v297_v38  ;;  %v273_v2 = vld [vmem:[#allocation0 + $0x81] ss:$8 sm:$0xf0]  }
  0x20   :  { %v174_v43 = vld [vmem:[#allocation0 + $0x43] ss:$8 sm:$0xf]   ;;  %31 = vst [vmem:[#allocation0 + $0xc8] sm:$0xf] %v298_v39  ;;  %v275_v3 = vsel %vm132_vm0, %v273_v2, %v271_v1 }
  0x21   :  { %v178_v44 = vsel %vm132_vm0, %v176_v41, %v174_v43  ;;  %35 = vst [vmem:[#allocation0 + $0xc0] sm:$0xf] %v299_v40  ;;  %v217_v45 = vld [vmem:[#allocation0 + $0x42] ss:$8 sm:$0xf]  }
  0x22   :  { %179 = vrot.lane.b32.xlu0 %v178_v44, %s338_s15  ;;  %v221_v46 = vsel %vm132_vm0, %v219_v42, %v217_v45  ;;  %v260_v56 = vld [vmem:[#allocation0 + $0x41] ss:$8 sm:$0xf]   ;;  %v130_v4 = vld [vmem:[#allocation0] ss:$8 sm:$0xf]  }
  0x23   :  { %222 = vrot.lane.b32.xlu2 %v221_v46, %s339_s30  ;;  %v264_v63 = vsel %vm132_vm0, %v262_v57, %v260_v56  ;;  %v131_v5 = vld [vmem:[#allocation0] ss:$8 sm:$0xf0]  }
  0x24   :  { %v198_v50 = vld [vmem:[#allocation0 + $0xc3] ss:$8 sm:$0xf0]   ;;  %v241_v59 = vld [vmem:[#allocation0 + $0xc2] ss:$8 sm:$0xf0]   ;;  %v133_v6 = vsel %vm132_vm0, %v131_v5, %v130_v4 }
  0x25   :  { %v284_v61 = vld [vmem:[#allocation0 + $0xc1] ss:$8 sm:$0xf0]   ;;  %135 = vst.msk [vmem:[%s536_s1] sm:$0xff] %vm134_vm1, %v133_v6  }
  0x26   :  { %v146_v7 = vld [vmem:[#allocation0 + $0x80] ss:$8 sm:$0xf]  }
  0x27   :  { %v148_v8 = vld [vmem:[#allocation0 + $0x80] ss:$8 sm:$0xf0]  }
  0x28   :  { %v196_v53 = vld [vmem:[#allocation0 + $0xc3] ss:$8 sm:$0xf]   ;;  %v239_v58 = vld [vmem:[#allocation0 + $0xc2] ss:$8 sm:$0xf]   ;;  %v150_v9 = vsel %vm132_vm0, %v148_v8, %v146_v7 }
  0x29   :  { %v200_v54 = vsel %vm132_vm0, %v198_v50, %v196_v53  ;;  %v282_v60 = vld [vmem:[#allocation0 + $0xc1] ss:$8 sm:$0xf]   ;;  %v243_v62 = vsel %vm132_vm0, %v241_v59, %v239_v58  ;;  %324 = vst.msk [vmem:[%s536_s1 + $0x10] sm:$0xff] %vm134_vm1, %v150_v9  }
  0x2a   :  { %201 = vrot.lane.b32.xlu1 %v200_v54, %s338_s15  ;;  %233 = vrot.lane.b32.xlu0 %v232_v52, %s339_s30  ;;  %v286_v0 = vsel %vm132_vm0, %v284_v61, %v282_v60  ;;  %v137_v11 = vld [vmem:[#allocation0 + $0x40] ss:$8 sm:$0xf]  }
  0x2b   :  { %255 = vrot.lane.b32.xlu2 %v254_v55, %s340_s0  ;;  %v139_v12 = vld [vmem:[#allocation0 + $0x40] ss:$8 sm:$0xf0]  }
  0x2c   :  { %v141_v13 = vsel %vm132_vm0, %v139_v12, %v137_v11  ;;  %v155_v14 = vld [vmem:[#allocation0 + $0xc0] ss:$8 sm:$0xf]  }
  0x2d   :  { %323 = vst.msk [vmem:[%s536_s1 + $0x8] sm:$0xff] %vm134_vm1, %v141_v13   ;;  %v157_v15 = vld [vmem:[#allocation0 + $0xc0] ss:$8 sm:$0xf0]  }
  0x2e   :  { %v159_v16 = vsel %vm132_vm0, %v157_v15, %v155_v14 }
  0x2f   :  { %325 = vst.msk [vmem:[%s536_s1 + $0x18] sm:$0xff] %vm134_vm1, %v159_v16  }
  0x32   :  { %244 = vrot.lane.b32.xlu1 %v243_v62, %s339_s30  ;;  %265 = vrot.lane.b32.xlu0 %v264_v63, %s340_s0 }
  0x33   :  { %287 = vrot.lane.b32.xlu2 %v286_v0, %s340_s0 }
  0x3a   :  { %276 = vrot.lane.b32.xlu1 %v275_v3, %s340_s0 }
  0x6d   :  { %v213_v10 = vpop.permute.xlu2 %212  }
  0x7d   :  { %v223_v17 = vpop.permute.xlu2 %222  }
  0x84   :  { %v170_v18 = vpop.permute.xlu0 %169  }
  0x85   :  { %172 = vst.msk [vmem:[%s536_s1] sm:$0xff] %vm171_vm2, %v170_v18   ;;  %v256_v19 = vpop.permute.xlu2 %255  }
  0x86   :  { %215 = vst.msk [vmem:[%s536_s1] sm:$0xff] %vm214_vm3, %v213_v10  }
  0x87   :  { %258 = vst.msk [vmem:[%s536_s1] sm:$0xff] %vm257_vm4, %v256_v19  }
  0x8c   :  { %v191_v20 = vpop.permute.xlu1 %190  }
  0x8d   :  { %327 = vst.msk [vmem:[%s536_s1 + $0x10] sm:$0xff] %vm171_vm2, %v191_v20   ;;  %v288_v21 = vpop.permute.xlu2 %287  }
  0x94   :  { %v180_v22 = vpop.permute.xlu0 %179  }
  0x95   :  { %326 = vst.msk [vmem:[%s536_s1 + $0x8] sm:$0xff] %vm171_vm2, %v180_v22  }
  0x96   :  { %329 = vst.msk [vmem:[%s536_s1 + $0x8] sm:$0xff] %vm214_vm3, %v223_v17  }
  0x9c   :  { %v202_v23 = vpop.permute.xlu1 %201   ;;  %v234_v24 = vpop.permute.xlu0 %233  }
  0x9d   :  { %328 = vst.msk [vmem:[%s536_s1 + $0x18] sm:$0xff] %vm171_vm2, %v202_v23  }
  0x9e   :  { %330 = vst.msk [vmem:[%s536_s1 + $0x10] sm:$0xff] %vm214_vm3, %v234_v24  }
  0xa4   :  { %v245_v25 = vpop.permute.xlu1 %244   ;;  %v266_v26 = vpop.permute.xlu0 %265  }
  0xa5   :  { %331 = vst.msk [vmem:[%s536_s1 + $0x18] sm:$0xff] %vm214_vm3, %v245_v25  }
  0xa6   :  { %332 = vst.msk [vmem:[%s536_s1 + $0x8] sm:$0xff] %vm257_vm4, %v266_v26  }
  0xa7   :  { %334 = vst.msk [vmem:[%s536_s1 + $0x18] sm:$0xff] %vm257_vm4, %v288_v21  }
  0xac   :  { %v277_v27 = vpop.permute.xlu1 %276  }
  0xad   :  { %333 = vst.msk [vmem:[%s536_s1 + $0x10] sm:$0xff] %vm257_vm4, %v277_v27  }

// kernel: timer_forward.1
= control target key start
LH: loop header
LB: loop body
LE: loop exit
PB: predicated region body
PF: predicated region fallthrough
CT: control target
= control target key end

     0   :  { %vm66_vm0 = vcmask 130048   ;;  %s2241_s21 = smov 32   ;;  %vm136_vm1 = vcmask 261120   ;;  %s3365_s4 = inlined_call_operand.vmem [shape: f32[16,32], index: 4, kind: input, shape index: {}]   ;;  %s3366_s0 = inlined_call_operand.vmem [shape: f32[32,16], index: 0, kind: input, shape index: {}]   ;;  %s3367_s3 = inlined_call_operand.vmem [shape: f32[128,32], index: 3, kind: input, shape index: {}]   ;;  %s3368_s5 = inlined_call_operand.vmem [shape: f32[2,32,96], index: 5, kind: input, shape index: {}]   ;;  %s3369_s6 = inlined_call_operand.vmem [shape: f32[2,1,96], index: 6, kind: input, shape index: {}]   ;;  %s3370_s1 = inlined_call_operand.vmem [shape: f32[32,32], index: 1, kind: input, shape index: {}]   ;;  %s3371_s2 = inlined_call_operand.vmem [shape: f32[32,128], index: 2, kind: input, shape index: {}]   ;;  %s3372_s8 = inlined_call_operand.vmem [shape: f32[2,1,32], index: 8, kind: input, shape index: {}]   ;;  %s3373_s7 = inlined_call_operand.vmem [shape: f32[2,32,32], index: 7, kind: input, shape index: {}]   ;;  %s3374_s10 = inlined_call_operand.vmem [shape: f32[2,1,64], index: 10, kind: input, shape index: {}]   ;;  %s3375_s9 = inlined_call_operand.vmem [shape: f32[2,32,64], index: 9, kind: input, shape index: {}]   ;;  %s3376_s13 = inlined_call_operand.vmem [shape: f32[2,4,32], index: 13, kind: input, shape index: {}]   ;;  %s3377_s11 = inlined_call_operand.vmem [shape: f32[2,64,32], index: 11, kind: input, shape index: {}]   ;;  %s3378_s12 = inlined_call_operand.vmem [shape: f32[2,1,32], index: 12, kind: input, shape index: {}]   ;;  %s3379_s16 = inlined_call_operand.vmem [shape: f32[1,16], index: 16, kind: input, shape index: {}]   ;;  %s3380_s15 = inlined_call_operand.vmem [shape: f32[32,16], index: 15, kind: input, shape index: {}]   ;;  %s3381_s14 = inlined_call_operand.vmem [shape: f32[2,32], index: 14, kind: input, shape index: {}]   ;;  %s3382_s17 = inlined_call_operand.vmem [shape: f32[32,16], index: 17, kind: output, shape index: {}]  }
   0x1   :  { %3385 = sst [smem:[#allocation2_spill]] %s3365_s4  ;;  %v2347_v3 = vld [vmem:[%s3367_s3 + $0x78] sm:$0xff]  ;;  %v130_v5 = vld [vmem:[%s3368_s5 + $0x10] sm:$0xff]  ;;  %v2360_v6 = vld [vmem:[%s3367_s3 + $0x68] sm:$0xff]  ;;  %s2242_s4 = smov 96  }
   0x2   :  { %3386 = sst [smem:[#allocation3_spill]] %s3366_s0  ;;  %v131_v4 = vld [vmem:[%s3368_s5 + $0x18] sm:$0xff]  ;;  %224 = vrot.lane.b32.xlu0 %v2347_v3, %s2241_s21  ;;  %v129_v7 = vld [vmem:[%s3368_s5 + $0x8] sm:$0xff]  ;;  %220 = vrot.lane.b32.xlu1 %v2360_v6, %s2241_s21 }
   0x3   :  { %s3387_s26 = sld [smem:[#allocation2_spill]]  ;;  %161 = vmatpush.msra.mxu1 %v131_v4  ;;  %v2372_v8 = vld [vmem:[%s3367_s3 + $0x70] sm:$0xff]  ;;  %v2385_v10 = vld [vmem:[%s3367_s3 + $0x48] sm:$0xff]  ;;  %v128_v13 = vld [vmem:[%s3368_s5] sm:$0xff] }
   0x4   :  { %s3388_s30 = sld [smem:[#allocation3_spill]]  ;;  %v2403_v14 = vld [vmem:[%s3367_s3 + $0x60] sm:$0xff]  ;;  %v2408_v15 = vld [vmem:[%s3367_s3 + $0x30] sm:$0xff]  ;;  %v2432_v18 = vld [vmem:[%s3367_s3 + $0x28] sm:$0xff] }
   0x5   :  { %162 = vmatpush.msra.mxu1 %v130_v5  ;;  %v2418_v16 = vld [vmem:[%s3367_s3 + $0x40] sm:$0xff]  ;;  %v2439_v19 = vld [vmem:[%s3367_s3 + $0x58] sm:$0xff]  ;;  %v2447_v20 = vld [vmem:[%s3367_s3 + $0x50] sm:$0xff] }
   0x6   :  { %v2423_v17 = vld [vmem:[%s3367_s3 + $0x20] sm:$0xff]  ;;  %216 = vrot.lane.b32.xlu2 %v2439_v19, %s2241_s21  ;;  %v2462_v24 = vld [vmem:[%s3367_s3 + $0x38] sm:$0xff]  ;;  %v63_v25 = vld [vmem:[%s3370_s1 + $0x8] sm:$0xff] }
   0x7   :  { %163 = vmatpush.msra.mxu1 %v129_v7  ;;  %v62_v21 = vld [vmem:[%s3370_s1] sm:$0xff]  ;;  %v64_v28 = vld [vmem:[%s3370_s1 + $0x10] sm:$0xff]  ;;  %v65_v31 = vld [vmem:[%s3370_s1 + $0x18] sm:$0xff] }
   0x8   :  { %v2496_v34 = vld [vmem:[%s3367_s3 + $0x18] sm:$0xff]  ;;  %v2502_v36 = vld [vmem:[%s3367_s3 + $0x10] sm:$0xff]  ;;  %v2510_v38 = vld [vmem:[%s3367_s3 + $0x8] sm:$0xff] }
   0x9   :  { %v61_v0 = vld [vmem:[%s3387_s26 + $0x8] sm:$0xff]  ;;  %v60_v1 = vld [vmem:[%s3387_s26] sm:$0xff]  ;;  %164 = vmatpush.msra.mxu1 %v128_v13 }
   0xa   :  { %93 = vmatpush.msra.mxu0 %v61_v0  ;;  %v56_v2 = vld [vmem:[%s3388_s30] sm:$0xff]  ;;  %v57_v9 = vld [vmem:[%s3388_s30 + $0x8] sm:$0xff]  ;;  %222 = vrot.lane.b32.xlu0 %v2372_v8, %s2241_s21  ;;  %v58_v11 = vld [vmem:[%s3388_s30 + $0x10] sm:$0xff] }
   0xb   :  { %v59_v12 = vld [vmem:[%s3388_s30 + $0x18] sm:$0xff]  ;;  %218 = vrot.lane.b32.xlu1 %v2403_v14, %s2241_s21  ;;  %v2139_v39 = vld [vmem:[%s3369_s6] ss:$0 sm:$0xff] }
   0xc   :  { %94 = vmatpush.msra.mxu0 %v60_v1  ;;  %v2539_v50 = vld [vmem:[%s3367_s3] sm:$0xff] }
   0xd   :  { %1950 = vmatmul.msk.f32.vlgmr.msra.gmra.mxu0 %vm66_vm0, %v56_v2 }
   0xe   :  { %560 = vmatpush.msrb.mxu0 %v2347_v3  ;;  %214 = vrot.lane.b32.xlu2 %v2447_v20, %s2241_s21 }
  0x10   :  { %561 = vmatpush.msrb.mxu0 %v2372_v8 }
  0x12   :  { %562 = vmatpush.msrb.mxu0 %v2360_v6  ;;  %212 = vrot.lane.b32.xlu0 %v2385_v10, %s2241_s21 }
  0x13   :  { %210 = vrot.lane.b32.xlu1 %v2418_v16, %s2241_s21 }
  0x14   :  { %563 = vmatpush.msrb.mxu0 %v2403_v14 }
  0x15   :  { %1951 = vmatmul.msk.f32.gmra.mxu0 %vm66_vm0, %v57_v9 }
  0x16   :  { %564 = vmatpush.msrb.mxu0 %v2439_v19  ;;  %208 = vrot.lane.b32.xlu2 %v2462_v24, %s2241_s21 }
  0x18   :  { %565 = vmatpush.msrb.mxu0 %v2447_v20 }
  0x1a   :  { %206 = vrot.lane.b32.xlu0 %v2408_v15, %s2241_s21  ;;  %566 = vmatpush.msrb.mxu0 %v2385_v10 }
  0x1b   :  { %204 = vrot.lane.b32.xlu1 %v2432_v18, %s2241_s21 }
  0x1c   :  { %567 = vmatpush.msrb.mxu0 %v2418_v16 }
  0x1d   :  { %1952 = vmatmul.msk.f32.gmra.mxu0 %vm66_vm0, %v58_v11 }
  0x1e   :  { %568 = vmatpush.msrb.mxu0 %v2462_v24 }
  0x20   :  { %569 = vmatpush.msrb.mxu0 %v2408_v15 }
  0x22   :  { %202 = vrot.lane.b32.xlu0 %v2423_v17, %s2241_s21  ;;  %570 = vmatpush.msrb.mxu0 %v2432_v18 }
  0x24   :  { %571 = vmatpush.msrb.mxu0 %v2423_v17 }
  0x25   :  { %1953 = vmatmul.msk.f32.gmra.mxu0 %vm66_vm0, %v59_v12 }
  0x26   :  { %572 = vmatpush.msrb.mxu0 %v2496_v34 }
  0x28   :  { %573 = vmatpush.msrb.mxu0 %v2502_v36 }
  0x2a   :  { %574 = vmatpush.msrb.mxu0 %v2510_v38 }
  0x2c   :  { %575 = vmatpush.msrb.mxu0 %v2539_v50 }
  0x60   :  { %v2524_v45 = vpop.permute.xlu2 %216 }
  0x68   :  { %v2542_v51 = vpop.permute.xlu2 %214 }
  0x70   :  { %v2556_v57 = vpop.permute.xlu2 %208 }
  0x74   :  { %v2504_v37 = vpop.permute.xlu0 %224  ;;  %v2518_v42 = vpop.permute.xlu1 %220 }
  0x7c   :  { %v2520_v43 = vpop.permute.xlu0 %222 }
  0x7d   :  { %v2570_v62 = vpop.permute.xlu1 %218 }
  0x84   :  { %v2531_v49 = vpop.permute.xlu0 %212 }
  0x85   :  { %v2586_v4 = vpop.permute.xlu1 %210 }
  0x8a   :  { %v96_v22 = vpop.f32.mrf.mxu0 }
  0x8b   :  { %v2454_v23 = vadd.f32 %v96_v22, %v62_v21 }
  0x8c   :  { %v2554_v56 = vpop.permute.xlu0 %206 }
  0x8d   :  { %1954 = vmatmul.msk.f32.vlgmr.msra.gmra.mxu1 %vm136_vm1, %v2454_v23  ;;  %v2591_v7 = vpop.permute.xlu1 %204 }
  0x92   :  { %v99_v26 = vpop.f32.mrf.mxu0 }
  0x93   :  { %v2472_v27 = vadd.f32 %v99_v26, %v63_v25 }
  0x94   :  { %v2568_v61 = vpop.permute.xlu0 %202 }
  0x95   :  { %1955 = vmatmul.msk.f32.gmra.mxu1 %vm136_vm1, %v2472_v27 }
  0x9a   :  { %v102_v29 = vpop.f32.mrf.mxu0 }
  0x9b   :  { %v2482_v30 = vadd.f32 %v102_v29, %v64_v28 }
  0x9d   :  { %1956 = vmatmul.msk.f32.gmra.mxu1 %vm136_vm1, %v2482_v30 }
  0xa2   :  { %v105_v32 = vpop.f32.mrf.mxu0 }
  0xa3   :  { %v2489_v33 = vadd.f32 %v105_v32, %v65_v31 }
  0xa5   :  { %1957 = vmatmul.msk.f32.gmra.mxu1 %vm136_vm1, %v2489_v33 }
 0x10a   :  { %v166_v35 = vpop.f32.mrf.mxu1 }
 0x10b   :  { %v2566_v60 = vadd.f32 %v2139_v39, %v166_v35 }
 0x10d   :  { %v254_v0 = vmul.f32 %v2570_v62, %v2566_v60  ;;  %v246_v1 = vmul.f32 %v2568_v61, %v2566_v60  ;;  %v250_v5 = vmul.f32 %v2586_v4, %v2566_v60 }
 0x112   :  { %v169_v40 = vpop.f32.mrf.mxu1 }
 0x113   :  { %v2516_v41 = vadd.f32 %v2139_v39, %v169_v40 }
 0x115   :  { %v255_v44 = vmul.f32 %v2518_v42, %v2516_v41  ;;  %v251_v63 = vmul.f32 %v2531_v49, %v2516_v41  ;;  %v247_v9 = vmul.f32 %v2591_v7, %v2516_v41 }
 0x117   :  { %368 = vrot.lane.b32.xlu0 %v255_v44, %s2242_s4 }
 0x11a   :  { %v172_v46 = vpop.f32.mrf.mxu1 }
 0x11b   :  { %v2527_v47 = vadd.f32 %v2139_v39, %v172_v46 }
 0x11d   :  { %v256_v48 = vmul.f32 %v2520_v43, %v2527_v47  ;;  %v252_v55 = vmul.f32 %v2542_v51, %v2527_v47  ;;  %v248_v2 = vmul.f32 %v2554_v56, %v2527_v47 }
 0x11f   :  { %370 = vrot.lane.b32.xlu1 %v256_v48, %s2242_s4  ;;  %196 = vrot.lane.b32.xlu0 %v2510_v38, %s2241_s21 }
 0x122   :  { %v175_v52 = vpop.f32.mrf.mxu1 }
 0x123   :  { %v2544_v53 = vadd.f32 %v2139_v39, %v175_v52 }
 0x125   :  { %v257_v54 = vmul.f32 %v2504_v37, %v2544_v53  ;;  %v253_v58 = vmul.f32 %v2524_v45, %v2544_v53  ;;  %v249_v59 = vmul.f32 %v2556_v57, %v2544_v53 }
 0x127   :  { %372 = vrot.lane.b32.xlu2 %v257_v54, %s2242_s4  ;;  %198 = vrot.lane.b32.xlu1 %v2502_v36, %s2241_s21 }
 0x128   :  { %362 = vrot.lane.b32.xlu0 %v252_v55, %s2242_s4 }
 0x12f   :  { %200 = vrot.lane.b32.xlu2 %v2496_v34, %s2241_s21  ;;  %364 = vrot.lane.b32.xlu1 %v253_v58, %s2242_s4  ;;  %v323_v58 = vmul.f32 0.35355338, %v2516_v41 }
 0x130   :  { %356 = vrot.lane.b32.xlu0 %v249_v59, %s2242_s4 }
 0x137   :  { %360 = vrot.lane.b32.xlu1 %v251_v63, %s2242_s4  ;;  %366 = vrot.lane.b32.xlu2 %v254_v0, %s2242_s4 }
 0x138   :  { %350 = vrot.lane.b32.xlu0 %v246_v1, %s2242_s4 }
 0x13f   :  { %354 = vrot.lane.b32.xlu1 %v248_v2, %s2242_s4  ;;  %194 = vrot.lane.b32.xlu2 %v2539_v50, %s2241_s21  ;;  %s2243_s21 = smov 64  }
 0x147   :  { %358 = vrot.lane.b32.xlu2 %v250_v5, %s2242_s4 }
 0x14f   :  { %352 = vrot.lane.b32.xlu2 %v247_v9, %s2242_s4 }
 0x181   :  { %v373_v11 = vpop.permute.xlu2 %372 }
 0x182   :  { %1958 = vmatpush.xpose.msk.msra.mxu2 %vm136_vm1, %v373_v11 }
 0x189   :  { %v2597_v12 = vpop.permute.xlu2 %200  ;;  %v369_v13 = vpop.permute.xlu0 %368 }
 0x18a   :  { %v245_v21 = vmul.f32 %v2597_v12, %v2544_v53 }
 0x18c   :  { %348 = vrot.lane.b32.xlu1 %v245_v21, %s2242_s4  ;;  %v324_v21 = vmul.f32 0.35355338, %v2527_v47 }
 0x191   :  { %v371_v22 = vpop.permute.xlu1 %370  ;;  %v2602_v25 = vpop.permute.xlu0 %196 }
 0x192   :  { %v243_v26 = vmul.f32 %v2602_v25, %v2516_v41  ;;  %v367_v28 = vpop.permute.xlu2 %366  ;;  %1959 = vmatpush.xpose.msk.msra.mxu2 %vm136_vm1, %v371_v22 }
 0x194   :  { %344 = vrot.lane.b32.xlu0 %v243_v26, %s2242_s4 }
 0x196   :  { %1960 = vmatpush.xpose.msk.msra.mxu2 %vm136_vm1, %v369_v13 }
 0x199   :  { %v2609_v29 = vpop.permute.xlu1 %198 }
 0x19a   :  { %v244_v31 = vmul.f32 %v2609_v29, %v2527_v47  ;;  %v2613_v32 = vpop.permute.xlu2 %194  ;;  %1961 = vmatpush.xpose.msk.msra.mxu2 %vm136_vm1, %v367_v28  ;;  %v363_v40 = vpop.permute.xlu0 %362  ;;  %v325_v28 = vmul.f32 0.35355338, %v2544_v53 }
 0x19b   :  { %v242_v35 = vmul.f32 %v2613_v32, %v2566_v60 }
 0x19c   :  { %346 = vrot.lane.b32.xlu2 %v244_v31, %s2242_s4  ;;  %286 = vrot.lane.b32.xlu0 %v2372_v8, %s2243_s21 }
 0x19d   :  { %342 = vrot.lane.b32.xlu1 %v242_v35, %s2242_s4 }
 0x1a1   :  { %v365_v39 = vpop.permute.xlu1 %364 }
 0x1a2   :  { %1962 = vmatpush.xpose.msk.msra.mxu2 %vm136_vm1, %v365_v39  ;;  %v359_v8 = vpop.permute.xlu2 %358 }
 0x1a4   :  { %288 = vrot.lane.b32.xlu2 %v2347_v3, %s2243_s21  ;;  %280 = vrot.lane.b32.xlu0 %v2439_v19, %s2243_s21  ;;  %v357_v3 = vpop.permute.xlu0 %356 }
 0x1a5   :  { %284 = vrot.lane.b32.xlu1 %v2360_v6, %s2243_s21 }
 0x1a6   :  { %1963 = vmatpush.xpose.msk.msra.mxu2 %vm136_vm1, %v363_v40 }
 0x1a9   :  { %v361_v44 = vpop.permute.xlu1 %360 }
 0x1aa   :  { %1964 = vmatpush.xpose.msk.msra.mxu2 %vm136_vm1, %v361_v44 }
 0x1ac   :  { %282 = vrot.lane.b32.xlu2 %v2403_v14, %s2243_s21  ;;  %274 = vrot.lane.b32.xlu0 %v2418_v16, %s2243_s21  ;;  %v353_v14 = vpop.permute.xlu2 %352  ;;  %v351_v16 = vpop.permute.xlu0 %350 }
 0x1ad   :  { %278 = vrot.lane.b32.xlu1 %v2447_v20, %s2243_s21 }
 0x1ae   :  { %1965 = vmatpush.xpose.msk.msra.mxu2 %vm136_vm1, %v359_v8 }
 0x1b1   :  { %v355_v6 = vpop.permute.xlu1 %354 }
 0x1b2   :  { %1966 = vmatpush.xpose.msk.msra.mxu2 %vm136_vm1, %v357_v3 }
 0x1b4   :  { %276 = vrot.lane.b32.xlu2 %v2385_v10, %s2243_s21  ;;  %268 = vrot.lane.b32.xlu0 %v2432_v18, %s2243_s21 }
 0x1b5   :  { %272 = vrot.lane.b32.xlu1 %v2462_v24, %s2243_s21 }
 0x1b6   :  { %1967 = vmatpush.xpose.msk.msra.mxu2 %vm136_vm1, %v355_v6 }
 0x1ba   :  { %1968 = vmatpush.xpose.msk.msra.mxu2 %vm136_vm1, %v353_v14 }
 0x1bc   :  { %270 = vrot.lane.b32.xlu2 %v2408_v15, %s2243_s21  ;;  %262 = vrot.lane.b32.xlu0 %v2502_v36, %s2243_s21 }
 0x1bd   :  { %266 = vrot.lane.b32.xlu1 %v2423_v17, %s2243_s21 }
 0x1be   :  { %1969 = vmatpush.xpose.msk.msra.mxu2 %vm136_vm1, %v351_v16 }
 0x1c4   :  { %264 = vrot.lane.b32.xlu2 %v2496_v34, %s2243_s21 }
 0x1c5   :  { %260 = vrot.lane.b32.xlu1 %v2510_v38, %s2243_s21  ;;  %v322_v38 = vmul.f32 0.35355338, %v2566_v60 }
 0x1cc   :  { %258 = vrot.lane.b32.xlu2 %v2539_v50, %s2243_s21 }
 0x1f6   :  { %v347_v10 = vpop.permute.xlu2 %346 }
 0x1fe   :  { %v349_v15 = vpop.permute.xlu1 %348  ;;  %v2663_v17 = vpop.permute.xlu2 %288 }
 0x1ff   :  { %1970 = vmatpush.xpose.msk.msra.mxu2 %vm136_vm1, %v349_v15  ;;  %v321_v20 = vmul.f32 %v2663_v17, %v2544_v53 }
 0x203   :  { %1971 = vmatpush.xpose.msk.msra.mxu2 %vm136_vm1, %v347_v10 }
 0x206   :  { %v345_v18 = vpop.permute.xlu0 %344  ;;  %v2673_v46 = vpop.permute.xlu2 %282 }
 0x207   :  { %1972 = vmatpush.xpose.msk.msra.mxu2 %vm136_vm1, %v345_v18  ;;  %v318_v54 = vmul.f32 %v2673_v46, %v2566_v60 }
 0x20e   :  { %v2665_v19 = vpop.permute.xlu0 %286  ;;  %v2687_v63 = vpop.permute.xlu2 %276 }
 0x20f   :  { %v343_v24 = vpop.permute.xlu1 %342  ;;  %v320_v34 = vmul.f32 %v2665_v19, %v2527_v47  ;;  %v315_v1 = vmul.f32 %v2687_v63, %v2516_v41 }
 0x210   :  { %1973 = vmatpush.xpose.msk.msra.mxu2 %vm136_vm1, %v343_v24 }
 0x211   :  { %v2074_v36 = vpack.i.bf16 %v320_v34, %v321_v20 }
 0x213   :  { %1974 = vmatmul.msk.f32.vlgmr.msra.gmra.mxu2 %vm136_vm1, %v322_v38  ;;  %2075 = vrot.lane.b32.xlu0 %v2074_v36, %s2243_s21  ;;  %v108_v38 = vld [vmem:[%s3371_s2] sm:$0xff] }
 0x216   :  { %v2677_v48 = vpop.permute.xlu0 %280  ;;  %v2719_v8 = vpop.permute.xlu2 %270 }
 0x217   :  { %v2679_v52 = vpop.permute.xlu1 %284  ;;  %v317_v9 = vmul.f32 %v2677_v48, %v2544_v53  ;;  %v312_v6 = vmul.f32 %v2719_v8, %v2527_v47 }
 0x218   :  { %v319_v55 = vmul.f32 %v2679_v52, %v2516_v41 }
 0x21a   :  { %v2059_v59 = vpack.i.bf16 %v318_v54, %v319_v55 }
 0x21b   :  { %1975 = vmatmul.msk.f32.gmra.mxu2 %vm136_vm1, %v323_v58 }
 0x21c   :  { %2060 = vrot.lane.b32.xlu1 %v2059_v59, %s2243_s21 }
 0x21e   :  { %v2690_v0 = vpop.permute.xlu0 %274 }
 0x21f   :  { %v2694_v2 = vpop.permute.xlu1 %278  ;;  %v314_v5 = vmul.f32 %v2690_v0, %v2566_v60 }
 0x220   :  { %v316_v11 = vmul.f32 %v2694_v2, %v2527_v47 }
 0x221   :  { %v2064_v13 = vpack.i.bf16 %v314_v5, %v315_v1 }
 0x222   :  { %v2079_v22 = vpack.i.bf16 %v316_v11, %v317_v9  ;;  %v109_v11 = vld [vmem:[%s3371_s2 + $0x8] sm:$0xff] }
 0x223   :  { %1976 = vmatmul.msk.f32.gmra.mxu2 %vm136_vm1, %v324_v21 }
 0x224   :  { %2080 = vrot.lane.b32.xlu0 %v2079_v22, %s2243_s21  ;;  %2065 = vrot.lane.b32.xlu1 %v2064_v13, %s2243_s21 }
 0x226   :  { %v2710_v31 = vpop.permute.xlu0 %268 }
 0x227   :  { %v2706_v26 = vpop.permute.xlu1 %272  ;;  %v311_v39 = vmul.f32 %v2710_v31, %v2516_v41 }
 0x228   :  { %v313_v3 = vmul.f32 %v2706_v26, %v2544_v53 }
 0x22a   :  { %v2084_v14 = vpack.i.bf16 %v312_v6, %v313_v3 }
 0x22b   :  { %1977 = vmatmul.msk.f32.gmra.mxu2 %vm136_vm1, %v325_v28  ;;  %v2736_v28 = vpop.permute.xlu2 %264 }
 0x22e   :  { %v2726_v16 = vpop.permute.xlu0 %262 }
 0x22f   :  { %v2712_v35 = vpop.permute.xlu1 %266  ;;  %v308_v6 = vmul.f32 %v2726_v16, %v2527_v47 }
 0x230   :  { %v310_v40 = vmul.f32 %v2712_v35, %v2566_v60 }
 0x232   :  { %v2069_v44 = vpack.i.bf16 %v310_v40, %v311_v39  ;;  %v110_v39 = vld [vmem:[%s3371_s2 + $0x10] sm:$0xff] }
 0x234   :  { %2070 = vrot.lane.b32.xlu1 %v2069_v44, %s2243_s21 }
 0x237   :  { %v2728_v15 = vpop.permute.xlu1 %260 }
 0x23c   :  { %2085 = vrot.lane.b32.xlu1 %v2084_v14, %s2243_s21  ;;  %v309_v14 = vmul.f32 %v2736_v28, %v2544_v53 }
 0x285   :  { %v2076_v10 = vpop.permute.xlu0 %2075 }
 0x286   :  { %v2077_v18 = vunpack.i.l.bf16 %v2076_v10  ;;  %v2078_v20 = vunpack.i.h.bf16 %v2076_v10  ;;  %v2745_v10 = vpop.permute.xlu2 %258 }
 0x288   :  { %531 = vmatpush.msra.mxu3 %v2077_v18 }
 0x28a   :  { %532 = vmatpush.msra.mxu3 %v2078_v20  ;;  %v2089_v20 = vpack.i.bf16 %v308_v6, %v309_v14 }
 0x28e   :  { %v2061_v24 = vpop.permute.xlu1 %2060 }
 0x28f   :  { %v2062_v34 = vunpack.i.l.bf16 %v2061_v24  ;;  %v2063_v36 = vunpack.i.h.bf16 %v2061_v24  ;;  %v307_v24 = vmul.f32 %v2728_v15, %v2516_v41  ;;  %v111_v41 = vld [vmem:[%s3371_s2 + $0x18] sm:$0xff] }
 0x291   :  { %533 = vmatpush.msra.mxu3 %v2062_v34 }
 0x293   :  { %534 = vmatpush.msra.mxu3 %v2063_v36  ;;  %v306_v36 = vmul.f32 %v2745_v10, %v2566_v60 }
 0x296   :  { %v435_v54 = vpop.f32.mrf.mxu2  ;;  %v2081_v58 = vpop.permute.xlu0 %2080 }
 0x297   :  { %v436_v55 = vadd.f32 %v435_v54, %v108_v38  ;;  %v2082_v59 = vunpack.i.l.bf16 %v2081_v58  ;;  %v2066_v1 = vpop.permute.xlu1 %2065  ;;  %v2083_v5 = vunpack.i.h.bf16 %v2081_v58  ;;  %v2094_v54 = vpack.i.bf16 %v306_v36, %v307_v24 }
 0x298   :  { %v2067_v9 = vunpack.i.l.bf16 %v2066_v1  ;;  %v2068_v21 = vunpack.i.h.bf16 %v2066_v1 }
 0x299   :  { %447 = vmax.xlane.f32.xlu2 %v436_v55  ;;  %535 = vmatpush.msra.mxu3 %v2082_v59 }
 0x29b   :  { %536 = vmatpush.msra.mxu3 %v2083_v5 }
 0x29d   :  { %537 = vmatpush.msra.mxu3 %v2067_v9 }
 0x29e   :  { %v438_v13 = vpop.f32.mrf.mxu2 }
 0x29f   :  { %v439_v22 = vadd.f32 %v438_v13, %v109_v11  ;;  %538 = vmatpush.msra.mxu3 %v2068_v21 }
 0x2a1   :  { %449 = vmax.xlane.f32.xlu0 %v439_v22 }
 0x2a6   :  { %v441_v40 = vpop.f32.mrf.mxu2  ;;  %v2071_v44 = vpop.permute.xlu1 %2070 }
 0x2a7   :  { %v442_v3 = vadd.f32 %v441_v40, %v110_v39  ;;  %v2072_v47 = vunpack.i.l.bf16 %v2071_v44  ;;  %v2073_v53 = vunpack.i.h.bf16 %v2071_v44 }
 0x2a9   :  { %451 = vmax.xlane.f32.xlu1 %v442_v3 }
 0x2ae   :  { %v2086_v18 = vpop.permute.xlu1 %2085  ;;  %v444_v58 = vpop.f32.mrf.mxu2 }
 0x2af   :  { %v2087_v34 = vunpack.i.l.bf16 %v2086_v18  ;;  %v2088_v38 = vunpack.i.h.bf16 %v2086_v18  ;;  %v445_v59 = vadd.f32 %v444_v58, %v111_v41  ;;  %v650_v41 = vld [vmem:[%s3373_s7 + $0x8] sm:$0xff]  ;;  %v649_v58 = vld [vmem:[%s3373_s7] sm:$0xff] }
 0x2b1   :  { %2090 = vrot.lane.b32.xlu2 %v2089_v20, %s2243_s21  ;;  %539 = vmatpush.msra.mxu3 %v2087_v34 }
 0x2b3   :  { %540 = vmatpush.msra.mxu3 %v2088_v38 }
 0x2b5   :  { %2095 = vrot.lane.b32.xlu0 %v2094_v54, %s2243_s21  ;;  %541 = vmatpush.msra.mxu3 %v2072_v47 }
 0x2b7   :  { %542 = vmatpush.msra.mxu3 %v2073_v53  ;;  %v651_v53 = vld [vmem:[%s3373_s7 + $0x10] sm:$0xff] }
 0x2da   :  { %453 = vmax.xlane.f32.xlu2 %v445_v59 }
 0x30c   :  { %v448_v60 = vpop.xlane.xlu2 %447 }
 0x30d   :  { %v455_v1 = vsub.f32 %v436_v55, %v448_v60 }
 0x30f   :  { %v459_v5 = vmul.f32 1.442695, %v455_v1 }
 0x311   :  { %2148 = vpow2.f32 %v459_v5 }
 0x314   :  { %v2091_v9 = vpop.permute.xlu2 %2090  ;;  %v450_v11 = vpop.xlane.xlu0 %449 }
 0x315   :  { %v456_v13 = vsub.f32 %v439_v22, %v450_v11  ;;  %v2092_v21 = vunpack.i.l.bf16 %v2091_v9  ;;  %v2093_v44 = vunpack.i.h.bf16 %v2091_v9 }
 0x317   :  { %v2149_v39 = vpop.eup %2148  ;;  %v461_v40 = vmul.f32 1.442695, %v456_v13  ;;  %543 = vmatpush.msra.mxu3 %v2092_v21 }
 0x318   :  { %576 = vmatmul.f32.vlgmr.msrb.gmra.mxu0 %v2149_v39 }
 0x319   :  { %2150 = vpow2.f32 %v461_v40  ;;  %544 = vmatpush.msra.mxu3 %v2093_v44 }
 0x31c   :  { %v452_v6 = vpop.xlane.xlu1 %451 }
 0x31d   :  { %v457_v14 = vsub.f32 %v442_v3, %v452_v6  ;;  %v652_v3 = vld [vmem:[%s3373_s7 + $0x18] sm:$0xff] }
 0x31e   :  { %681 = vmatpush.msrb.mxu1 %v652_v3 }
 0x31f   :  { %v2151_v18 = vpop.eup %2150  ;;  %v463_v20 = vmul.f32 1.442695, %v457_v14 }
 0x320   :  { %579 = vmatmul.f32.gmra.mxu0 %v2151_v18  ;;  %682 = vmatpush.msrb.mxu1 %v651_v53 }
 0x321   :  { %2152 = vpow2.f32 %v463_v20 }
 0x322   :  { %683 = vmatpush.msrb.mxu1 %v650_v41 }
 0x324   :  { %684 = vmatpush.msrb.mxu1 %v649_v58 }
 0x327   :  { %v2153_v55 = vpop.eup %2152  ;;  %v2096_v24 = vpop.permute.xlu0 %2095 }
 0x328   :  { %582 = vmatmul.f32.gmra.mxu0 %v2153_v55  ;;  %v2097_v34 = vunpack.i.l.bf16 %v2096_v24  ;;  %v2098_v22 = vunpack.i.h.bf16 %v2096_v24 }
 0x32a   :  { %545 = vmatpush.msra.mxu3 %v2097_v34 }
 0x32c   :  { %546 = vmatpush.msra.mxu3 %v2098_v22 }
 0x32d   :  { %547 = vmatmul.f32.vlgmr.msra.gmra.mxu3 %v2149_v39 }
 0x335   :  { %550 = vmatmul.f32.gmra.mxu3 %v2151_v18 }
 0x33d   :  { %553 = vmatmul.f32.gmra.mxu3 %v2153_v55 }
 0x34d   :  { %v454_v36 = vpop.xlane.xlu2 %453 }
 0x34e   :  { %v458_v38 = vsub.f32 %v445_v59, %v454_v36 }
 0x350   :  { %v465_v54 = vmul.f32 1.442695, %v458_v38 }
 0x352   :  { %2154 = vpow2.f32 %v465_v54 }
 0x358   :  { %v2155_v47 = vpop.eup %2154 }
 0x359   :  { %556 = vmatmul.f32.gmra.mxu3 %v2155_v47  ;;  %585 = vmatmul.f32.gmra.mxu0 %v2155_v47 }
 0x395   :  { %v577_v59 = vpop.f32.mrf.mxu0 }
 0x396   :  { %2156 = vrcp.f32 %v577_v59  ;;  %v600_v6 = vand.u32 2147483648, %v577_v59  ;;  %vm594_vm3 = vweird.f32 %v577_v59  ;;  %v598_v14 = vand.u32 2147483647, %v577_v59 }
 0x398   :  { %v601_v34 = vor.u32 1.1754944e-38, %v600_v6  ;;  %vm599_vm5 = vcmp.eq.f32.partialorder %v598_v14, 8.507059e+37 }
 0x39c   :  { %v2157_v60 = vpop.eup %2156 }
 0x39d   :  { %v590_v1 = vmul.f32 %v2157_v60, %v577_v59  ;;  %v580_v5 = vpop.f32.mrf.mxu0  ;;  %vm595_vm2 = vweird.f32 %v2157_v60 }
 0x39e   :  { %2158 = vrcp.f32 %v580_v5  ;;  %vm596_vm4 = vmor %vm594_vm3, %vm595_vm2  ;;  %v615_v3 = vand.u32 2147483648, %v580_v5  ;;  %vm609_vm7 = vweird.f32 %v580_v5  ;;  %v613_v53 = vand.u32 2147483647, %v580_v5 }
 0x39f   :  { %v591_v9 = vsub.f32 1.0, %v590_v1 }
 0x3a0   :  { %v616_v59 = vor.u32 1.1754944e-38, %v615_v3  ;;  %vm614_vm9 = vcmp.eq.f32.partialorder %v613_v53, 8.507059e+37 }
 0x3a1   :  { %v592_v39 = vmul.f32 %v2157_v60, %v591_v9 }
 0x3a3   :  { %v593_v44 = vadd.f32 %v2157_v60, %v592_v39 }
 0x3a4   :  { %v2159_v11 = vpop.eup %2158 }
 0x3a5   :  { %v605_v13 = vmul.f32 %v2159_v11, %v580_v5  ;;  %v583_v21 = vpop.f32.mrf.mxu0  ;;  %v597_v55 = vsel %vm596_vm4, %v2157_v60, %v593_v44  ;;  %vm610_vm6 = vweird.f32 %v2159_v11 }
 0x3a6   :  { %2160 = vrcp.f32 %v583_v21  ;;  %v602_v36 = vsel %vm599_vm5, %v601_v34, %v597_v55  ;;  %vm611_vm8 = vmor %vm609_vm7, %vm610_vm6  ;;  %v630_v39 = vand.u32 2147483648, %v583_v21  ;;  %vm624_vm11 = vweird.f32 %v583_v21 }
 0x3a7   :  { %v606_v40 = vsub.f32 1.0, %v605_v13 }
 0x3a8   :  { %v631_v6 = vor.u32 1.1754944e-38, %v630_v39 }
 0x3a9   :  { %v607_v24 = vmul.f32 %v2159_v11, %v606_v40  ;;  %v628_v40 = vand.u32 2147483647, %v583_v21 }
 0x3ab   :  { %v608_v47 = vadd.f32 %v2159_v11, %v607_v24  ;;  %vm629_vm13 = vcmp.eq.f32.partialorder %v628_v40, 8.507059e+37 }
 0x3ac   :  { %v2161_v18 = vpop.eup %2160 }
 0x3ad   :  { %v620_v20 = vmul.f32 %v2161_v18, %v583_v21  ;;  %v612_v41 = vsel %vm611_vm8, %v2159_v11, %v608_v47  ;;  %vm625_vm10 = vweird.f32 %v2161_v18 }
 0x3ae   :  { %v617_v1 = vsel %vm614_vm9, %v616_v59, %v612_v41  ;;  %vm626_vm12 = vmor %vm624_vm11, %vm625_vm10  ;;  %v2140_v41 = vld [vmem:[%s3372_s8] ss:$0 sm:$0xff] }
 0x3af   :  { %v621_v38 = vsub.f32 1.0, %v620_v20 }
 0x3b0   :  { %v548_v22 = vpop.f32.mrf.mxu3 }
 0x3b1   :  { %v603_v54 = vmul.f32 %v602_v36, %v548_v22  ;;  %v622_v58 = vmul.f32 %v2161_v18, %v621_v38 }
 0x3b3   :  { %1978 = vmatmul.msk.f32.vlgmr.msrb.gmra.mxu1 %vm136_vm1, %v603_v54  ;;  %v623_v13 = vadd.f32 %v2161_v18, %v622_v58 }
 0x3b5   :  { %v627_v44 = vsel %vm626_vm12, %v2161_v18, %v623_v13 }
 0x3b6   :  { %v632_v14 = vsel %vm629_vm13, %v631_v6, %v627_v44 }
 0x3b8   :  { %v551_v60 = vpop.f32.mrf.mxu3 }
 0x3b9   :  { %v618_v9 = vmul.f32 %v617_v1, %v551_v60 }
 0x3bb   :  { %1979 = vmatmul.msk.f32.gmra.mxu1 %vm136_vm1, %v618_v9 }
 0x3c0   :  { %v554_v5 = vpop.f32.mrf.mxu3 }
 0x3c1   :  { %v633_v11 = vmul.f32 %v632_v14, %v554_v5 }
 0x3c3   :  { %1980 = vmatmul.msk.f32.gmra.mxu1 %vm136_vm1, %v633_v11 }
 0x3d6   :  { %v586_v20 = vpop.f32.mrf.mxu0 }
 0x3d7   :  { %2162 = vrcp.f32 %v586_v20  ;;  %v645_v22 = vand.u32 2147483648, %v586_v20  ;;  %v643_v38 = vand.u32 2147483647, %v586_v20  ;;  %vm639_vm15 = vweird.f32 %v586_v20 }
 0x3d9   :  { %v646_v21 = vor.u32 1.1754944e-38, %v645_v22  ;;  %vm644_vm3 = vcmp.eq.f32.partialorder %v643_v38, 8.507059e+37 }
 0x3dc   :  { %v557_v47 = vpop.f32.mrf.mxu3 }
 0x3dd   :  { %v2163_v55 = vpop.eup %2162 }
 0x3de   :  { %v635_v24 = vmul.f32 %v2163_v55, %v586_v20  ;;  %vm640_vm14 = vweird.f32 %v2163_v55 }
 0x3df   :  { %vm641_vm2 = vmor %vm639_vm15, %vm640_vm14 }
 0x3e0   :  { %v636_v34 = vsub.f32 1.0, %v635_v24  ;;  %v2244_v24 = vmov 32.0  }
 0x3e1   :  { %2164 = vrcp.f32 %v2244_v24 }
 0x3e2   :  { %v637_v36 = vmul.f32 %v2163_v55, %v636_v34 }
 0x3e4   :  { %v638_v54 = vadd.f32 %v2163_v55, %v637_v36 }
 0x3e6   :  { %v642_v18 = vsel %vm641_vm2, %v2163_v55, %v638_v54 }
 0x3e7   :  { %v647_v3 = vsel %vm644_vm3, %v646_v21, %v642_v18  ;;  %vm873_vm3 = vcmask 523264  }
 0x3e8   :  { %v648_v53 = vmul.f32 %v647_v3, %v557_v47 }
 0x3ea   :  { %1981 = vmatmul.msk.f32.gmra.mxu1 %vm136_vm1, %v648_v53 }
 0x430   :  { %v686_v58 = vpop.f32.mrf.mxu1 }
 0x431   :  { %v687_v59 = vadd.f32 %v2140_v41, %v686_v58 }
 0x433   :  { %v699_v60 = vadd.f32 %v687_v59, %v2454_v23 }
 0x435   :  { %v703_v1 = vsel %vm136_vm1, %v699_v60, 0.0 }
 0x436   :  { %704 = vadd.xlane.f32.xlu1 %v703_v1 }
 0x438   :  { %v689_v9 = vpop.f32.mrf.mxu1 }
 0x439   :  { %v690_v13 = vadd.f32 %v2140_v41, %v689_v9 }
 0x43b   :  { %v700_v39 = vadd.f32 %v690_v13, %v2472_v27  ;;  %v2165_v27 = vpop.eup %2164 }
 0x43c   :  { %v716_v34 = vmul.f32 32.0, %v2165_v27  ;;  %vm720_vm4 = vweird.f32 %v2165_v27 }
 0x43d   :  { %v706_v40 = vsel %vm136_vm1, %v700_v39, 0.0 }
 0x43e   :  { %707 = vadd.xlane.f32.xlu0 %v706_v40  ;;  %v717_v22 = vsub.f32 1.0, %v716_v34 }
 0x440   :  { %v692_v44 = vpop.f32.mrf.mxu1  ;;  %v718_v36 = vmul.f32 %v2165_v27, %v717_v22 }
 0x441   :  { %v693_v6 = vadd.f32 %v2140_v41, %v692_v44 }
 0x442   :  { %v719_v38 = vadd.f32 %v2165_v27, %v718_v36 }
 0x443   :  { %v701_v5 = vadd.f32 %v693_v6, %v2482_v30 }
 0x444   :  { %v2783_v54 = vsel %vm720_vm4, %v2165_v27, %v719_v38 }
 0x445   :  { %v709_v14 = vsel %vm136_vm1, %v701_v5, 0.0 }
 0x446   :  { %710 = vadd.xlane.f32.xlu1 %v709_v14 }
 0x467   :  { %v695_v11 = vpop.f32.mrf.mxu1 }
 0x468   :  { %v696_v20 = vadd.f32 %v2140_v41, %v695_v11 }
 0x46a   :  { %v702_v23 = vadd.f32 %v696_v20, %v2489_v33  ;;  %v810_v20 = vld [vmem:[%s3375_s9 + $0x10] sm:$0xff] }
 0x46c   :  { %v712_v55 = vsel %vm136_vm1, %v702_v23, 0.0 }
 0x46d   :  { %713 = vadd.xlane.f32.xlu1 %v712_v55  ;;  %v808_v55 = vld [vmem:[%s3375_s9] sm:$0xff] }
 0x4a9   :  { %v705_v30 = vpop.xlane.xlu1 %704 }
 0x4aa   :  { %v722_v21 = vmul.f32 %v2783_v54, %v705_v30 }
 0x4ac   :  { %v726_v18 = vsub.f32 %v699_v60, %v722_v21 }
 0x4ae   :  { %v730_v47 = vmul.f32 %v726_v18, %v726_v18 }
 0x4b0   :  { %v734_v33 = vsel %vm136_vm1, %v730_v47, 0.0 }
 0x4b1   :  { %v708_v3 = vpop.xlane.xlu0 %707  ;;  %735 = vadd.xlane.f32.xlu1 %v734_v33 }
 0x4b2   :  { %v723_v53 = vmul.f32 %v2783_v54, %v708_v3 }
 0x4b4   :  { %v2788_v41 = vsub.f32 %v700_v39, %v723_v53 }
 0x4b6   :  { %v731_v58 = vmul.f32 %v2788_v41, %v2788_v41 }
 0x4b8   :  { %v737_v59 = vsel %vm136_vm1, %v731_v58, 0.0 }
 0x4b9   :  { %v711_v1 = vpop.xlane.xlu1 %710  ;;  %738 = vadd.xlane.f32.xlu1 %v737_v59  ;;  %v2823_v59 = vld [vmem:[%s3376_s13] sm:$0xf] }
 0x4ba   :  { %v724_v9 = vmul.f32 %v2783_v54, %v711_v1 }
 0x4bc   :  { %v2794_v13 = vsub.f32 %v701_v5, %v724_v9  ;;  %v811_v5 = vld [vmem:[%s3375_s9 + $0x18] sm:$0xff] }
 0x4bd   :  { %840 = vmatpush.msrb.mxu3 %v811_v5  ;;  %v803_v5 = vperm.slane %v2823_v59, 1 }
 0x4be   :  { %v732_v60 = vmul.f32 %v2794_v13, %v2794_v13 }
 0x4bf   :  { %841 = vmatpush.msrb.mxu3 %v810_v20 }
 0x4c0   :  { %v740_v40 = vsel %vm136_vm1, %v732_v60, 0.0 }
 0x4c1   :  { %741 = vadd.xlane.f32.xlu2 %v740_v40 }
 0x4e0   :  { %v714_v44 = vpop.xlane.xlu1 %713 }
 0x4e1   :  { %v725_v39 = vmul.f32 %v2783_v54, %v714_v44  ;;  %v798_v44 = vperm.slane %v2823_v59, 0 }
 0x4e3   :  { %v2800_v6 = vsub.f32 %v702_v23, %v725_v39  ;;  %v809_v23 = vld [vmem:[%s3375_s9 + $0x8] sm:$0xff] }
 0x4e4   :  { %842 = vmatpush.msrb.mxu3 %v809_v23 }
 0x4e5   :  { %v733_v14 = vmul.f32 %v2800_v6, %v2800_v6 }
 0x4e6   :  { %843 = vmatpush.msrb.mxu3 %v808_v55 }
 0x4e7   :  { %v743_v11 = vsel %vm136_vm1, %v733_v14, 0.0 }
 0x4e8   :  { %744 = vadd.xlane.f32.xlu1 %v743_v11 }
 0x524   :  { %v736_v24 = vpop.xlane.xlu1 %735 }
 0x525   :  { %v746_v27 = vmul.f32 %v736_v24, %v2783_v54 }
 0x527   :  { %v750_v34 = vadd.f32 1e-05, %v746_v27 }
 0x529   :  { %2166 = vrsqrt.f32 %v750_v34  ;;  %vm760_vm6 = vweird.f32 %v750_v34 }
 0x52c   :  { %v739_v22 = vpop.xlane.xlu1 %738 }
 0x52d   :  { %v747_v36 = vmul.f32 %v739_v22, %v2783_v54 }
 0x52f   :  { %v2167_v38 = vpop.eup %2166  ;;  %v751_v30 = vadd.f32 1e-05, %v747_v36 }
 0x530   :  { %v755_v21 = vmul.f32 %v2167_v38, %v750_v34  ;;  %vm761_vm5 = vweird.f32 %v2167_v38 }
 0x531   :  { %2168 = vrsqrt.f32 %v751_v30  ;;  %vm762_vm7 = vmor %vm760_vm6, %vm761_vm5  ;;  %vm770_vm9 = vweird.f32 %v751_v30 }
 0x532   :  { %v756_v47 = vmul.f32 %v2167_v38, %v755_v21 }
 0x534   :  { %v757_v33 = vmul.f32 0.5, %v756_v47  ;;  %v742_v3 = vpop.xlane.xlu2 %741 }
 0x535   :  { %v748_v53 = vmul.f32 %v742_v3, %v2783_v54 }
 0x536   :  { %v758_v58 = vsub.f32 1.5, %v757_v33 }
 0x537   :  { %v2169_v1 = vpop.eup %2168  ;;  %v752_v9 = vadd.f32 1e-05, %v748_v53 }
 0x538   :  { %v759_v60 = vmul.f32 %v2167_v38, %v758_v58  ;;  %v765_v40 = vmul.f32 %v2169_v1, %v751_v30  ;;  %vm771_vm8 = vweird.f32 %v2169_v1 }
 0x539   :  { %2170 = vrsqrt.f32 %v752_v9  ;;  %vm772_vm10 = vmor %vm770_vm9, %vm771_vm8  ;;  %vm780_vm12 = vweird.f32 %v752_v9 }
 0x53a   :  { %v763_v39 = vsel %vm762_vm7, %v2167_v38, %v759_v60  ;;  %v766_v14 = vmul.f32 %v2169_v1, %v765_v40  ;;  %v866_v40 = vld [vmem:[%s3377_s11 + $0x28] sm:$0xff] }
 0x53b   :  { %v794_v11 = vmul.f32 %v763_v39, %v726_v18 }
 0x53c   :  { %v767_v20 = vmul.f32 0.5, %v766_v14  ;;  %v865_v14 = vld [vmem:[%s3377_s11 + $0x20] sm:$0xff] }
 0x53d   :  { %v799_v23 = vmul.f32 %v798_v44, %v794_v11 }
 0x53e   :  { %v768_v55 = vsub.f32 1.5, %v767_v20  ;;  %v864_v20 = vld [vmem:[%s3377_s11 + $0x18] sm:$0xff] }
 0x53f   :  { %v2171_v24 = vpop.eup %2170  ;;  %v2827_v27 = vadd.f32 %v803_v5, %v799_v23 }
 0x540   :  { %v769_v22 = vmul.f32 %v2169_v1, %v768_v55  ;;  %v775_v34 = vmul.f32 %v2171_v24, %v752_v9  ;;  %vm781_vm11 = vweird.f32 %v2171_v24  ;;  %v867_v9 = vld [vmem:[%s3377_s11 + $0x30] sm:$0xff] }
 0x541   :  { %1982 = vmatmul.msk.f32.vlgmr.msrb.gmra.mxu3 %vm136_vm1, %v2827_v27  ;;  %vm782_vm13 = vmor %vm780_vm12, %vm781_vm11 }
 0x542   :  { %v773_v36 = vsel %vm772_vm10, %v2169_v1, %v769_v22  ;;  %v776_v38 = vmul.f32 %v2171_v24, %v775_v34 }
 0x543   :  { %v795_v18 = vmul.f32 %v773_v36, %v2788_v41  ;;  %v868_v41 = vld [vmem:[%s3377_s11 + $0x38] sm:$0xff] }
 0x544   :  { %v777_v21 = vmul.f32 0.5, %v776_v38  ;;  %894 = vmatpush.msra.mxu0 %v868_v41  ;;  %v2227_v41 = vld [vmem:[%s3367_s3 + $0x50] sm:$0xff] }
 0x545   :  { %v800_v47 = vmul.f32 %v798_v44, %v795_v18 }
 0x546   :  { %v778_v33 = vsub.f32 1.5, %v777_v21  ;;  %895 = vmatpush.msra.mxu0 %v867_v9  ;;  %v2228_v9 = vld [vmem:[%s3367_s3 + $0x48] sm:$0xff] }
 0x547   :  { %v2832_v3 = vadd.f32 %v803_v5, %v800_v47 }
 0x548   :  { %v779_v53 = vmul.f32 %v2171_v24, %v778_v33  ;;  %896 = vmatpush.msra.mxu0 %v866_v40  ;;  %v863_v33 = vld [vmem:[%s3377_s11 + $0x10] sm:$0xff]  ;;  %v2229_v40 = vld [vmem:[%s3367_s3 + $0x40] sm:$0xff] }
 0x549   :  { %1983 = vmatmul.msk.f32.gmra.mxu3 %vm136_vm1, %v2832_v3 }
 0x54a   :  { %v783_v30 = vsel %vm782_vm13, %v2171_v24, %v779_v53  ;;  %897 = vmatpush.msra.mxu0 %v865_v14  ;;  %v862_v53 = vld [vmem:[%s3377_s11 + $0x8] sm:$0xff] }
 0x54b   :  { %v796_v58 = vmul.f32 %v783_v30, %v2794_v13  ;;  %v2224_v30 = vld [vmem:[%s3367_s3 + $0x68] sm:$0xff] }
 0x54c   :  { %898 = vmatpush.msra.mxu0 %v864_v20  ;;  %v2232_v14 = vld [vmem:[%s3367_s3 + $0x28] sm:$0xff]  ;;  %v2141_v20 = vld [vmem:[%s3374_s10] ss:$0 sm:$0xff] }
 0x54d   :  { %v801_v60 = vmul.f32 %v798_v44, %v796_v58  ;;  %v2225_v58 = vld [vmem:[%s3367_s3 + $0x60] sm:$0xff] }
 0x54e   :  { %899 = vmatpush.msra.mxu0 %v863_v33 }
 0x54f   :  { %v2837_v1 = vadd.f32 %v803_v5, %v801_v60  ;;  %v2226_v60 = vld [vmem:[%s3367_s3 + $0x58] sm:$0xff] }
 0x550   :  { %900 = vmatpush.msra.mxu0 %v862_v53 }
 0x551   :  { %1984 = vmatmul.msk.f32.gmra.mxu3 %vm136_vm1, %v2837_v1 }
 0x55b   :  { %v745_v13 = vpop.xlane.xlu1 %744 }
 0x55c   :  { %v749_v39 = vmul.f32 %v745_v13, %v2783_v54  ;;  %v2230_v13 = vld [vmem:[%s3367_s3 + $0x38] sm:$0xff] }
 0x55e   :  { %v753_v11 = vadd.f32 1e-05, %v749_v39  ;;  %v2231_v39 = vld [vmem:[%s3367_s3 + $0x30] sm:$0xff] }
 0x560   :  { %2172 = vrsqrt.f32 %v753_v11  ;;  %vm790_vm15 = vweird.f32 %v753_v11 }
 0x566   :  { %v2173_v23 = vpop.eup %2172 }
 0x567   :  { %v785_v55 = vmul.f32 %v2173_v23, %v753_v11  ;;  %vm791_vm14 = vweird.f32 %v2173_v23  ;;  %v2233_v11 = vld [vmem:[%s3367_s3 + $0x20] sm:$0xff] }
 0x568   :  { %vm792_vm2 = vmor %vm790_vm15, %vm791_vm14 }
 0x569   :  { %v786_v24 = vmul.f32 %v2173_v23, %v785_v55 }
 0x56b   :  { %v787_v22 = vmul.f32 0.5, %v786_v24  ;;  %v2235_v24 = vld [vmem:[%s3367_s3 + $0x10] sm:$0xff] }
 0x56d   :  { %v788_v34 = vsub.f32 1.5, %v787_v22 }
 0x56f   :  { %v789_v36 = vmul.f32 %v2173_v23, %v788_v34  ;;  %v2236_v34 = vld [vmem:[%s3367_s3 + $0x8] sm:$0xff] }
 0x571   :  { %v793_v38 = vsel %vm792_vm2, %v2173_v23, %v789_v36  ;;  %v2234_v23 = vld [vmem:[%s3367_s3 + $0x18] sm:$0xff] }
 0x572   :  { %v797_v18 = vmul.f32 %v793_v38, %v2800_v6  ;;  %v861_v6 = vld [vmem:[%s3377_s11] sm:$0xff] }
 0x573   :  { %901 = vmatpush.msra.mxu0 %v861_v6 }
 0x574   :  { %v802_v21 = vmul.f32 %v798_v44, %v797_v18  ;;  %v2222_v44 = vld [vmem:[%s3367_s3 + $0x78] sm:$0xff] }
 0x575   :  { %1338 = vmatpush.msrb.mxu0 %v2222_v44 }
 0x576   :  { %v2858_v47 = vadd.f32 %v803_v5, %v802_v21  ;;  %v2223_v5 = vld [vmem:[%s3367_s3 + $0x70] sm:$0xff] }
 0x577   :  { %1339 = vmatpush.msrb.mxu0 %v2223_v5 }
 0x578   :  { %1985 = vmatmul.msk.f32.gmra.mxu3 %vm136_vm1, %v2858_v47 }
 0x579   :  { %1340 = vmatpush.msrb.mxu0 %v2224_v30 }
 0x57b   :  { %1341 = vmatpush.msrb.mxu0 %v2225_v58 }
 0x57d   :  { %1342 = vmatpush.msrb.mxu0 %v2226_v60 }
 0x57f   :  { %1343 = vmatpush.msrb.mxu0 %v2227_v41 }
 0x581   :  { %1344 = vmatpush.msrb.mxu0 %v2228_v9 }
 0x583   :  { %1345 = vmatpush.msrb.mxu0 %v2229_v40 }
 0x585   :  { %1346 = vmatpush.msrb.mxu0 %v2230_v13 }
 0x587   :  { %1347 = vmatpush.msrb.mxu0 %v2231_v39 }
 0x589   :  { %1348 = vmatpush.msrb.mxu0 %v2232_v14 }
 0x58b   :  { %1349 = vmatpush.msrb.mxu0 %v2233_v11 }
 0x58d   :  { %1350 = vmatpush.msrb.mxu0 %v2234_v23 }
 0x58f   :  { %1351 = vmatpush.msrb.mxu0 %v2235_v24 }
 0x591   :  { %1352 = vmatpush.msrb.mxu0 %v2236_v34 }
 0x593   :  { %1353 = vmatpush.msrb.mxu0 %v2539_v50  ;;  %v2142_v50 = vld [vmem:[%s3378_s12] ss:$0 sm:$0xff] }
 0x5c4   :  { %v845_v55 = vpop.f32.mrf.mxu3 }
 0x5c5   :  { %v846_v22 = vadd.f32 %v2141_v20, %v845_v55 }
 0x5c7   :  { %v857_v36 = vmax.f32 %v846_v22, 0.0 }
 0x5c9   :  { %1986 = vmatmul.msk.f32.vlgmr.msra.gmra.mxu0 %vm873_vm3, %v857_v36 }
 0x5cc   :  { %v848_v38 = vpop.f32.mrf.mxu3 }
 0x5cd   :  { %v849_v18 = vadd.f32 %v2141_v20, %v848_v38 }
 0x5cf   :  { %v858_v21 = vmax.f32 %v849_v18, 0.0 }
 0x5d1   :  { %1987 = vmatmul.msk.f32.gmra.mxu0 %vm873_vm3, %v858_v21 }
 0x5d4   :  { %v851_v33 = vpop.f32.mrf.mxu3 }
 0x5d5   :  { %v852_v53 = vadd.f32 %v2141_v20, %v851_v33 }
 0x5d7   :  { %v859_v6 = vmax.f32 %v852_v53, 0.0 }
 0x5d9   :  { %1988 = vmatmul.msk.f32.gmra.mxu0 %vm873_vm3, %v859_v6 }
 0x5fb   :  { %v854_v44 = vpop.f32.mrf.mxu3 }
 0x5fc   :  { %v855_v5 = vadd.f32 %v2141_v20, %v854_v44 }
 0x5fe   :  { %v860_v30 = vmax.f32 %v855_v5, 0.0 }
 0x600   :  { %1989 = vmatmul.msk.f32.gmra.mxu0 %vm873_vm3, %v860_v30 }
 0x646   :  { %v903_v58 = vpop.f32.mrf.mxu0 }
 0x647   :  { %v904_v60 = vadd.f32 %v2142_v50, %v903_v58 }
 0x649   :  { %v915_v41 = vadd.f32 %v904_v60, %v2827_v27 }
 0x64b   :  { %v919_v9 = vsel %vm136_vm1, %v915_v41, 0.0 }
 0x64c   :  { %920 = vadd.xlane.f32.xlu2 %v919_v9 }
 0x64e   :  { %v906_v40 = vpop.f32.mrf.mxu0 }
 0x64f   :  { %v907_v13 = vadd.f32 %v2142_v50, %v906_v40 }
 0x651   :  { %v916_v39 = vadd.f32 %v907_v13, %v2832_v3 }
 0x653   :  { %v922_v14 = vsel %vm136_vm1, %v916_v39, 0.0 }
 0x654   :  { %923 = vadd.xlane.f32.xlu0 %v922_v14  ;;  %v1992_v14 = vld [vmem:[%s3368_s5 + $0x30] sm:$0xff] }
 0x656   :  { %v909_v11 = vpop.f32.mrf.mxu0 }
 0x657   :  { %v910_v20 = vadd.f32 %v2142_v50, %v909_v11  ;;  %v1991_v11 = vld [vmem:[%s3368_s5 + $0x28] sm:$0xff] }
 0x659   :  { %v917_v23 = vadd.f32 %v910_v20, %v2837_v1  ;;  %v1990_v20 = vld [vmem:[%s3368_s5 + $0x20] sm:$0xff] }
 0x65b   :  { %v925_v55 = vsel %vm136_vm1, %v917_v23, 0.0 }
 0x65c   :  { %926 = vadd.xlane.f32.xlu1 %v925_v55 }
 0x67d   :  { %v912_v24 = vpop.f32.mrf.mxu0 }
 0x67e   :  { %v913_v22 = vadd.f32 %v2142_v50, %v912_v24 }
 0x680   :  { %v918_v27 = vadd.f32 %v913_v22, %v2858_v47 }
 0x682   :  { %v928_v34 = vsel %vm136_vm1, %v918_v27, 0.0 }
 0x683   :  { %929 = vadd.xlane.f32.xlu2 %v928_v34 }
 0x6bf   :  { %v921_v36 = vpop.xlane.xlu2 %920 }
 0x6c0   :  { %v931_v3 = vmul.f32 %v921_v36, %v2783_v54 }
 0x6c2   :  { %v935_v38 = vsub.f32 %v915_v41, %v931_v3 }
 0x6c4   :  { %v939_v18 = vmul.f32 %v935_v38, %v935_v38 }
 0x6c6   :  { %v943_v21 = vsel %vm136_vm1, %v939_v18, 0.0 }
 0x6c7   :  { %944 = vadd.xlane.f32.xlu0 %v943_v21  ;;  %v924_v33 = vpop.xlane.xlu0 %923 }
 0x6c8   :  { %v932_v1 = vmul.f32 %v924_v33, %v2783_v54 }
 0x6ca   :  { %v2938_v53 = vsub.f32 %v916_v39, %v932_v1  ;;  %v1993_v39 = vld [vmem:[%s3368_s5 + $0x38] sm:$0xff] }
 0x6cb   :  { %1051 = vmatpush.msra.mxu1 %v1993_v39 }
 0x6cc   :  { %v940_v6 = vmul.f32 %v2938_v53, %v2938_v53 }
 0x6cd   :  { %1052 = vmatpush.msra.mxu1 %v1992_v14 }
 0x6ce   :  { %v946_v47 = vsel %vm136_vm1, %v940_v6, 0.0 }
 0x6cf   :  { %947 = vadd.xlane.f32.xlu1 %v946_v47  ;;  %v927_v44 = vpop.xlane.xlu1 %926  ;;  %1053 = vmatpush.msra.mxu1 %v1991_v11 }
 0x6d0   :  { %v933_v5 = vmul.f32 %v927_v44, %v2783_v54 }
 0x6d1   :  { %1054 = vmatpush.msra.mxu1 %v1990_v20 }
 0x6d2   :  { %v2944_v30 = vsub.f32 %v917_v23, %v933_v5 }
 0x6d4   :  { %v941_v50 = vmul.f32 %v2944_v30, %v2944_v30 }
 0x6d6   :  { %v949_v58 = vsel %vm136_vm1, %v941_v50, 0.0 }
 0x6d7   :  { %950 = vadd.xlane.f32.xlu2 %v949_v58  ;;  %v1007_v58 = vperm.slane %v2823_v59, 2 }
 0x6f6   :  { %v930_v60 = vpop.xlane.xlu2 %929 }
 0x6f7   :  { %v934_v41 = vmul.f32 %v930_v60, %v2783_v54 }
 0x6f9   :  { %v2950_v9 = vsub.f32 %v918_v27, %v934_v41 }
 0x6fb   :  { %v942_v40 = vmul.f32 %v2950_v9, %v2950_v9 }
 0x6fd   :  { %v952_v13 = vsel %vm136_vm1, %v942_v40, 0.0 }
 0x6fe   :  { %953 = vadd.xlane.f32.xlu0 %v952_v13  ;;  %v1012_v13 = vperm.slane %v2823_v59, 3 }
 0x73a   :  { %v945_v23 = vpop.xlane.xlu0 %944 }
 0x73b   :  { %v955_v55 = vmul.f32 %v945_v23, %v2783_v54 }
 0x73d   :  { %v959_v24 = vadd.f32 1e-05, %v955_v55 }
 0x73f   :  { %2174 = vrsqrt.f32 %v959_v24  ;;  %vm969_vm5 = vweird.f32 %v959_v24 }
 0x742   :  { %v948_v22 = vpop.xlane.xlu1 %947 }
 0x743   :  { %v956_v27 = vmul.f32 %v948_v22, %v2783_v54 }
 0x745   :  { %v2175_v34 = vpop.eup %2174  ;;  %v960_v36 = vadd.f32 1e-05, %v956_v27 }
 0x746   :  { %v964_v3 = vmul.f32 %v2175_v34, %v959_v24  ;;  %vm970_vm4 = vweird.f32 %v2175_v34 }
 0x747   :  { %2176 = vrsqrt.f32 %v960_v36  ;;  %vm971_vm6 = vmor %vm969_vm5, %vm970_vm4  ;;  %vm979_vm8 = vweird.f32 %v960_v36 }
 0x748   :  { %v965_v18 = vmul.f32 %v2175_v34, %v964_v3 }
 0x74a   :  { %v966_v21 = vmul.f32 0.5, %v965_v18  ;;  %v951_v33 = vpop.xlane.xlu2 %950 }
 0x74b   :  { %v957_v1 = vmul.f32 %v951_v33, %v2783_v54 }
 0x74c   :  { %v967_v6 = vsub.f32 1.5, %v966_v21 }
 0x74d   :  { %v2177_v47 = vpop.eup %2176  ;;  %v961_v44 = vadd.f32 1e-05, %v957_v1 }
 0x74e   :  { %v968_v5 = vmul.f32 %v2175_v34, %v967_v6  ;;  %v974_v50 = vmul.f32 %v2177_v47, %v960_v36  ;;  %vm980_vm7 = vweird.f32 %v2177_v47 }
 0x74f   :  { %2178 = vrsqrt.f32 %v961_v44  ;;  %vm981_vm9 = vmor %vm979_vm8, %vm980_vm7  ;;  %vm989_vm11 = vweird.f32 %v961_v44 }
 0x750   :  { %v972_v60 = vsel %vm971_vm6, %v2175_v34, %v968_v5  ;;  %v975_v41 = vmul.f32 %v2177_v47, %v974_v50 }
 0x751   :  { %v1003_v40 = vmul.f32 %v972_v60, %v935_v38 }
 0x752   :  { %v976_v39 = vmul.f32 0.5, %v975_v41 }
 0x753   :  { %v1008_v14 = vmul.f32 %v1007_v58, %v1003_v40 }
 0x754   :  { %v977_v11 = vsub.f32 1.5, %v976_v39 }
 0x755   :  { %v2179_v20 = vpop.eup %2178  ;;  %v2972_v23 = vadd.f32 %v1012_v13, %v1008_v14 }
 0x756   :  { %v978_v55 = vmul.f32 %v2177_v47, %v977_v11  ;;  %v984_v24 = vmul.f32 %v2179_v20, %v961_v44  ;;  %vm990_vm10 = vweird.f32 %v2179_v20 }
 0x757   :  { %1995 = vmatmul.msk.f32.vlgmr.msra.gmra.mxu1 %vm136_vm1, %v2972_v23  ;;  %vm991_vm12 = vmor %vm989_vm11, %vm990_vm10 }
 0x758   :  { %v982_v22 = vsel %vm981_vm9, %v2177_v47, %v978_v55  ;;  %v985_v27 = vmul.f32 %v2179_v20, %v984_v24  ;;  %v2143_v24 = vld [vmem:[%s3369_s6 + $0x1] ss:$0 sm:$0xff] }
 0x759   :  { %v1004_v38 = vmul.f32 %v982_v22, %v2938_v53 }
 0x75a   :  { %v986_v34 = vmul.f32 0.5, %v985_v27 }
 0x75b   :  { %v1009_v59 = vmul.f32 %v1007_v58, %v1004_v38 }
 0x75c   :  { %v987_v3 = vsub.f32 1.5, %v986_v34 }
 0x75d   :  { %v2977_v18 = vadd.f32 %v1012_v13, %v1009_v59 }
 0x75e   :  { %v988_v21 = vmul.f32 %v2179_v20, %v987_v3 }
 0x75f   :  { %1996 = vmatmul.msk.f32.gmra.mxu1 %vm136_vm1, %v2977_v18 }
 0x760   :  { %v992_v36 = vsel %vm991_vm12, %v2179_v20, %v988_v21 }
 0x761   :  { %v1005_v33 = vmul.f32 %v992_v36, %v2944_v30 }
 0x763   :  { %v1010_v1 = vmul.f32 %v1007_v58, %v1005_v33 }
 0x765   :  { %v2982_v6 = vadd.f32 %v1012_v13, %v1010_v1 }
 0x767   :  { %1997 = vmatmul.msk.f32.gmra.mxu1 %vm136_vm1, %v2982_v6 }
 0x771   :  { %v954_v53 = vpop.xlane.xlu0 %953 }
 0x772   :  { %v958_v47 = vmul.f32 %v954_v53, %v2783_v54 }
 0x774   :  { %v962_v5 = vadd.f32 1e-05, %v958_v47 }
 0x776   :  { %2180 = vrsqrt.f32 %v962_v5  ;;  %vm999_vm14 = vweird.f32 %v962_v5 }
 0x77c   :  { %v2181_v50 = vpop.eup %2180 }
 0x77d   :  { %v994_v44 = vmul.f32 %v2181_v50, %v962_v5  ;;  %vm1000_vm13 = vweird.f32 %v2181_v50 }
 0x77e   :  { %vm1001_vm15 = vmor %vm999_vm14, %vm1000_vm13 }
 0x77f   :  { %v995_v60 = vmul.f32 %v2181_v50, %v994_v44 }
 0x781   :  { %v996_v41 = vmul.f32 0.5, %v995_v60 }
 0x783   :  { %v997_v40 = vsub.f32 1.5, %v996_v41 }
 0x785   :  { %v998_v39 = vmul.f32 %v2181_v50, %v997_v40 }
 0x787   :  { %v1002_v30 = vsel %vm1001_vm15, %v2181_v50, %v998_v39 }
 0x788   :  { %v1006_v14 = vmul.f32 %v1002_v30, %v2950_v9 }
 0x78a   :  { %v1011_v11 = vmul.f32 %v1007_v58, %v1006_v14 }
 0x78c   :  { %v2988_v20 = vadd.f32 %v1012_v13, %v1011_v11 }
 0x78e   :  { %1998 = vmatmul.msk.f32.gmra.mxu1 %vm136_vm1, %v2988_v20 }
 0x7d4   :  { %v1056_v55 = vpop.f32.mrf.mxu1 }
 0x7d5   :  { %v2995_v22 = vadd.f32 %v2143_v24, %v1056_v55 }
 0x7d7   :  { %v1088_v9 = vmul.f32 %v2995_v22, %v2712_v35  ;;  %v3008_v13 = vmul.f32 %v2995_v22, %v2745_v10  ;;  %v1068_v47 = vmul.f32 %v2995_v22, %v2613_v32 }
 0x7dc   :  { %v1059_v27 = vpop.f32.mrf.mxu1 }
 0x7dd   :  { %v2997_v38 = vadd.f32 %v2143_v24, %v1059_v27 }
 0x7df   :  { %v1081_v34 = vmul.f32 %v2997_v38, %v2518_v42  ;;  %v1089_v58 = vmul.f32 %v2997_v38, %v2710_v31  ;;  %v3012_v59 = vmul.f32 %v2997_v38, %v2728_v15  ;;  %v1080_v15 = vmul.f32 %v2995_v22, %v2570_v62 }
 0x7e0   :  { %v1077_v10 = vmul.f32 %v2997_v38, %v2531_v49  ;;  %v1073_v32 = vmul.f32 %v2997_v38, %v2591_v7 }
 0x7e1   :  { %1146 = vrot.lane.b32.xlu0 %v1081_v34, %s2242_s4  ;;  %v2109_v3 = vpack.i.bf16 %v1088_v9, %v1089_v58  ;;  %v2134_v42 = vpack.i.bf16 %v3008_v13, %v3012_v59 }
 0x7e4   :  { %v1062_v21 = vpop.f32.mrf.mxu1 }
 0x7e5   :  { %v3016_v36 = vadd.f32 %v2143_v24, %v1062_v21 }
 0x7e7   :  { %v1082_v31 = vmul.f32 %v3016_v36, %v2520_v43  ;;  %v1078_v35 = vmul.f32 %v3016_v36, %v2542_v51  ;;  %v1074_v43 = vmul.f32 %v3016_v36, %v2554_v56  ;;  %v3045_v49 = vmul.f32 %v3016_v36, %v2726_v16 }
 0x7e8   :  { %v1076_v16 = vmul.f32 %v2995_v22, %v2586_v4  ;;  %v1093_v4 = vmul.f32 %v2997_v38, %v2687_v63 }
 0x7e9   :  { %1148 = vrot.lane.b32.xlu2 %v1082_v31, %s2242_s4  ;;  %1140 = vrot.lane.b32.xlu0 %v1078_v35, %s2242_s4 }
 0x7f1   :  { %1144 = vrot.lane.b32.xlu2 %v1080_v15, %s2242_s4 }
 0x7f9   :  { %1138 = vrot.lane.b32.xlu2 %v1077_v10, %s2242_s4 }
 0x801   :  { %1132 = vrot.lane.b32.xlu2 %v1074_v43, %s2242_s4 }
 0x80b   :  { %v1065_v51 = vpop.f32.mrf.mxu1 }
 0x80c   :  { %v3033_v33 = vadd.f32 %v2143_v24, %v1065_v51 }
 0x80e   :  { %v1083_v1 = vmul.f32 %v3033_v33, %v2504_v37  ;;  %v1075_v62 = vmul.f32 %v3033_v33, %v2556_v57  ;;  %v1071_v53 = vmul.f32 %v3033_v33, %v2597_v12  ;;  %v3049_v56 = vmul.f32 %v3033_v33, %v2736_v28 }
 0x80f   :  { %v1079_v57 = vmul.f32 %v3033_v33, %v2524_v45  ;;  %v1072_v12 = vmul.f32 %v2995_v22, %v2568_v61  ;;  %v1069_v28 = vmul.f32 %v2997_v38, %v2602_v25  ;;  %v1097_v45 = vmul.f32 %v2997_v38, %v2679_v52 }
 0x810   :  { %1150 = vrot.lane.b32.xlu1 %v1083_v1, %s2242_s4  ;;  %1134 = vrot.lane.b32.xlu0 %v1075_v62, %s2242_s4  ;;  %v2129_v37 = vpack.i.bf16 %v3045_v49, %v3049_v56  ;;  %v1096_v61 = vmul.f32 %v2995_v22, %v2673_v46  ;;  %v1092_v25 = vmul.f32 %v2995_v22, %v2690_v0 }
 0x811   :  { %1126 = vrot.lane.b32.xlu2 %v1071_v53, %s2242_s4  ;;  %v1070_v52 = vmul.f32 %v3016_v36, %v2609_v29  ;;  %v1099_v7 = vmul.f32 %v3033_v33, %v2663_v17  ;;  %v1098_v46 = vmul.f32 %v3016_v36, %v2665_v19  ;;  %v1095_v63 = vmul.f32 %v3033_v33, %v2677_v48 }
 0x812   :  { %v2099_v5 = vpack.i.bf16 %v1096_v61, %v1097_v45  ;;  %v2104_v50 = vpack.i.bf16 %v1092_v25, %v1093_v4  ;;  %v1091_v29 = vmul.f32 %v3033_v33, %v2706_v26  ;;  %v1094_v0 = vmul.f32 %v3016_v36, %v2694_v2 }
 0x813   :  { %v2114_v44 = vpack.i.bf16 %v1098_v46, %v1099_v7  ;;  %v1090_v17 = vmul.f32 %v3016_v36, %v2719_v8  ;;  %v1100_v61 = vmul.f32 0.35355338, %v2995_v22  ;;  %v1102_v4 = vmul.f32 0.35355338, %v3016_v36  ;;  %v2237_v22 = vld [vmem:[%s3371_s2] sm:$0xff] }
 0x814   :  { %v2119_v60 = vpack.i.bf16 %v1094_v0, %v1095_v63  ;;  %v1103_v25 = vmul.f32 0.35355338, %v3033_v33  ;;  %v2239_v33 = vld [vmem:[%s3371_s2 + $0x10] sm:$0xff] }
 0x815   :  { %v2124_v41 = vpack.i.bf16 %v1090_v17, %v1091_v29  ;;  %v2240_v29 = vld [vmem:[%s3371_s2 + $0x18] sm:$0xff] }
 0x818   :  { %1142 = vrot.lane.b32.xlu1 %v1079_v57, %s2242_s4  ;;  %1128 = vrot.lane.b32.xlu0 %v1072_v12, %s2242_s4 }
 0x819   :  { %1120 = vrot.lane.b32.xlu2 %v1068_v47, %s2242_s4 }
 0x820   :  { %1136 = vrot.lane.b32.xlu1 %v1076_v16, %s2242_s4  ;;  %1122 = vrot.lane.b32.xlu0 %v1069_v28, %s2242_s4 }
 0x828   :  { %1130 = vrot.lane.b32.xlu1 %v1073_v32, %s2242_s4  ;;  %2100 = vrot.lane.b32.xlu0 %v2099_v5, %s2243_s21  ;;  %v1101_v5 = vmul.f32 0.35355338, %v2997_v38  ;;  %v2238_v38 = vld [vmem:[%s3371_s2 + $0x8] sm:$0xff] }
 0x830   :  { %1124 = vrot.lane.b32.xlu1 %v1070_v52, %s2242_s4  ;;  %2105 = vrot.lane.b32.xlu0 %v2104_v50, %s2243_s21 }
 0x838   :  { %2115 = vrot.lane.b32.xlu1 %v2114_v44, %s2243_s21  ;;  %2110 = vrot.lane.b32.xlu0 %v2109_v3, %s2243_s21 }
 0x840   :  { %2120 = vrot.lane.b32.xlu1 %v2119_v60, %s2243_s21  ;;  %2125 = vrot.lane.b32.xlu0 %v2124_v41, %s2243_s21 }
 0x843   :  { %v1149_v48 = vpop.permute.xlu2 %1148 }
 0x84b   :  { %v1145_v8 = vpop.permute.xlu2 %1144 }
 0x853   :  { %v1147_v19 = vpop.permute.xlu0 %1146  ;;  %v1139_v55 = vpop.permute.xlu2 %1138 }
 0x85b   :  { %v1141_v40 = vpop.permute.xlu0 %1140  ;;  %v1133_v58 = vpop.permute.xlu2 %1132 }
 0x86b   :  { %v1127_v43 = vpop.permute.xlu2 %1126 }
 0x873   :  { %v1121_v28 = vpop.permute.xlu2 %1120 }
 0x882   :  { %v1151_v39 = vpop.permute.xlu1 %1150  ;;  %v1135_v30 = vpop.permute.xlu0 %1134 }
 0x883   :  { %1999 = vmatpush.xpose.msk.msrb.mxu2 %vm136_vm1, %v1151_v39 }
 0x887   :  { %2000 = vmatpush.xpose.msk.msrb.mxu2 %vm136_vm1, %v1149_v48 }
 0x88a   :  { %v1143_v26 = vpop.permute.xlu1 %1142  ;;  %v1129_v2 = vpop.permute.xlu0 %1128 }
 0x88b   :  { %2001 = vmatpush.xpose.msk.msrb.mxu2 %vm136_vm1, %v1147_v19 }
 0x88f   :  { %2002 = vmatpush.xpose.msk.msrb.mxu2 %vm136_vm1, %v1145_v8 }
 0x892   :  { %v1137_v14 = vpop.permute.xlu1 %1136  ;;  %v1123_v11 = vpop.permute.xlu0 %1122 }
 0x893   :  { %2003 = vmatpush.xpose.msk.msrb.mxu2 %vm136_vm1, %v1143_v26 }
 0x897   :  { %2004 = vmatpush.xpose.msk.msrb.mxu2 %vm136_vm1, %v1141_v40 }
 0x89a   :  { %v1131_v24 = vpop.permute.xlu1 %1130  ;;  %v2101_v27 = vpop.permute.xlu0 %2100 }
 0x89b   :  { %2005 = vmatpush.xpose.msk.msrb.mxu2 %vm136_vm1, %v1139_v55  ;;  %v2102_v15 = vunpack.i.l.bf16 %v2101_v27  ;;  %v2103_v10 = vunpack.i.h.bf16 %v2101_v27 }
 0x89f   :  { %2006 = vmatpush.xpose.msk.msrb.mxu2 %vm136_vm1, %v1137_v14 }
 0x8a2   :  { %v1125_v34 = vpop.permute.xlu1 %1124  ;;  %v2106_v9 = vpop.permute.xlu0 %2105 }
 0x8a3   :  { %2007 = vmatpush.xpose.msk.msrb.mxu2 %vm136_vm1, %v1135_v30  ;;  %v2107_v53 = vunpack.i.l.bf16 %v2106_v9  ;;  %v2108_v12 = vunpack.i.h.bf16 %v2106_v9  ;;  %v2021_v9 = vld [vmem:[%s3373_s7 + $0x30] sm:$0xff] }
 0x8a7   :  { %2008 = vmatpush.xpose.msk.msrb.mxu2 %vm136_vm1, %v1133_v58 }
 0x8aa   :  { %v2116_v3 = vpop.permute.xlu1 %2115  ;;  %v2111_v35 = vpop.permute.xlu0 %2110 }
 0x8ab   :  { %v2117_v21 = vunpack.i.l.bf16 %v2116_v3  ;;  %2009 = vmatpush.xpose.msk.msrb.mxu2 %vm136_vm1, %v1131_v24  ;;  %v2118_v31 = vunpack.i.h.bf16 %v2116_v3  ;;  %v2112_v45 = vunpack.i.l.bf16 %v2111_v35  ;;  %v2113_v32 = vunpack.i.h.bf16 %v2111_v35  ;;  %v2020_v3 = vld [vmem:[%s3373_s7 + $0x28] sm:$0xff] }
 0x8ad   :  { %1309 = vmatpush.msra.mxu3 %v2117_v21  ;;  %v2019_v21 = vld [vmem:[%s3373_s7 + $0x20] sm:$0xff] }
 0x8af   :  { %2010 = vmatpush.xpose.msk.msrb.mxu2 %vm136_vm1, %v1129_v2  ;;  %1310 = vmatpush.msra.mxu3 %v2118_v31 }
 0x8b1   :  { %1311 = vmatpush.msra.mxu3 %v2102_v15 }
 0x8b2   :  { %v2121_v51 = vpop.permute.xlu1 %2120  ;;  %v2126_v57 = vpop.permute.xlu0 %2125 }
 0x8b3   :  { %v2122_v1 = vunpack.i.l.bf16 %v2121_v51  ;;  %2011 = vmatpush.xpose.msk.msrb.mxu2 %vm136_vm1, %v1127_v43  ;;  %1312 = vmatpush.msra.mxu3 %v2103_v10  ;;  %v2123_v62 = vunpack.i.h.bf16 %v2121_v51  ;;  %v2127_v47 = vunpack.i.l.bf16 %v2126_v57  ;;  %v2128_v16 = vunpack.i.h.bf16 %v2126_v57 }
 0x8b5   :  { %1313 = vmatpush.msra.mxu3 %v2122_v1 }
 0x8b7   :  { %2012 = vmatpush.xpose.msk.msrb.mxu2 %vm136_vm1, %v1125_v34  ;;  %1314 = vmatpush.msra.mxu3 %v2123_v62  ;;  %v2022_v34 = vld [vmem:[%s3373_s7 + $0x38] sm:$0xff] }
 0x8b8   :  { %1461 = vmatpush.msrb.mxu1 %v2022_v34 }
 0x8b9   :  { %1315 = vmatpush.msra.mxu3 %v2107_v53 }
 0x8ba   :  { %1462 = vmatpush.msrb.mxu1 %v2021_v9 }
 0x8bb   :  { %2013 = vmatpush.xpose.msk.msrb.mxu2 %vm136_vm1, %v1123_v11  ;;  %1316 = vmatpush.msra.mxu3 %v2108_v12 }
 0x8bc   :  { %1463 = vmatpush.msrb.mxu1 %v2020_v3 }
 0x8bd   :  { %1317 = vmatpush.msra.mxu3 %v2127_v47 }
 0x8be   :  { %1464 = vmatpush.msrb.mxu1 %v2019_v21 }
 0x8bf   :  { %2014 = vmatpush.xpose.msk.msrb.mxu2 %vm136_vm1, %v1121_v28  ;;  %1318 = vmatpush.msra.mxu3 %v2128_v16 }
 0x8c1   :  { %1319 = vmatpush.msra.mxu3 %v2112_v45 }
 0x8c2   :  { %2015 = vmatmul.msk.f32.vlgmr.msrb.gmra.mxu2 %vm136_vm1, %v1100_v61 }
 0x8c3   :  { %1320 = vmatpush.msra.mxu3 %v2113_v32 }
 0x8ca   :  { %2016 = vmatmul.msk.f32.gmra.mxu2 %vm136_vm1, %v1101_v5 }
 0x8d2   :  { %2017 = vmatmul.msk.f32.gmra.mxu2 %vm136_vm1, %v1102_v4 }
 0x8da   :  { %2018 = vmatmul.msk.f32.gmra.mxu2 %vm136_vm1, %v1103_v25 }
 0x945   :  { %v1213_v52 = vpop.f32.mrf.mxu2 }
 0x946   :  { %v1214_v50 = vadd.f32 %v2237_v22, %v1213_v52 }
 0x948   :  { %1225 = vmax.xlane.f32.xlu2 %v1214_v50 }
 0x94d   :  { %v1216_v7 = vpop.f32.mrf.mxu2 }
 0x94e   :  { %v1217_v46 = vadd.f32 %v2238_v38, %v1216_v7 }
 0x950   :  { %1227 = vmax.xlane.f32.xlu1 %v1217_v46 }
 0x955   :  { %v1219_v36 = vpop.f32.mrf.mxu2 }
 0x956   :  { %v1220_v44 = vadd.f32 %v2239_v33, %v1219_v36 }
 0x958   :  { %1229 = vmax.xlane.f32.xlu0 %v1220_v44 }
 0x95d   :  { %v1222_v63 = vpop.f32.mrf.mxu2 }
 0x95e   :  { %v1223_v0 = vadd.f32 %v2240_v29, %v1222_v63 }
 0x960   :  { %2130 = vrot.lane.b32.xlu2 %v2129_v37, %s2243_s21 }
 0x969   :  { %2135 = vrot.lane.b32.xlu1 %v2134_v42, %s2243_s21 }
 0x989   :  { %1231 = vmax.xlane.f32.xlu2 %v1223_v0 }
 0x9bb   :  { %v1226_v17 = vpop.xlane.xlu2 %1225 }
 0x9bc   :  { %v1233_v60 = vsub.f32 %v1214_v50, %v1226_v17 }
 0x9be   :  { %v1237_v41 = vmul.f32 1.442695, %v1233_v60 }
 0x9c0   :  { %2182 = vpow2.f32 %v1237_v41 }
 0x9c3   :  { %v1228_v19 = vpop.xlane.xlu1 %1227  ;;  %v2131_v40 = vpop.permute.xlu2 %2130 }
 0x9c4   :  { %v1234_v49 = vsub.f32 %v1217_v46, %v1228_v19  ;;  %v2132_v56 = vunpack.i.l.bf16 %v2131_v40  ;;  %v2133_v30 = vunpack.i.h.bf16 %v2131_v40 }
 0x9c6   :  { %v2183_v37 = vpop.eup %2182  ;;  %v1239_v39 = vmul.f32 1.442695, %v1234_v49  ;;  %1321 = vmatpush.msra.mxu3 %v2132_v56 }
 0x9c7   :  { %1354 = vmatmul.f32.vlgmr.msrb.gmra.mxu0 %v2183_v37 }
 0x9c8   :  { %2184 = vpow2.f32 %v1239_v39  ;;  %1322 = vmatpush.msra.mxu3 %v2133_v30 }
 0x9cb   :  { %v1230_v13 = vpop.xlane.xlu0 %1229 }
 0x9cc   :  { %v1235_v59 = vsub.f32 %v1220_v44, %v1230_v13 }
 0x9ce   :  { %v2185_v42 = vpop.eup %2184  ;;  %v1241_v48 = vmul.f32 1.442695, %v1235_v59 }
 0x9cf   :  { %1357 = vmatmul.f32.gmra.mxu0 %v2185_v42 }
 0x9d0   :  { %2186 = vpow2.f32 %v1241_v48 }
 0x9d6   :  { %v2187_v26 = vpop.eup %2186 }
 0x9d7   :  { %1360 = vmatmul.f32.gmra.mxu0 %v2187_v26 }
 0x9db   :  { %v2136_v2 = vpop.permute.xlu1 %2135 }
 0x9dc   :  { %v2137_v8 = vunpack.i.l.bf16 %v2136_v2  ;;  %v2138_v14 = vunpack.i.h.bf16 %v2136_v2 }
 0x9de   :  { %1323 = vmatpush.msra.mxu3 %v2137_v8 }
 0x9e0   :  { %1324 = vmatpush.msra.mxu3 %v2138_v14 }
 0x9e1   :  { %1325 = vmatmul.f32.vlgmr.msra.gmra.mxu3 %v2183_v37 }
 0x9e9   :  { %1328 = vmatmul.f32.gmra.mxu3 %v2185_v42 }
 0x9f1   :  { %1331 = vmatmul.f32.gmra.mxu3 %v2187_v26 }
 0x9fc   :  { %v1232_v11 = vpop.xlane.xlu2 %1231 }
 0x9fd   :  { %v1236_v55 = vsub.f32 %v1223_v0, %v1232_v11 }
 0x9ff   :  { %v1243_v24 = vmul.f32 1.442695, %v1236_v55  ;;  %v2144_v55 = vld [vmem:[%s3372_s8 + $0x1] ss:$0 sm:$0xff] }
 0xa01   :  { %2188 = vpow2.f32 %v1243_v24 }
 0xa07   :  { %v2189_v27 = vpop.eup %2188 }
 0xa08   :  { %1334 = vmatmul.f32.gmra.mxu3 %v2189_v27  ;;  %1363 = vmatmul.f32.gmra.mxu0 %v2189_v27 }
 0xa44   :  { %v1355_v58 = vpop.f32.mrf.mxu0 }
 0xa45   :  { %2190 = vrcp.f32 %v1355_v58  ;;  %v1378_v47 = vand.u32 2147483648, %v1355_v58  ;;  %vm1372_vm4 = vweird.f32 %v1355_v58  ;;  %v1376_v16 = vand.u32 2147483647, %v1355_v58 }
 0xa47   :  { %v1379_v32 = vor.u32 1.1754944e-38, %v1378_v47  ;;  %vm1377_vm6 = vcmp.eq.f32.partialorder %v1376_v16, 8.507059e+37 }
 0xa4b   :  { %v2191_v35 = vpop.eup %2190 }
 0xa4c   :  { %v1358_v31 = vpop.f32.mrf.mxu0  ;;  %v1368_v15 = vmul.f32 %v2191_v35, %v1355_v58  ;;  %vm1373_vm2 = vweird.f32 %v2191_v35 }
 0xa4d   :  { %2192 = vrcp.f32 %v1358_v31  ;;  %vm1374_vm5 = vmor %vm1372_vm4, %vm1373_vm2  ;;  %v1393_v50 = vand.u32 2147483648, %v1358_v31  ;;  %vm1387_vm8 = vweird.f32 %v1358_v31  ;;  %v1391_v7 = vand.u32 2147483647, %v1358_v31 }
 0xa4e   :  { %v1369_v10 = vsub.f32 1.0, %v1368_v15 }
 0xa4f   :  { %v1394_v36 = vor.u32 1.1754944e-38, %v1393_v50  ;;  %vm1392_vm10 = vcmp.eq.f32.partialorder %v1391_v7, 8.507059e+37 }
 0xa50   :  { %v1370_v62 = vmul.f32 %v2191_v35, %v1369_v10 }
 0xa52   :  { %v1371_v57 = vadd.f32 %v2191_v35, %v1370_v62 }
 0xa53   :  { %v2193_v51 = vpop.eup %2192 }
 0xa54   :  { %v1361_v43 = vpop.f32.mrf.mxu0  ;;  %v1383_v1 = vmul.f32 %v2193_v51, %v1358_v31  ;;  %v1375_v45 = vsel %vm1374_vm5, %v2191_v35, %v1371_v57  ;;  %vm1388_vm7 = vweird.f32 %v2193_v51 }
 0xa55   :  { %2194 = vrcp.f32 %v1361_v43  ;;  %v1380_v4 = vsel %vm1377_vm6, %v1379_v32, %v1375_v45  ;;  %vm1389_vm9 = vmor %vm1387_vm8, %vm1388_vm7  ;;  %v1408_v0 = vand.u32 2147483648, %v1361_v43  ;;  %vm1402_vm12 = vweird.f32 %v1361_v43 }
 0xa56   :  { %v1384_v53 = vsub.f32 1.0, %v1383_v1  ;;  %v1406_v17 = vand.u32 2147483647, %v1361_v43 }
 0xa57   :  { %v1409_v41 = vor.u32 1.1754944e-38, %v1408_v0 }
 0xa58   :  { %v1385_v61 = vmul.f32 %v2193_v51, %v1384_v53  ;;  %vm1407_vm14 = vcmp.eq.f32.partialorder %v1406_v17, 8.507059e+37 }
 0xa5a   :  { %v1386_v22 = vadd.f32 %v2193_v51, %v1385_v61 }
 0xa5b   :  { %v2195_v12 = vpop.eup %2194 }
 0xa5c   :  { %v1398_v28 = vmul.f32 %v2195_v12, %v1361_v43  ;;  %v1390_v38 = vsel %vm1389_vm9, %v2193_v51, %v1386_v22  ;;  %vm1403_vm11 = vweird.f32 %v2195_v12 }
 0xa5d   :  { %v1395_v44 = vsel %vm1392_vm10, %v1394_v36, %v1390_v38  ;;  %vm1404_vm13 = vmor %vm1402_vm12, %vm1403_vm11  ;;  %v2031_v36 = vld [vmem:[%s3375_s9 + $0x30] sm:$0xff] }
 0xa5e   :  { %v1399_v25 = vsub.f32 1.0, %v1398_v28 }
 0xa60   :  { %v1400_v46 = vmul.f32 %v2195_v12, %v1399_v25 }
 0xa62   :  { %v1401_v29 = vadd.f32 %v2195_v12, %v1400_v46  ;;  %v2032_v46 = vld [vmem:[%s3375_s9 + $0x38] sm:$0xff] }
 0xa63   :  { %1616 = vmatpush.msrb.mxu3 %v2032_v46 }
 0xa64   :  { %v1326_v5 = vpop.f32.mrf.mxu3  ;;  %v1405_v60 = vsel %vm1404_vm13, %v2195_v12, %v1401_v29 }
 0xa65   :  { %v1381_v52 = vmul.f32 %v1380_v4, %v1326_v5  ;;  %v1410_v40 = vsel %vm1407_vm14, %v1409_v41, %v1405_v60  ;;  %1617 = vmatpush.msrb.mxu3 %v2031_v36 }
 0xa67   :  { %2024 = vmatmul.msk.f32.vlgmr.msrb.gmra.mxu1 %vm136_vm1, %v1381_v52 }
 0xa6c   :  { %v1329_v33 = vpop.f32.mrf.mxu3 }
 0xa6d   :  { %v1396_v63 = vmul.f32 %v1395_v44, %v1329_v33  ;;  %v2030_v33 = vld [vmem:[%s3375_s9 + $0x28] sm:$0xff]  ;;  %v2029_v44 = vld [vmem:[%s3375_s9 + $0x20] sm:$0xff] }
 0xa6e   :  { %1618 = vmatpush.msrb.mxu3 %v2030_v33  ;;  %v2040_v33 = vld [vmem:[%s3377_s11 + $0x50] sm:$0xff] }
 0xa6f   :  { %2025 = vmatmul.msk.f32.gmra.mxu1 %vm136_vm1, %v1396_v63 }
 0xa70   :  { %1619 = vmatpush.msrb.mxu3 %v2029_v44  ;;  %v2039_v44 = vld [vmem:[%s3377_s11 + $0x48] sm:$0xff] }
 0xa74   :  { %v1332_v19 = vpop.f32.mrf.mxu3 }
 0xa75   :  { %v1411_v49 = vmul.f32 %v1410_v40, %v1332_v19 }
 0xa77   :  { %2026 = vmatmul.msk.f32.gmra.mxu1 %vm136_vm1, %v1411_v49 }
 0xa85   :  { %v1364_v56 = vpop.f32.mrf.mxu0 }
 0xa86   :  { %2196 = vrcp.f32 %v1364_v56  ;;  %v1423_v13 = vand.u32 2147483648, %v1364_v56  ;;  %v1421_v42 = vand.u32 2147483647, %v1364_v56  ;;  %vm1417_vm2 = vweird.f32 %v1364_v56 }
 0xa88   :  { %v1424_v26 = vor.u32 1.1754944e-38, %v1423_v13  ;;  %vm1422_vm5 = vcmp.eq.f32.partialorder %v1421_v42, 8.507059e+37 }
 0xa8b   :  { %v1335_v8 = vpop.f32.mrf.mxu3 }
 0xa8c   :  { %v2197_v37 = vpop.eup %2196 }
 0xa8d   :  { %v1413_v39 = vmul.f32 %v2197_v37, %v1364_v56  ;;  %vm1418_vm15 = vweird.f32 %v2197_v37 }
 0xa8e   :  { %vm1419_vm4 = vmor %vm1417_vm2, %vm1418_vm15 }
 0xa8f   :  { %v1414_v30 = vsub.f32 1.0, %v1413_v39 }
 0xa91   :  { %v1415_v59 = vmul.f32 %v2197_v37, %v1414_v30  ;;  %v3210_v30 = vld [vmem:[%s3376_s13 + $0x4] sm:$0xf] }
 0xa93   :  { %v1416_v48 = vadd.f32 %v2197_v37, %v1415_v59 }
 0xa95   :  { %v1420_v2 = vsel %vm1419_vm4, %v2197_v37, %v1416_v48 }
 0xa96   :  { %v1425_v14 = vsel %vm1422_vm5, %v1424_v26, %v1420_v2  ;;  %v1572_v2 = vperm.slane %v3210_v30, 0 }
 0xa97   :  { %v1426_v11 = vmul.f32 %v1425_v14, %v1335_v8 }
 0xa99   :  { %2027 = vmatmul.msk.f32.gmra.mxu1 %vm136_vm1, %v1426_v11 }
 0xae4   :  { %v1466_v24 = vpop.f32.mrf.mxu1 }
 0xae5   :  { %v1467_v27 = vadd.f32 %v2144_v55, %v1466_v24 }
 0xae7   :  { %v1480_v34 = vadd.f32 %v1467_v27, %v2972_v23 }
 0xae9   :  { %v1484_v9 = vsel %vm136_vm1, %v1480_v34, 0.0 }
 0xaea   :  { %1485 = vadd.xlane.f32.xlu0 %v1484_v9 }
 0xaec   :  { %v1469_v58 = vpop.f32.mrf.mxu1 }
 0xaed   :  { %v1470_v3 = vadd.f32 %v2144_v55, %v1469_v58 }
 0xaef   :  { %v1481_v21 = vadd.f32 %v1470_v3, %v2977_v18 }
 0xaf1   :  { %v1487_v31 = vsel %vm136_vm1, %v1481_v21, 0.0 }
 0xaf2   :  { %1488 = vadd.xlane.f32.xlu0 %v1487_v31 }
 0xaf4   :  { %v1472_v35 = vpop.f32.mrf.mxu1 }
 0xaf5   :  { %v1473_v15 = vadd.f32 %v2144_v55, %v1472_v35 }
 0xaf7   :  { %v1482_v10 = vadd.f32 %v1473_v15, %v2982_v6 }
 0xaf9   :  { %v1490_v43 = vsel %vm136_vm1, %v1482_v10, 0.0 }
 0xafa   :  { %1491 = vadd.xlane.f32.xlu1 %v1490_v43 }
 0xb16   :  { %v1475_v51 = vpop.f32.mrf.mxu1 }
 0xb17   :  { %v1476_v1 = vadd.f32 %v2144_v55, %v1475_v51  ;;  %v1577_v55 = vperm.slane %v3210_v30, 1 }
 0xb19   :  { %v1483_v23 = vadd.f32 %v1476_v1, %v2988_v20 }
 0xb1b   :  { %v1493_v62 = vsel %vm136_vm1, %v1483_v23, 0.0 }
 0xb1c   :  { %1494 = vadd.xlane.f32.xlu0 %v1493_v62 }
 0xb5d   :  { %v1486_v53 = vpop.xlane.xlu0 %1485 }
 0xb5e   :  { %v1496_v18 = vmul.f32 %v1486_v53, %v2783_v54 }
 0xb60   :  { %v1500_v57 = vsub.f32 %v1480_v34, %v1496_v18 }
 0xb62   :  { %v1504_v12 = vmul.f32 %v1500_v57, %v1500_v57 }
 0xb64   :  { %v1508_v47 = vsel %vm136_vm1, %v1504_v12, 0.0  ;;  %v2045_v12 = vld [vmem:[%s3377_s11 + $0x78] sm:$0xff] }
 0xb65   :  { %v1489_v16 = vpop.xlane.xlu0 %1488  ;;  %1509 = vadd.xlane.f32.xlu0 %v1508_v47  ;;  %v2044_v47 = vld [vmem:[%s3377_s11 + $0x70] sm:$0xff]  ;;  %1671 = vmatpush.msra.mxu0 %v2045_v12 }
 0xb66   :  { %v1497_v6 = vmul.f32 %v1489_v16, %v2783_v54  ;;  %v2043_v16 = vld [vmem:[%s3377_s11 + $0x68] sm:$0xff] }
 0xb67   :  { %1672 = vmatpush.msra.mxu0 %v2044_v47 }
 0xb68   :  { %v3175_v28 = vsub.f32 %v1481_v21, %v1497_v6 }
 0xb69   :  { %1673 = vmatpush.msra.mxu0 %v2043_v16 }
 0xb6a   :  { %v1505_v45 = vmul.f32 %v3175_v28, %v3175_v28 }
 0xb6c   :  { %v1511_v20 = vsel %vm136_vm1, %v1505_v45, 0.0  ;;  %v2042_v45 = vld [vmem:[%s3377_s11 + $0x60] sm:$0xff] }
 0xb6d   :  { %v1492_v61 = vpop.xlane.xlu1 %1491  ;;  %1512 = vadd.xlane.f32.xlu0 %v1511_v20  ;;  %1674 = vmatpush.msra.mxu0 %v2042_v45 }
 0xb6e   :  { %v1498_v32 = vmul.f32 %v1492_v61, %v2783_v54  ;;  %v2041_v61 = vld [vmem:[%s3377_s11 + $0x58] sm:$0xff] }
 0xb6f   :  { %1675 = vmatpush.msra.mxu0 %v2041_v61 }
 0xb70   :  { %v3181_v5 = vsub.f32 %v1482_v10, %v1498_v32 }
 0xb71   :  { %1676 = vmatpush.msra.mxu0 %v2040_v33 }
 0xb72   :  { %v1506_v4 = vmul.f32 %v3181_v5, %v3181_v5 }
 0xb73   :  { %1677 = vmatpush.msra.mxu0 %v2039_v44 }
 0xb74   :  { %v1514_v25 = vsel %vm136_vm1, %v1506_v4, 0.0 }
 0xb75   :  { %1515 = vadd.xlane.f32.xlu2 %v1514_v25 }
 0xb8f   :  { %v1495_v52 = vpop.xlane.xlu0 %1494 }
 0xb90   :  { %v1499_v22 = vmul.f32 %v1495_v52, %v2783_v54 }
 0xb92   :  { %v3187_v50 = vsub.f32 %v1483_v23, %v1499_v22 }
 0xb94   :  { %v1507_v7 = vmul.f32 %v3187_v50, %v3187_v50 }
 0xb96   :  { %v1517_v38 = vsel %vm136_vm1, %v1507_v7, 0.0 }
 0xb97   :  { %1518 = vadd.xlane.f32.xlu0 %v1517_v38 }
 0xbd8   :  { %v1510_v63 = vpop.xlane.xlu0 %1509 }
 0xbd9   :  { %v1520_v29 = vmul.f32 %v1510_v63, %v2783_v54  ;;  %v2038_v63 = vld [vmem:[%s3377_s11 + $0x40] sm:$0xff] }
 0xbda   :  { %1678 = vmatpush.msra.mxu0 %v2038_v63 }
 0xbdb   :  { %v1524_v0 = vadd.f32 1e-05, %v1520_v29 }
 0xbdd   :  { %2198 = vrsqrt.f32 %v1524_v0  ;;  %vm1534_vm7 = vweird.f32 %v1524_v0 }
 0xbe0   :  { %v1513_v17 = vpop.xlane.xlu0 %1512 }
 0xbe1   :  { %v1521_v60 = vmul.f32 %v1513_v17, %v2783_v54 }
 0xbe3   :  { %v2199_v41 = vpop.eup %2198  ;;  %v1525_v19 = vadd.f32 1e-05, %v1521_v60 }
 0xbe4   :  { %v1529_v40 = vmul.f32 %v2199_v41, %v1524_v0  ;;  %vm1535_vm6 = vweird.f32 %v2199_v41 }
 0xbe5   :  { %2200 = vrsqrt.f32 %v1525_v19  ;;  %vm1536_vm8 = vmor %vm1534_vm7, %vm1535_vm6  ;;  %vm1544_vm10 = vweird.f32 %v1525_v19 }
 0xbe6   :  { %v1530_v49 = vmul.f32 %v2199_v41, %v1529_v40 }
 0xbe8   :  { %v1531_v56 = vmul.f32 0.5, %v1530_v49  ;;  %v1516_v37 = vpop.xlane.xlu2 %1515 }
 0xbe9   :  { %v1522_v39 = vmul.f32 %v1516_v37, %v2783_v54 }
 0xbea   :  { %v1532_v13 = vsub.f32 1.5, %v1531_v56 }
 0xbeb   :  { %v2201_v59 = vpop.eup %2200  ;;  %v1526_v42 = vadd.f32 1e-05, %v1522_v39 }
 0xbec   :  { %v1533_v48 = vmul.f32 %v2199_v41, %v1532_v13  ;;  %v1539_v26 = vmul.f32 %v2201_v59, %v1525_v19  ;;  %vm1545_vm9 = vweird.f32 %v2201_v59 }
 0xbed   :  { %2202 = vrsqrt.f32 %v1526_v42  ;;  %vm1546_vm11 = vmor %vm1544_vm10, %vm1545_vm9  ;;  %vm1554_vm13 = vweird.f32 %v1526_v42 }
 0xbee   :  { %v1537_v8 = vsel %vm1536_vm8, %v2199_v41, %v1533_v48  ;;  %v1540_v14 = vmul.f32 %v2201_v59, %v1539_v26 }
 0xbef   :  { %v1568_v11 = vmul.f32 %v1537_v8, %v1500_v57 }
 0xbf0   :  { %v1541_v24 = vmul.f32 0.5, %v1540_v14 }
 0xbf1   :  { %v1573_v27 = vmul.f32 %v1572_v2, %v1568_v11 }
 0xbf2   :  { %v1542_v34 = vsub.f32 1.5, %v1541_v24 }
 0xbf3   :  { %v2203_v9 = vpop.eup %2202  ;;  %v3214_v58 = vadd.f32 %v1577_v55, %v1573_v27 }
 0xbf4   :  { %v1543_v3 = vmul.f32 %v2201_v59, %v1542_v34  ;;  %v1549_v21 = vmul.f32 %v2203_v9, %v1526_v42  ;;  %vm1555_vm12 = vweird.f32 %v2203_v9 }
 0xbf5   :  { %2034 = vmatmul.msk.f32.vlgmr.msrb.gmra.mxu3 %vm136_vm1, %v3214_v58  ;;  %vm1556_vm14 = vmor %vm1554_vm13, %vm1555_vm12 }
 0xbf6   :  { %v1547_v31 = vsel %vm1546_vm11, %v2201_v59, %v1543_v3  ;;  %v1550_v35 = vmul.f32 %v2203_v9, %v1549_v21  ;;  %v2146_v59 = vld [vmem:[%s3378_s12 + $0x1] ss:$0 sm:$0xff] }
 0xbf7   :  { %v1569_v15 = vmul.f32 %v1547_v31, %v3175_v28 }
 0xbf8   :  { %v1551_v10 = vmul.f32 0.5, %v1550_v35 }
 0xbf9   :  { %v1574_v43 = vmul.f32 %v1572_v2, %v1569_v15 }
 0xbfa   :  { %v1552_v51 = vsub.f32 1.5, %v1551_v10 }
 0xbfb   :  { %v3219_v1 = vadd.f32 %v1577_v55, %v1574_v43 }
 0xbfc   :  { %v1553_v23 = vmul.f32 %v2203_v9, %v1552_v51 }
 0xbfd   :  { %2035 = vmatmul.msk.f32.gmra.mxu3 %vm136_vm1, %v3219_v1 }
 0xbfe   :  { %v1557_v62 = vsel %vm1556_vm14, %v2203_v9, %v1553_v23 }
 0xbff   :  { %v1570_v53 = vmul.f32 %v1557_v62, %v3181_v5 }
 0xc01   :  { %v1575_v18 = vmul.f32 %v1572_v2, %v1570_v53 }
 0xc03   :  { %v3224_v57 = vadd.f32 %v1577_v55, %v1575_v18 }
 0xc05   :  { %2036 = vmatmul.msk.f32.gmra.mxu3 %vm136_vm1, %v3224_v57 }
 0xc0a   :  { %v1519_v6 = vpop.xlane.xlu0 %1518 }
 0xc0b   :  { %v1523_v28 = vmul.f32 %v1519_v6, %v2783_v54 }
 0xc0d   :  { %v1527_v20 = vadd.f32 1e-05, %v1523_v28 }
 0xc0f   :  { %2204 = vrsqrt.f32 %v1527_v20  ;;  %vm1564_vm2 = vweird.f32 %v1527_v20 }
 0xc15   :  { %v2205_v32 = vpop.eup %2204 }
 0xc16   :  { %v1559_v5 = vmul.f32 %v2205_v32, %v1527_v20  ;;  %vm1565_vm15 = vweird.f32 %v2205_v32 }
 0xc17   :  { %vm1566_vm4 = vmor %vm1564_vm2, %vm1565_vm15 }
 0xc18   :  { %v1560_v4 = vmul.f32 %v2205_v32, %v1559_v5 }
 0xc1a   :  { %v1561_v25 = vmul.f32 0.5, %v1560_v4 }
 0xc1c   :  { %v1562_v52 = vsub.f32 1.5, %v1561_v25 }
 0xc1e   :  { %v1563_v22 = vmul.f32 %v2205_v32, %v1562_v52 }
 0xc20   :  { %v1567_v7 = vsel %vm1566_vm4, %v2205_v32, %v1563_v22 }
 0xc21   :  { %v1571_v38 = vmul.f32 %v1567_v7, %v3187_v50  ;;  %v2145_v50 = vld [vmem:[%s3374_s10 + $0x1] ss:$0 sm:$0xff] }
 0xc23   :  { %v1576_v46 = vmul.f32 %v1572_v2, %v1571_v38 }
 0xc25   :  { %v1581_v36 = vadd.f32 %v1577_v55, %v1576_v46 }
 0xc27   :  { %2037 = vmatmul.msk.f32.gmra.mxu3 %vm136_vm1, %v1581_v36 }
 0xc78   :  { %v1621_v29 = vpop.f32.mrf.mxu3 }
 0xc79   :  { %v1622_v0 = vadd.f32 %v2145_v50, %v1621_v29 }
 0xc7b   :  { %v1633_v17 = vmax.f32 %v1622_v0, 0.0 }
 0xc7d   :  { %2047 = vmatmul.msk.f32.vlgmr.msra.gmra.mxu0 %vm873_vm3, %v1633_v17 }
 0xc80   :  { %v1624_v60 = vpop.f32.mrf.mxu3 }
 0xc81   :  { %v1625_v41 = vadd.f32 %v2145_v50, %v1624_v60 }
 0xc83   :  { %v1634_v19 = vmax.f32 %v1625_v41, 0.0  ;;  %v1784_v41 = vperm.slane %v3210_v30, 2 }
 0xc85   :  { %2048 = vmatmul.msk.f32.gmra.mxu0 %vm873_vm3, %v1634_v19 }
 0xc88   :  { %v1627_v40 = vpop.f32.mrf.mxu3 }
 0xc89   :  { %v1628_v49 = vadd.f32 %v2145_v50, %v1627_v40 }
 0xc8b   :  { %v1635_v56 = vmax.f32 %v1628_v49, 0.0 }
 0xc8d   :  { %2049 = vmatmul.msk.f32.gmra.mxu0 %vm873_vm3, %v1635_v56  ;;  %v1789_v56 = vperm.slane %v3210_v30, 3 }
 0xcaa   :  { %v1630_v37 = vpop.f32.mrf.mxu3 }
 0xcab   :  { %v1631_v39 = vadd.f32 %v2145_v50, %v1630_v37 }
 0xcad   :  { %v1636_v13 = vmax.f32 %v1631_v39, 0.0 }
 0xcaf   :  { %2050 = vmatmul.msk.f32.gmra.mxu0 %vm873_vm3, %v1636_v13 }
 0xcfa   :  { %v1680_v42 = vpop.f32.mrf.mxu0 }
 0xcfb   :  { %v1681_v48 = vadd.f32 %v2146_v59, %v1680_v42 }
 0xcfd   :  { %v1692_v26 = vadd.f32 %v1681_v48, %v3214_v58 }
 0xcff   :  { %v1696_v2 = vsel %vm136_vm1, %v1692_v26, 0.0 }
 0xd00   :  { %1697 = vadd.xlane.f32.xlu2 %v1696_v2 }
 0xd02   :  { %v1683_v8 = vpop.f32.mrf.mxu0 }
 0xd03   :  { %v1684_v14 = vadd.f32 %v2146_v59, %v1683_v8 }
 0xd05   :  { %v1693_v11 = vadd.f32 %v1684_v14, %v3219_v1 }
 0xd07   :  { %v1699_v55 = vsel %vm136_vm1, %v1693_v11, 0.0 }
 0xd08   :  { %1700 = vadd.xlane.f32.xlu0 %v1699_v55 }
 0xd0a   :  { %v1686_v24 = vpop.f32.mrf.mxu0 }
 0xd0b   :  { %v1687_v27 = vadd.f32 %v2146_v59, %v1686_v24 }
 0xd0d   :  { %v1694_v34 = vadd.f32 %v1687_v27, %v3224_v57 }
 0xd0f   :  { %v1702_v9 = vsel %vm136_vm1, %v1694_v34, 0.0 }
 0xd10   :  { %1703 = vadd.xlane.f32.xlu1 %v1702_v9 }
 0xd2c   :  { %v1689_v3 = vpop.f32.mrf.mxu0 }
 0xd2d   :  { %v1690_v21 = vadd.f32 %v2146_v59, %v1689_v3 }
 0xd2f   :  { %v1695_v58 = vadd.f32 %v1690_v21, %v1581_v36 }
 0xd31   :  { %v1705_v31 = vsel %vm136_vm1, %v1695_v58, 0.0 }
 0xd32   :  { %1706 = vadd.xlane.f32.xlu2 %v1705_v31 }
 0xd73   :  { %v1698_v35 = vpop.xlane.xlu2 %1697 }
 0xd74   :  { %v1708_v15 = vmul.f32 %v1698_v35, %v2783_v54 }
 0xd76   :  { %v1712_v10 = vsub.f32 %v1692_v26, %v1708_v15 }
 0xd78   :  { %v1716_v43 = vmul.f32 %v1712_v10, %v1712_v10 }
 0xd7a   :  { %v1720_v51 = vsel %vm136_vm1, %v1716_v43, 0.0 }
 0xd7b   :  { %1721 = vadd.xlane.f32.xlu0 %v1720_v51  ;;  %v1701_v1 = vpop.xlane.xlu0 %1700 }
 0xd7c   :  { %v1709_v23 = vmul.f32 %v1701_v1, %v2783_v54 }
 0xd7e   :  { %v1713_v62 = vsub.f32 %v1693_v11, %v1709_v23 }
 0xd80   :  { %v1717_v53 = vmul.f32 %v1713_v62, %v1713_v62 }
 0xd82   :  { %v1723_v18 = vsel %vm136_vm1, %v1717_v53, 0.0 }
 0xd83   :  { %v1704_v57 = vpop.xlane.xlu1 %1703  ;;  %1724 = vadd.xlane.f32.xlu1 %v1723_v18 }
 0xd84   :  { %v1710_v12 = vmul.f32 %v1704_v57, %v2783_v54 }
 0xd86   :  { %v3277_v47 = vsub.f32 %v1694_v34, %v1710_v12 }
 0xd88   :  { %v1718_v16 = vmul.f32 %v3277_v47, %v3277_v47 }
 0xd8a   :  { %v1726_v6 = vsel %vm136_vm1, %v1718_v16, 0.0 }
 0xd8b   :  { %1727 = vadd.xlane.f32.xlu2 %v1726_v6 }
 0xda5   :  { %v1707_v28 = vpop.xlane.xlu2 %1706 }
 0xda6   :  { %v1711_v45 = vmul.f32 %v1707_v28, %v2783_v54 }
 0xda8   :  { %v3283_v20 = vsub.f32 %v1695_v58, %v1711_v45 }
 0xdaa   :  { %v1719_v61 = vmul.f32 %v3283_v20, %v3283_v20 }
 0xdac   :  { %v1729_v32 = vsel %vm136_vm1, %v1719_v61, 0.0 }
 0xdad   :  { %1730 = vadd.xlane.f32.xlu0 %v1729_v32 }
 0xdee   :  { %v1722_v5 = vpop.xlane.xlu0 %1721 }
 0xdef   :  { %v1732_v4 = vmul.f32 %v1722_v5, %v2783_v54 }
 0xdf1   :  { %v1736_v25 = vadd.f32 1e-05, %v1732_v4 }
 0xdf3   :  { %2206 = vrsqrt.f32 %v1736_v25  ;;  %vm1746_vm5 = vweird.f32 %v1736_v25 }
 0xdf6   :  { %v1725_v52 = vpop.xlane.xlu1 %1724 }
 0xdf7   :  { %v1733_v22 = vmul.f32 %v1725_v52, %v2783_v54 }
 0xdf9   :  { %v2207_v7 = vpop.eup %2206  ;;  %v1737_v38 = vadd.f32 1e-05, %v1733_v22 }
 0xdfa   :  { %v1741_v46 = vmul.f32 %v2207_v7, %v1736_v25  ;;  %vm1747_vm3 = vweird.f32 %v2207_v7 }
 0xdfb   :  { %2208 = vrsqrt.f32 %v1737_v38  ;;  %vm1748_vm6 = vmor %vm1746_vm5, %vm1747_vm3  ;;  %vm1756_vm8 = vweird.f32 %v1737_v38 }
 0xdfc   :  { %v1742_v36 = vmul.f32 %v2207_v7, %v1741_v46 }
 0xdfe   :  { %v1743_v33 = vmul.f32 0.5, %v1742_v36  ;;  %v1728_v44 = vpop.xlane.xlu2 %1727 }
 0xdff   :  { %v1734_v63 = vmul.f32 %v1728_v44, %v2783_v54 }
 0xe00   :  { %v1744_v50 = vsub.f32 1.5, %v1743_v33 }
 0xe01   :  { %v2209_v29 = vpop.eup %2208  ;;  %v1738_v0 = vadd.f32 1e-05, %v1734_v63 }
 0xe02   :  { %v1745_v17 = vmul.f32 %v2207_v7, %v1744_v50  ;;  %v1751_v60 = vmul.f32 %v2209_v29, %v1737_v38  ;;  %vm1757_vm7 = vweird.f32 %v2209_v29 }
 0xe03   :  { %2210 = vrsqrt.f32 %v1738_v0  ;;  %vm1758_vm9 = vmor %vm1756_vm8, %vm1757_vm7  ;;  %vm1766_vm11 = vweird.f32 %v1738_v0 }
 0xe04   :  { %v1752_v19 = vmul.f32 %v2209_v29, %v1751_v60  ;;  %v1749_v40 = vsel %vm1748_vm6, %v2207_v7, %v1745_v17  ;;  %v1896_v17 = vld [vmem:[%s3380_s15 + $0x18] sm:$0xff]  ;;  %v1895_v60 = vld [vmem:[%s3380_s15 + $0x10] sm:$0xff] }
 0xe05   :  { %v1780_v49 = vmul.f32 %v1749_v40, %v1712_v10  ;;  %1925 = vmatpush.msra.mxu1 %v1896_v17 }
 0xe06   :  { %v1753_v37 = vmul.f32 0.5, %v1752_v19  ;;  %v1893_v19 = vld [vmem:[%s3380_s15] sm:$0xff] }
 0xe07   :  { %v1785_v39 = vmul.f32 %v1784_v41, %v1780_v49  ;;  %1926 = vmatpush.msra.mxu1 %v1895_v60 }
 0xe08   :  { %v1754_v13 = vsub.f32 1.5, %v1753_v37 }
 0xe09   :  { %v2211_v59 = vpop.eup %2210  ;;  %v1790_v42 = vadd.f32 %v1789_v56, %v1785_v39 }
 0xe0a   :  { %v1755_v48 = vmul.f32 %v2209_v29, %v1754_v13  ;;  %v1761_v26 = vmul.f32 %v2211_v59, %v1738_v0  ;;  %vm1767_vm10 = vweird.f32 %v2211_v59 }
 0xe0b   :  { %v1795_v2 = vsel %vm136_vm1, %v1790_v42, 0.0  ;;  %vm1768_vm12 = vmor %vm1766_vm11, %vm1767_vm10 }
 0xe0c   :  { %v1762_v8 = vmul.f32 %v2211_v59, %v1761_v26  ;;  %1796 = vadd.xlane.f32.xlu1 %v1795_v2  ;;  %v1759_v14 = vsel %vm1758_vm9, %v2209_v29, %v1755_v48 }
 0xe0d   :  { %v1781_v11 = vmul.f32 %v1759_v14, %v1713_v62  ;;  %v1794_v14 = vld [vmem:[%s3381_s14] sm:$0x3] }
 0xe0e   :  { %v1763_v55 = vmul.f32 0.5, %v1762_v8 }
 0xe0f   :  { %v1786_v24 = vmul.f32 %v1784_v41, %v1781_v11 }
 0xe10   :  { %v1764_v27 = vsub.f32 1.5, %v1763_v55 }
 0xe11   :  { %v1791_v30 = vadd.f32 %v1789_v56, %v1786_v24 }
 0xe12   :  { %v1765_v34 = vmul.f32 %v2211_v59, %v1764_v27 }
 0xe13   :  { %v1798_v9 = vsel %vm136_vm1, %v1791_v30, 0.0 }
 0xe14   :  { %1799 = vadd.xlane.f32.xlu2 %v1798_v9  ;;  %v1769_v3 = vsel %vm1768_vm12, %v2211_v59, %v1765_v34  ;;  %v1883_v34 = vperm.slane %v1794_v14, 0 }
 0xe15   :  { %v1782_v21 = vmul.f32 %v1769_v3, %v3277_v47 }
 0xe17   :  { %v1787_v58 = vmul.f32 %v1784_v41, %v1782_v21 }
 0xe19   :  { %v1792_v31 = vadd.f32 %v1789_v56, %v1787_v58  ;;  %v1888_v58 = vperm.slane %v1794_v14, 1 }
 0xe1b   :  { %v1801_v35 = vsel %vm136_vm1, %v1792_v31, 0.0 }
 0xe1c   :  { %1802 = vadd.xlane.f32.xlu0 %v1801_v35 }
 0xe20   :  { %v1731_v15 = vpop.xlane.xlu0 %1730 }
 0xe21   :  { %v1735_v10 = vmul.f32 %v1731_v15, %v2783_v54 }
 0xe23   :  { %v1739_v43 = vadd.f32 1e-05, %v1735_v10 }
 0xe25   :  { %2212 = vrsqrt.f32 %v1739_v43  ;;  %vm1776_vm14 = vweird.f32 %v1739_v43 }
 0xe2b   :  { %v2213_v51 = vpop.eup %2212 }
 0xe2c   :  { %v1771_v1 = vmul.f32 %v2213_v51, %v1739_v43  ;;  %vm1777_vm13 = vweird.f32 %v2213_v51 }
 0xe2d   :  { %vm1778_vm15 = vmor %vm1776_vm14, %vm1777_vm13 }
 0xe2e   :  { %v1772_v23 = vmul.f32 %v2213_v51, %v1771_v1 }
 0xe30   :  { %v1773_v62 = vmul.f32 0.5, %v1772_v23 }
 0xe32   :  { %v1774_v53 = vsub.f32 1.5, %v1773_v62 }
 0xe34   :  { %v1775_v18 = vmul.f32 %v2213_v51, %v1774_v53 }
 0xe36   :  { %v1779_v57 = vsel %vm1778_vm15, %v2213_v51, %v1775_v18 }
 0xe37   :  { %v1783_v12 = vmul.f32 %v1779_v57, %v3283_v20 }
 0xe39   :  { %v1788_v47 = vmul.f32 %v1784_v41, %v1783_v12  ;;  %v1894_v41 = vld [vmem:[%s3380_s15 + $0x8] sm:$0xff] }
 0xe3a   :  { %1927 = vmatpush.msra.mxu1 %v1894_v41 }
 0xe3b   :  { %v1793_v16 = vadd.f32 %v1789_v56, %v1788_v47 }
 0xe3c   :  { %1928 = vmatpush.msra.mxu1 %v1893_v19 }
 0xe3d   :  { %v1804_v6 = vsel %vm136_vm1, %v1793_v16, 0.0 }
 0xe3e   :  { %1805 = vadd.xlane.f32.xlu1 %v1804_v6 }
 0xe7f   :  { %v1797_v28 = vpop.xlane.xlu1 %1796 }
 0xe80   :  { %v1807_v45 = vmul.f32 %v1797_v28, %v2783_v54 }
 0xe82   :  { %v1811_v61 = vsub.f32 %v1790_v42, %v1807_v45 }
 0xe84   :  { %v1815_v32 = vmul.f32 %v1811_v61, %v1811_v61 }
 0xe86   :  { %v1819_v5 = vsel %vm136_vm1, %v1815_v32, 0.0 }
 0xe87   :  { %v1800_v4 = vpop.xlane.xlu2 %1799  ;;  %1820 = vadd.xlane.f32.xlu2 %v1819_v5 }
 0xe88   :  { %v1808_v25 = vmul.f32 %v1800_v4, %v2783_v54 }
 0xe8a   :  { %v3303_v52 = vsub.f32 %v1791_v30, %v1808_v25 }
 0xe8c   :  { %v1816_v20 = vmul.f32 %v3303_v52, %v3303_v52 }
 0xe8e   :  { %v1822_v22 = vsel %vm136_vm1, %v1816_v20, 0.0 }
 0xe8f   :  { %1823 = vadd.xlane.f32.xlu0 %v1822_v22  ;;  %v1803_v7 = vpop.xlane.xlu0 %1802 }
 0xe90   :  { %v1809_v38 = vmul.f32 %v1803_v7, %v2783_v54 }
 0xe92   :  { %v3309_v46 = vsub.f32 %v1792_v31, %v1809_v38 }
 0xe94   :  { %v1817_v36 = vmul.f32 %v3309_v46, %v3309_v46 }
 0xe96   :  { %v1825_v33 = vsel %vm136_vm1, %v1817_v36, 0.0 }
 0xe97   :  { %1826 = vadd.xlane.f32.xlu1 %v1825_v33 }
 0xeb1   :  { %v1806_v44 = vpop.xlane.xlu1 %1805 }
 0xeb2   :  { %v1810_v63 = vmul.f32 %v1806_v44, %v2783_v54 }
 0xeb4   :  { %v3315_v50 = vsub.f32 %v1793_v16, %v1810_v63 }
 0xeb6   :  { %v1818_v29 = vmul.f32 %v3315_v50, %v3315_v50 }
 0xeb8   :  { %v1828_v0 = vsel %vm136_vm1, %v1818_v29, 0.0 }
 0xeb9   :  { %1829 = vadd.xlane.f32.xlu2 %v1828_v0 }
 0xefa   :  { %v1821_v40 = vpop.xlane.xlu2 %1820 }
 0xefb   :  { %v1831_v49 = vmul.f32 %v1821_v40, %v2783_v54 }
 0xefd   :  { %v1835_v56 = vadd.f32 1e-05, %v1831_v49 }
 0xeff   :  { %2214 = vrsqrt.f32 %v1835_v56  ;;  %vm1845_vm4 = vweird.f32 %v1835_v56 }
 0xf02   :  { %v1824_v37 = vpop.xlane.xlu0 %1823 }
 0xf03   :  { %v1832_v39 = vmul.f32 %v1824_v37, %v2783_v54 }
 0xf05   :  { %v2215_v13 = vpop.eup %2214  ;;  %v1836_v59 = vadd.f32 1e-05, %v1832_v39 }
 0xf06   :  { %v1840_v42 = vmul.f32 %v2215_v13, %v1835_v56  ;;  %vm1846_vm2 = vweird.f32 %v2215_v13 }
 0xf07   :  { %2216 = vrsqrt.f32 %v1836_v59  ;;  %vm1847_vm3 = vmor %vm1845_vm4, %vm1846_vm2  ;;  %vm1855_vm6 = vweird.f32 %v1836_v59 }
 0xf08   :  { %v1841_v48 = vmul.f32 %v2215_v13, %v1840_v42 }
 0xf0a   :  { %v1842_v26 = vmul.f32 0.5, %v1841_v48  ;;  %v1827_v2 = vpop.xlane.xlu1 %1826 }
 0xf0b   :  { %v1833_v8 = vmul.f32 %v1827_v2, %v2783_v54 }
 0xf0c   :  { %v1843_v11 = vsub.f32 1.5, %v1842_v26 }
 0xf0d   :  { %v2217_v55 = vpop.eup %2216  ;;  %v1837_v24 = vadd.f32 1e-05, %v1833_v8 }
 0xf0e   :  { %v1844_v27 = vmul.f32 %v2215_v13, %v1843_v11  ;;  %v1850_v30 = vmul.f32 %v2217_v55, %v1836_v59  ;;  %vm1856_vm5 = vweird.f32 %v2217_v55 }
 0xf0f   :  { %2218 = vrsqrt.f32 %v1837_v24  ;;  %vm1857_vm7 = vmor %vm1855_vm6, %vm1856_vm5  ;;  %vm1865_vm9 = vweird.f32 %v1837_v24 }
 0xf10   :  { %v1848_v9 = vsel %vm1847_vm3, %v2215_v13, %v1844_v27  ;;  %v1851_v3 = vmul.f32 %v2217_v55, %v1850_v30 }
 0xf11   :  { %v1879_v21 = vmul.f32 %v1848_v9, %v1811_v61 }
 0xf12   :  { %v1852_v31 = vmul.f32 0.5, %v1851_v3 }
 0xf13   :  { %v1884_v35 = vmul.f32 %v1883_v34, %v1879_v21 }
 0xf14   :  { %v1853_v15 = vsub.f32 1.5, %v1852_v31 }
 0xf15   :  { %v2219_v10 = vpop.eup %2218  ;;  %v1889_v43 = vadd.f32 %v1888_v58, %v1884_v35 }
 0xf16   :  { %v1854_v51 = vmul.f32 %v2217_v55, %v1853_v15  ;;  %v1860_v1 = vmul.f32 %v2219_v10, %v1837_v24  ;;  %vm1866_vm8 = vweird.f32 %v2219_v10 }
 0xf17   :  { %2051 = vmatmul.msk.f32.vlgmr.msra.gmra.mxu1 %vm136_vm1, %v1889_v43  ;;  %vm1867_vm10 = vmor %vm1865_vm9, %vm1866_vm8 }
 0xf18   :  { %v1858_v23 = vsel %vm1857_vm7, %v2217_v55, %v1854_v51  ;;  %v1861_v62 = vmul.f32 %v2219_v10, %v1860_v1 }
 0xf19   :  { %v1880_v53 = vmul.f32 %v1858_v23, %v3303_v52 }
 0xf1a   :  { %v1862_v18 = vmul.f32 0.5, %v1861_v62 }
 0xf1b   :  { %v1885_v57 = vmul.f32 %v1883_v34, %v1880_v53 }
 0xf1c   :  { %v1863_v12 = vsub.f32 1.5, %v1862_v18 }
 0xf1d   :  { %v1890_v47 = vadd.f32 %v1888_v58, %v1885_v57 }
 0xf1e   :  { %v1864_v16 = vmul.f32 %v2219_v10, %v1863_v12 }
 0xf1f   :  { %2052 = vmatmul.msk.f32.gmra.mxu1 %vm136_vm1, %v1890_v47 }
 0xf20   :  { %v1868_v6 = vsel %vm1867_vm10, %v2219_v10, %v1864_v16 }
 0xf21   :  { %v1881_v28 = vmul.f32 %v1868_v6, %v3309_v46 }
 0xf23   :  { %v1886_v45 = vmul.f32 %v1883_v34, %v1881_v28 }
 0xf25   :  { %v1891_v61 = vadd.f32 %v1888_v58, %v1886_v45 }
 0xf27   :  { %2053 = vmatmul.msk.f32.gmra.mxu1 %vm136_vm1, %v1891_v61 }
 0xf2c   :  { %v1830_v32 = vpop.xlane.xlu2 %1829 }
 0xf2d   :  { %v1834_v5 = vmul.f32 %v1830_v32, %v2783_v54  ;;  %v2147_v54 = vld [vmem:[%s3379_s16] ss:$0 sm:$0xff] }
 0xf2f   :  { %v1838_v4 = vadd.f32 1e-05, %v1834_v5 }
 0xf31   :  { %2220 = vrsqrt.f32 %v1838_v4  ;;  %vm1875_vm12 = vweird.f32 %v1838_v4 }
 0xf37   :  { %v2221_v25 = vpop.eup %2220 }
 0xf38   :  { %v1870_v52 = vmul.f32 %v2221_v25, %v1838_v4  ;;  %vm1876_vm11 = vweird.f32 %v2221_v25 }
 0xf39   :  { %vm1877_vm13 = vmor %vm1875_vm12, %vm1876_vm11 }
 0xf3a   :  { %v1871_v20 = vmul.f32 %v2221_v25, %v1870_v52 }
 0xf3c   :  { %v1872_v22 = vmul.f32 0.5, %v1871_v20 }
 0xf3e   :  { %v1873_v7 = vsub.f32 1.5, %v1872_v22 }
 0xf40   :  { %v1874_v38 = vmul.f32 %v2221_v25, %v1873_v7 }
 0xf42   :  { %v1878_v36 = vsel %vm1877_vm13, %v2221_v25, %v1874_v38 }
 0xf43   :  { %v1882_v46 = vmul.f32 %v1878_v36, %v3315_v50 }
 0xf45   :  { %v1887_v33 = vmul.f32 %v1883_v34, %v1882_v46 }
 0xf47   :  { %v1892_v44 = vadd.f32 %v1888_v58, %v1887_v33 }
 0xf49   :  { %2054 = vmatmul.msk.f32.gmra.mxu1 %vm136_vm1, %v1892_v44 }
 0xf94   :  { %v1930_v63 = vpop.f32.mrf.mxu1 }
 0xf95   :  { %v1931_v29 = vadd.f32 %v2147_v54, %v1930_v63 }
 0xf97   :  { %1942 = vst.msk [vmem:[%s3382_s17] sm:$0xff] %vm66_vm0, %v1931_v29 }
 0xf9c   :  { %v1933_v0 = vpop.f32.mrf.mxu1 }
 0xf9d   :  { %v1934_v17 = vadd.f32 %v2147_v54, %v1933_v0 }
 0xf9f   :  { %1943 = vst.msk [vmem:[%s3382_s17 + $0x8] sm:$0xff] %vm66_vm0, %v1934_v17 }
 0xfa4   :  { %v1936_v50 = vpop.f32.mrf.mxu1 }
 0xfa5   :  { %v1937_v60 = vadd.f32 %v2147_v54, %v1936_v50 }
 0xfa7   :  { %1944 = vst.msk [vmem:[%s3382_s17 + $0x10] sm:$0xff] %vm66_vm0, %v1937_v60 }
 0xfc6   :  { %v1939_v41 = vpop.f32.mrf.mxu1 }
 0xfc7   :  { %v1940_v19 = vadd.f32 %v2147_v54, %v1939_v41 }
 0xfc9   :  { %1945 = vst.msk [vmem:[%s3382_s17 + $0x18] sm:$0xff] %vm66_vm0, %v1940_v19 }

</bundles_post_ra>
